<compile_context>
chip_gen: v7x
topology: tpu7x:2x2x1
jax: 0.10.0
libtpu: 0.0.40
codegen_flags: <defaults>
</compile_context>

<pallas_src>
import math
import functools

import jax
import jax.numpy as jnp
from jax.experimental import pallas as pl
from jax.experimental.pallas import tpu as pltpu


# ----------------------------- in-kernel helpers -----------------------------

def _layernorm(x, g, b, eps=1e-5):
    # x: (S, D) f32, g/b: (1, D) f32  (matches nn.LayerNorm(input_dim), eps=1e-5)
    mu = jnp.mean(x, axis=-1, keepdims=True)
    var = jnp.mean((x - mu) ** 2, axis=-1, keepdims=True)
    return (x - mu) * jax.lax.rsqrt(var + eps) * g + b


def _softmax_lastdim(x):
    # f32 in / f32 out; approx reciprocal goes to the (otherwise idle) EUP slot.
    m = jnp.max(x, axis=-1, keepdims=True)
    e = jnp.exp(x - m)
    return e * pl.reciprocal(jnp.sum(e, axis=-1, keepdims=True), approx=True)


# ----------------------- fused decoder-stack kernel --------------------------

def decoder_stack_kernel(x_ref, e_ref, wattn_ref, bqkv_ref, bo_ref,
                         lng_ref, lnb_ref, w1_ref, b1_ref, w2_ref, b2_ref,
                         o_ref, *, num_heads, head_dim):
    layer = pl.program_id(1)          # innermost, "arbitrary" (carry) axis
    cdt = wattn_ref.dtype             # compute (MXU-operand) dtype, e.g. bf16
    D = num_heads * head_dim

    # Layer 0: seed the resident VMEM activation block with the embedded input.
    @pl.when(layer == 0)
    def _():
        o_ref[0] = x_ref[0].astype(jnp.float32)

    x = o_ref[0]                      # (S, D) f32 — carried across the layer axis
    e = e_ref[0].astype(cdt)          # (S, D) encoder outputs (K/V source)

    lng = lng_ref[0]                  # (3, D)  f32 LayerNorm gammas
    lnb = lnb_ref[0]                  # (3, D)  f32 LayerNorm betas
    bqkv = bqkv_ref[0]                # (6H, head_dim) f32 q/k/v biases (per head)
    bo = bo_ref[0]                    # (2, D) f32 output-projection biases

    def mha(xq, xkv, a):
        # Per-head weight slabs were pre-split on the host: static leading-axis
        # indexing of the weight ref -> no lane-dim slicing of activations and
        # no concatenate; head outputs accumulate through the output projection.
        S = xq.shape[0]
        scale = 1.0 / math.sqrt(head_dim)
        out = jnp.zeros((S, D), jnp.float32)
        for h in range(num_heads):                               # static unroll
            wq = wattn_ref[0, (a * 4 + 0) * num_heads + h]       # (head_dim, D)
            wk = wattn_ref[0, (a * 4 + 1) * num_heads + h]
            wv = wattn_ref[0, (a * 4 + 2) * num_heads + h]
            wo = wattn_ref[0, (a * 4 + 3) * num_heads + h]
            iq = (a * 3 + 0) * num_heads + h
            ik = (a * 3 + 1) * num_heads + h
            iv = (a * 3 + 2) * num_heads + h
            q = jnp.einsum('sd,fd->sf', xq, wq,
                           preferred_element_type=jnp.float32) + bqkv[iq:iq + 1]
            k = jnp.einsum('sd,fd->sf', xkv, wk,
                           preferred_element_type=jnp.float32) + bqkv[ik:ik + 1]
            v = jnp.einsum('sd,fd->sf', xkv, wv,
                           preferred_element_type=jnp.float32) + bqkv[iv:iv + 1]
            logits = jnp.einsum('sf,tf->st', q.astype(cdt), k.astype(cdt),
                                preferred_element_type=jnp.float32) * scale
            # TODO(synk): src_mask / tar_mask are None in the reference forward;
            # masked_fill path not wired.
            attn = _softmax_lastdim(logits)                      # (S, S) f32
            vals = jnp.einsum('st,tf->sf', attn.astype(cdt), v.astype(cdt),
                              preferred_element_type=jnp.float32)   # (S, head_dim)
            out = out + jnp.einsum('sf,fd->sd', vals.astype(cdt), wo,
                                   preferred_element_type=jnp.float32)
        return out + bo[a:a + 1]                                 # (S, D) f32

    # --- sublayer 1: norm1 + self-attention + residual (dropout1 = identity) ---
    x = _layernorm(x, lng[0:1], lnb[0:1])
    xc = x.astype(cdt)
    x = x + mha(xc, xc, 0)

    # --- sublayer 2: norm2 + cross-attention (K/V = e_outputs) + residual -----
    x = _layernorm(x, lng[1:2], lnb[1:2])
    x = x + mha(x.astype(cdt), e, 1)

    # --- sublayer 3: norm3 + position-wise feed-forward + residual ------------
    x = _layernorm(x, lng[2:3], lnb[2:3])
    h = jnp.dot(x.astype(cdt), w1_ref[0],
                preferred_element_type=jnp.float32) + b1_ref[0]
    h = jnp.maximum(h, 0.0)                      # ReLU (Dropout before it: identity)
    ff = jnp.dot(h.astype(cdt), w2_ref[0],
                 preferred_element_type=jnp.float32) + b2_ref[0]
    o_ref[0] = x + ff                            # dropout3 = identity (eval)


def transformer_decoder_forward(tokens, e_outputs, params, *, num_heads):
    B, S = tokens.shape
    D = params["embed"].shape[1]
    head_dim = D // num_heads
    L = params["w_attn"].shape[0]
    dff = params["w1"].shape[-1]
    cdt = params["w_attn"].dtype

    # TODO(synk): WordEmbedder / PositionEncoder source was not provided; assuming
    # nn.Embedding lookup + additive sinusoidal positional encoding (JAX glue).
    x = jnp.take(params["embed"], tokens, axis=0) + sinusoidal_pe(S, D)[None]
    x = x.astype(cdt)
    e = e_outputs.astype(cdt)

    kernel = functools.partial(decoder_stack_kernel,
                               num_heads=num_heads, head_dim=head_dim)
    nh8, nh6 = 8 * num_heads, 6 * num_heads
    return pl.pallas_call(
        kernel,
        out_shape=jax.ShapeDtypeStruct((B, S, D), jnp.float32),
        grid=(B, L),
        in_specs=[
            pl.BlockSpec((1, S, D), lambda b, l: (b, 0, 0)),                  # x (embedded)
            pl.BlockSpec((1, S, D), lambda b, l: (b, 0, 0)),                  # e_outputs
            pl.BlockSpec((1, nh8, head_dim, D), lambda b, l: (l, 0, 0, 0)),   # attn weights
            pl.BlockSpec((1, nh6, head_dim), lambda b, l: (l, 0, 0)),         # q/k/v biases
            pl.BlockSpec((1, 2, D), lambda b, l: (l, 0, 0)),                  # o-proj biases
            pl.BlockSpec((1, 3, D), lambda b, l: (l, 0, 0)),                  # LN gammas
            pl.BlockSpec((1, 3, D), lambda b, l: (l, 0, 0)),                  # LN betas
            pl.BlockSpec((1, D, dff), lambda b, l: (l, 0, 0)),                # FF W1
            pl.BlockSpec((1, 1, dff), lambda b, l: (l, 0, 0)),                # FF b1
            pl.BlockSpec((1, dff, D), lambda b, l: (l, 0, 0)),                # FF W2
            pl.BlockSpec((1, 1, D), lambda b, l: (l, 0, 0)),                  # FF b2
        ],
        out_specs=pl.BlockSpec((1, S, D), lambda b, l: (b, 0, 0)),
        compiler_params=pltpu.CompilerParams(
            dimension_semantics=("parallel", "arbitrary"),
            vmem_limit_bytes=32 * 1024 * 1024),
    )(x, e, params["w_attn"], params["b_qkv"], params["b_o"],
      params["ln_g"], params["ln_b"],
      params["w1"], params["b1"], params["w2"], params["b2"])


# ------------------------------ parameter setup -------------------------------

def _xavier_uniform(key, fan_in, fan_out, shape):
    bound = math.sqrt(6.0 / (fan_in + fan_out))
    return jax.random.uniform(key, shape, jnp.float32, -bound, bound)


def make_decoder_params(key, num_layers, vocab_size, embed_dim, num_heads,
                        dim_feedforward, compute_dtype=jnp.bfloat16):
    D, H = embed_dim, num_heads
    hd = D // H
    keys = jax.random.split(key, 1 + num_layers)
    embed_table = jax.random.normal(keys[0], (vocab_size, D), jnp.float32)

    w_attn, b_qkv, b_o, lng, lnb, w1, b1, w2, b2 = ([] for _ in range(9))
    for l in range(num_layers):
        lk = jax.random.split(keys[1 + l], 10)
        slabs = []
        for a in range(2):                      # self-attn, cross-attn modules
            for p in range(4):                  # q, k, v, o (torch (out,in) layout)
                wt = _xavier_uniform(lk[4 * a + p], D, D, (D, D))
                if p < 3:                       # q/k/v: split output rows by head
                    slabs.append(wt.reshape(H, hd, D))
                else:                           # o: split input columns by head
                    slabs.append(wt.T.reshape(H, hd, D))
        w_attn.append(jnp.concatenate(slabs, axis=0))          # (8H, hd, D)
        b_qkv.append(jnp.zeros((6 * H, hd), jnp.float32))      # biases .fill_(0)
        b_o.append(jnp.zeros((2, D), jnp.float32))
        lng.append(jnp.ones((3, D), jnp.float32))              # LayerNorm gamma
        lnb.append(jnp.zeros((3, D), jnp.float32))             # LayerNorm beta
        w1.append(_xavier_uniform(lk[8], D, dim_feedforward, (D, dim_feedforward)))
        b1.append(jnp.zeros((1, dim_feedforward), jnp.float32))
        w2.append(_xavier_uniform(lk[9], dim_feedforward, D, (dim_feedforward, D)))
        b2.append(jnp.zeros((1, D), jnp.float32))

    return {
        "embed": embed_table,                                   # (V, D)     f32
        "w_attn": jnp.stack(w_attn).astype(compute_dtype),      # (L,8H,hd,D) bf16
        "b_qkv": jnp.stack(b_qkv),                              # (L,6H,hd)  f32
        "b_o": jnp.stack(b_o),                                  # (L,2,D)    f32
        "ln_g": jnp.stack(lng),                                 # (L,3,D)    f32
        "ln_b": jnp.stack(lnb),                                 # (L,3,D)    f32
        "w1": jnp.stack(w1).astype(compute_dtype),              # (L,D,dff)  bf16
        "b1": jnp.stack(b1),                                    # (L,1,dff)  f32
        "w2": jnp.stack(w2).astype(compute_dtype),              # (L,dff,D)  bf16
        "b2": jnp.stack(b2),                                    # (L,1,D)    f32
    }


def sinusoidal_pe(seq_len, d_model):
    pos = jnp.arange(seq_len, dtype=jnp.float32)[:, None]
    i = jnp.arange(0, d_model, 2, dtype=jnp.float32)[None, :]
    angle = pos / jnp.power(10000.0, i / d_model)
    pe = jnp.zeros((seq_len, d_model), jnp.float32)
    pe = pe.at[:, 0::2].set(jnp.sin(angle))
    pe = pe.at[:, 1::2].set(jnp.cos(angle))
    return pe


# ------------------------------------ main ------------------------------------

if __name__ == "__main__":
    # vreg / MXU friendly demo geometry: D multiple of 128, S multiple of 8.
    B, S, D, H = 2, 8, 128, 4
    NUM_LAYERS, VOCAB, DFF = 2, 32, 256
    assert D % H == 0

    key = jax.random.PRNGKey(0)
    k_tok, k_enc, k_par = jax.random.split(key, 3)

    tokens = jax.random.randint(k_tok, (B, S), 0, VOCAB, dtype=jnp.int32)
    e_outputs = jax.random.normal(k_enc, (B, S, D), jnp.float32)
    params = make_decoder_params(k_par, NUM_LAYERS, VOCAB, D, H, DFF)

    fwd = jax.jit(functools.partial(transformer_decoder_forward, num_heads=H))
    out = fwd(tokens, e_outputs, params)
    out = jax.block_until_ready(out)

    assert out.shape == (B, S, D) and out.dtype == jnp.float32
    assert bool(jnp.all(jnp.isfinite(out)))
    print("KERNEL_OK")
</pallas_src>

<mosaic_0001>
module attributes {stable_mosaic.version = 11 : i64} {
  func.func @decoder_stack_kernel(%arg0: i32, %arg1: i32, %arg2: memref<1x8x128xbf16, #tpu.memory_space<vmem>>, %arg3: memref<1x8x128xbf16, #tpu.memory_space<vmem>>, %arg4: memref<1x32x32x128xbf16, #tpu.memory_space<vmem>>, %arg5: memref<1x24x32xf32, #tpu.memory_space<vmem>>, %arg6: memref<1x2x128xf32, #tpu.memory_space<vmem>>, %arg7: memref<1x3x128xf32, #tpu.memory_space<vmem>>, %arg8: memref<1x3x128xf32, #tpu.memory_space<vmem>>, %arg9: memref<1x128x256xbf16, #tpu.memory_space<vmem>>, %arg10: memref<1x1x256xf32, #tpu.memory_space<vmem>>, %arg11: memref<1x256x128xbf16, #tpu.memory_space<vmem>>, %arg12: memref<1x1x128xf32, #tpu.memory_space<vmem>>, %arg13: memref<1x8x128xf32, #tpu.memory_space<vmem>>) attributes {dimension_semantics = [#tpu.dimension_semantics<parallel>, #tpu.dimension_semantics<arbitrary>], iteration_bounds = array<i64: 2, 2>, scalar_prefetch = 0 : i64, scratch_operands = 0 : i64, tpu.core_type = #tpu.core_type<tc>, window_params = [{transform_indices = @transform_0, window_bounds = array<i64: 1, 8, 128>}, {transform_indices = @transform_1, window_bounds = array<i64: 1, 8, 128>}, {transform_indices = @transform_2, window_bounds = array<i64: 1, 32, 32, 128>}, {transform_indices = @transform_3, window_bounds = array<i64: 1, 24, 32>}, {transform_indices = @transform_4, window_bounds = array<i64: 1, 2, 128>}, {transform_indices = @transform_5, window_bounds = array<i64: 1, 3, 128>}, {transform_indices = @transform_6, window_bounds = array<i64: 1, 3, 128>}, {transform_indices = @transform_7, window_bounds = array<i64: 1, 128, 256>}, {transform_indices = @transform_8, window_bounds = array<i64: 1, 1, 256>}, {transform_indices = @transform_9, window_bounds = array<i64: 1, 256, 128>}, {transform_indices = @transform_10, window_bounds = array<i64: 1, 1, 128>}, {transform_indices = @transform_11, window_bounds = array<i64: 1, 8, 128>}]} {
    %c0_i32 = arith.constant 0 : i32
    %0 = arith.cmpi eq, %arg1, %c0_i32 : i32
    %1 = arith.extui %0 : i1 to i32
    %c0_i32_0 = arith.constant 0 : i32
    %2 = arith.cmpi ne, %1, %c0_i32_0 : i32
    scf.if %2 {
      %c0_221 = arith.constant 0 : index
      %c0_222 = arith.constant 0 : index
      %c0_223 = arith.constant 0 : index
      %449 = vector.load %arg2[%c0_221, %c0_222, %c0_223] : memref<1x8x128xbf16, #tpu.memory_space<vmem>>, vector<1x8x128xbf16>
      %450 = vector.shape_cast %449 : vector<1x8x128xbf16> to vector<8x128xbf16>
      %451 = arith.extf %450 : vector<8x128xbf16> to vector<8x128xf32>
      %c0_224 = arith.constant 0 : index
      %c0_225 = arith.constant 0 : index
      %c0_226 = arith.constant 0 : index
      %452 = vector.load %arg13[%c0_224, %c0_225, %c0_226] : memref<1x8x128xf32, #tpu.memory_space<vmem>>, vector<1x8x128xf32>
      %453 = vector.shape_cast %452 : vector<1x8x128xf32> to vector<8x128xf32>
      %454 = vector.shape_cast %451 : vector<8x128xf32> to vector<1x8x128xf32>
      tpu.vector_store %arg13[%c0_224, %c0_225, %c0_226], %454 {strides = array<i32>} : memref<1x8x128xf32, #tpu.memory_space<vmem>>, vector<1x8x128xf32>,
    } else {
    }
    %c0 = arith.constant 0 : index
    %c0_1 = arith.constant 0 : index
    %c0_2 = arith.constant 0 : index
    %3 = vector.load %arg13[%c0, %c0_1, %c0_2] : memref<1x8x128xf32, #tpu.memory_space<vmem>>, vector<1x8x128xf32>
    %4 = vector.shape_cast %3 : vector<1x8x128xf32> to vector<8x128xf32>
    %c0_3 = arith.constant 0 : index
    %c0_4 = arith.constant 0 : index
    %c0_5 = arith.constant 0 : index
    %5 = vector.load %arg3[%c0_3, %c0_4, %c0_5] : memref<1x8x128xbf16, #tpu.memory_space<vmem>>, vector<1x8x128xbf16>
    %6 = vector.shape_cast %5 : vector<1x8x128xbf16> to vector<8x128xbf16>
    %c0_6 = arith.constant 0 : index
    %c0_7 = arith.constant 0 : index
    %c0_8 = arith.constant 0 : index
    %7 = vector.load %arg7[%c0_6, %c0_7, %c0_8] : memref<1x3x128xf32, #tpu.memory_space<vmem>>, vector<1x3x128xf32>
    %8 = vector.shape_cast %7 : vector<1x3x128xf32> to vector<3x128xf32>
    %c0_9 = arith.constant 0 : index
    %c0_10 = arith.constant 0 : index
    %c0_11 = arith.constant 0 : index
    %9 = vector.load %arg8[%c0_9, %c0_10, %c0_11] : memref<1x3x128xf32, #tpu.memory_space<vmem>>, vector<1x3x128xf32>
    %10 = vector.shape_cast %9 : vector<1x3x128xf32> to vector<3x128xf32>
    %c0_12 = arith.constant 0 : index
    %c0_13 = arith.constant 0 : index
    %c0_14 = arith.constant 0 : index
    %11 = vector.load %arg5[%c0_12, %c0_13, %c0_14] : memref<1x24x32xf32, #tpu.memory_space<vmem>>, vector<1x24x32xf32>
    %12 = vector.shape_cast %11 : vector<1x24x32xf32> to vector<24x32xf32>
    %c0_15 = arith.constant 0 : index
    %c0_16 = arith.constant 0 : index
    %c0_17 = arith.constant 0 : index
    %13 = vector.load %arg6[%c0_15, %c0_16, %c0_17] : memref<1x2x128xf32, #tpu.memory_space<vmem>>, vector<1x2x128xf32>
    %14 = vector.shape_cast %13 : vector<1x2x128xf32> to vector<2x128xf32>
    %15 = vector.extract_strided_slice %8 {offsets = [0, 0], sizes = [1, 128], strides = [1, 1]} : vector<3x128xf32> to vector<1x128xf32>
    %16 = vector.extract_strided_slice %10 {offsets = [0, 0], sizes = [1, 128], strides = [1, 1]} : vector<3x128xf32> to vector<1x128xf32>
    %cst = arith.constant dense<0.000000e+00> : vector<8xf32>
    %17 = vector.multi_reduction <add>, %4, %cst [1] : vector<8x128xf32> to vector<8xf32>
    %18 = vector.shape_cast %17 : vector<8xf32> to vector<8x1xf32>
    %cst_18 = arith.constant 1.280000e+02 : f32
    %19 = vector.broadcast %cst_18 : f32 to vector<8x1xf32>
    %20 = arith.divf %18, %19 : vector<8x1xf32>
    %21 = vector.broadcast %20 : vector<8x1xf32> to vector<8x128xf32>
    %22 = arith.subf %4, %21 : vector<8x128xf32>
    %23 = arith.mulf %22, %22 : vector<8x128xf32>
    %cst_19 = arith.constant dense<0.000000e+00> : vector<8xf32>
    %24 = vector.multi_reduction <add>, %23, %cst_19 [1] : vector<8x128xf32> to vector<8xf32>
    %25 = vector.shape_cast %24 : vector<8xf32> to vector<8x1xf32>
    %cst_20 = arith.constant 1.280000e+02 : f32
    %26 = vector.broadcast %cst_20 : f32 to vector<8x1xf32>
    %27 = arith.divf %25, %26 : vector<8x1xf32>
    %28 = vector.broadcast %20 : vector<8x1xf32> to vector<8x128xf32>
    %29 = arith.subf %4, %28 : vector<8x128xf32>
    %cst_21 = arith.constant 9.99999974E-6 : f32
    %30 = vector.broadcast %cst_21 : f32 to vector<8x1xf32>
    %31 = arith.addf %27, %30 : vector<8x1xf32>
    %32 = math.rsqrt %31 : vector<8x1xf32>
    %33 = vector.broadcast %32 : vector<8x1xf32> to vector<8x128xf32>
    %34 = arith.mulf %29, %33 : vector<8x128xf32>
    %35 = vector.broadcast %15 : vector<1x128xf32> to vector<8x128xf32>
    %36 = arith.mulf %34, %35 : vector<8x128xf32>
    %37 = vector.broadcast %16 : vector<1x128xf32> to vector<8x128xf32>
    %38 = arith.addf %36, %37 : vector<8x128xf32>
    %39 = arith.truncf %38 : vector<8x128xf32> to vector<8x128xbf16>
    %cst_22 = arith.constant 0.000000e+00 : f32
    %40 = vector.broadcast %cst_22 : f32 to vector<8x128xf32>
    %c0_23 = arith.constant 0 : index
    %c0_24 = arith.constant 0 : index
    %c0_25 = arith.constant 0 : index
    %c0_26 = arith.constant 0 : index
    %41 = vector.load %arg4[%c0_23, %c0_24, %c0_25, %c0_26] : memref<1x32x32x128xbf16, #tpu.memory_space<vmem>>, vector<1x1x32x128xbf16>
    %42 = vector.shape_cast %41 : vector<1x1x32x128xbf16> to vector<32x128xbf16>
    %c0_27 = arith.constant 0 : index
    %c4 = arith.constant 4 : index
    %c0_28 = arith.constant 0 : index
    %c0_29 = arith.constant 0 : index
    %43 = vector.load %arg4[%c0_27, %c4, %c0_28, %c0_29] : memref<1x32x32x128xbf16, #tpu.memory_space<vmem>>, vector<1x1x32x128xbf16>
    %44 = vector.shape_cast %43 : vector<1x1x32x128xbf16> to vector<32x128xbf16>
    %c0_30 = arith.constant 0 : index
    %c8 = arith.constant 8 : index
    %c0_31 = arith.constant 0 : index
    %c0_32 = arith.constant 0 : index
    %45 = vector.load %arg4[%c0_30, %c8, %c0_31, %c0_32] : memref<1x32x32x128xbf16, #tpu.memory_space<vmem>>, vector<1x1x32x128xbf16>
    %46 = vector.shape_cast %45 : vector<1x1x32x128xbf16> to vector<32x128xbf16>
    %c0_33 = arith.constant 0 : index
    %c12 = arith.constant 12 : index
    %c0_34 = arith.constant 0 : index
    %c0_35 = arith.constant 0 : index
    %47 = vector.load %arg4[%c0_33, %c12, %c0_34, %c0_35] : memref<1x32x32x128xbf16, #tpu.memory_space<vmem>>, vector<1x1x32x128xbf16>
    %48 = vector.shape_cast %47 : vector<1x1x32x128xbf16> to vector<32x128xbf16>
    "tpu.trace_start"() <{level = 10 : i32, message = "sd,fd->sf"}> : () -> ()
    %cst_36 = arith.constant dense<0.000000e+00> : vector<8x32xf32>
    %49 = tpu.matmul %39, %42, %cst_36 {dimension_numbers = #tpu.dot_dimension_numbers<[1], [1], [0], [0], [0, 0, 1, 0], [], []>} : vector<8x128xbf16>, vector<32x128xbf16>, vector<8x32xf32> -> vector<8x32xf32>
    "tpu.trace_stop"() : () -> ()
    %50 = vector.extract_strided_slice %12 {offsets = [0, 0], sizes = [1, 32], strides = [1, 1]} : vector<24x32xf32> to vector<1x32xf32>
    %51 = vector.broadcast %50 : vector<1x32xf32> to vector<8x32xf32>
    %52 = arith.addf %49, %51 : vector<8x32xf32>
    "tpu.trace_start"() <{level = 10 : i32, message = "sd,fd->sf"}> : () -> ()
    %cst_37 = arith.constant dense<0.000000e+00> : vector<8x32xf32>
    %53 = tpu.matmul %39, %44, %cst_37 {dimension_numbers = #tpu.dot_dimension_numbers<[1], [1], [0], [0], [0, 0, 1, 0], [], []>} : vector<8x128xbf16>, vector<32x128xbf16>, vector<8x32xf32> -> vector<8x32xf32>
    "tpu.trace_stop"() : () -> ()
    %54 = vector.extract_strided_slice %12 {offsets = [4, 0], sizes = [1, 32], strides = [1, 1]} : vector<24x32xf32> to vector<1x32xf32>
    %55 = vector.broadcast %54 : vector<1x32xf32> to vector<8x32xf32>
    %56 = arith.addf %53, %55 : vector<8x32xf32>
    "tpu.trace_start"() <{level = 10 : i32, message = "sd,fd->sf"}> : () -> ()
    %cst_38 = arith.constant dense<0.000000e+00> : vector<8x32xf32>
    %57 = tpu.matmul %39, %46, %cst_38 {dimension_numbers = #tpu.dot_dimension_numbers<[1], [1], [0], [0], [0, 0, 1, 0], [], []>} : vector<8x128xbf16>, vector<32x128xbf16>, vector<8x32xf32> -> vector<8x32xf32>
    "tpu.trace_stop"() : () -> ()
    %58 = vector.extract_strided_slice %12 {offsets = [8, 0], sizes = [1, 32], strides = [1, 1]} : vector<24x32xf32> to vector<1x32xf32>
    %59 = vector.broadcast %58 : vector<1x32xf32> to vector<8x32xf32>
    %60 = arith.addf %57, %59 : vector<8x32xf32>
    %61 = arith.truncf %52 : vector<8x32xf32> to vector<8x32xbf16>
    %62 = arith.truncf %56 : vector<8x32xf32> to vector<8x32xbf16>
    "tpu.trace_start"() <{level = 10 : i32, message = "sf,tf->st"}> : () -> ()
    %cst_39 = arith.constant dense<0.000000e+00> : vector<8x8xf32>
    %63 = tpu.matmul %61, %62, %cst_39 {dimension_numbers = #tpu.dot_dimension_numbers<[1], [1], [0], [0], [0, 0, 1, 0], [], []>} : vector<8x32xbf16>, vector<8x32xbf16>, vector<8x8xf32> -> vector<8x8xf32>
    "tpu.trace_stop"() : () -> ()
    %cst_40 = arith.constant 0.176776692 : f32
    %64 = vector.broadcast %cst_40 : f32 to vector<8x8xf32>
    %65 = arith.mulf %63, %64 : vector<8x8xf32>
    %cst_41 = arith.constant dense<0xFF800000> : vector<8xf32>
    %66 = vector.multi_reduction <maximumf>, %65, %cst_41 [1] : vector<8x8xf32> to vector<8xf32>
    %67 = vector.shape_cast %66 : vector<8xf32> to vector<8x1xf32>
    %68 = vector.broadcast %67 : vector<8x1xf32> to vector<8x8xf32>
    %69 = arith.subf %65, %68 : vector<8x8xf32>
    %70 = math.exp %69 : vector<8x8xf32>
    %cst_42 = arith.constant dense<0.000000e+00> : vector<8xf32>
    %71 = vector.multi_reduction <add>, %70, %cst_42 [1] : vector<8x8xf32> to vector<8xf32>
    %72 = vector.shape_cast %71 : vector<8xf32> to vector<8x1xf32>
    %73 = tpu.reciprocal %72 {approx = true} : vector<8x1xf32> -> vector<8x1xf32>
    %74 = vector.broadcast %73 : vector<8x1xf32> to vector<8x8xf32>
    %75 = arith.mulf %70, %74 : vector<8x8xf32>
    %76 = arith.truncf %75 : vector<8x8xf32> to vector<8x8xbf16>
    %77 = arith.truncf %60 : vector<8x32xf32> to vector<8x32xbf16>
    "tpu.trace_start"() <{level = 10 : i32, message = "st,tf->sf"}> : () -> ()
    %cst_43 = arith.constant dense<0.000000e+00> : vector<8x32xf32>
    %78 = tpu.matmul %76, %77, %cst_43 {dimension_numbers = #tpu.dot_dimension_numbers<[1], [0], [0], [1], [0, 0, 1, 1], [], []>} : vector<8x8xbf16>, vector<8x32xbf16>, vector<8x32xf32> -> vector<8x32xf32>
    "tpu.trace_stop"() : () -> ()
    %79 = arith.truncf %78 : vector<8x32xf32> to vector<8x32xbf16>
    "tpu.trace_start"() <{level = 10 : i32, message = "sf,fd->sd"}> : () -> ()
    %cst_44 = arith.constant dense<0.000000e+00> : vector<8x128xf32>
    %80 = tpu.matmul %79, %48, %cst_44 {dimension_numbers = #tpu.dot_dimension_numbers<[1], [0], [0], [1], [0, 0, 1, 1], [], []>} : vector<8x32xbf16>, vector<32x128xbf16>, vector<8x128xf32> -> vector<8x128xf32>
    "tpu.trace_stop"() : () -> ()
    %81 = arith.addf %40, %80 : vector<8x128xf32>
    %c0_45 = arith.constant 0 : index
    %c1 = arith.constant 1 : index
    %c0_46 = arith.constant 0 : index
    %c0_47 = arith.constant 0 : index
    %82 = vector.load %arg4[%c0_45, %c1, %c0_46, %c0_47] : memref<1x32x32x128xbf16, #tpu.memory_space<vmem>>, vector<1x1x32x128xbf16>
    %83 = vector.shape_cast %82 : vector<1x1x32x128xbf16> to vector<32x128xbf16>
    %c0_48 = arith.constant 0 : index
    %c5 = arith.constant 5 : index
    %c0_49 = arith.constant 0 : index
    %c0_50 = arith.constant 0 : index
    %84 = vector.load %arg4[%c0_48, %c5, %c0_49, %c0_50] : memref<1x32x32x128xbf16, #tpu.memory_space<vmem>>, vector<1x1x32x128xbf16>
    %85 = vector.shape_cast %84 : vector<1x1x32x128xbf16> to vector<32x128xbf16>
    %c0_51 = arith.constant 0 : index
    %c9 = arith.constant 9 : index
    %c0_52 = arith.constant 0 : index
    %c0_53 = arith.constant 0 : index
    %86 = vector.load %arg4[%c0_51, %c9, %c0_52, %c0_53] : memref<1x32x32x128xbf16, #tpu.memory_space<vmem>>, vector<1x1x32x128xbf16>
    %87 = vector.shape_cast %86 : vector<1x1x32x128xbf16> to vector<32x128xbf16>
    %c0_54 = arith.constant 0 : index
    %c13 = arith.constant 13 : index
    %c0_55 = arith.constant 0 : index
    %c0_56 = arith.constant 0 : index
    %88 = vector.load %arg4[%c0_54, %c13, %c0_55, %c0_56] : memref<1x32x32x128xbf16, #tpu.memory_space<vmem>>, vector<1x1x32x128xbf16>
    %89 = vector.shape_cast %88 : vector<1x1x32x128xbf16> to vector<32x128xbf16>
    "tpu.trace_start"() <{level = 10 : i32, message = "sd,fd->sf"}> : () -> ()
    %cst_57 = arith.constant dense<0.000000e+00> : vector<8x32xf32>
    %90 = tpu.matmul %39, %83, %cst_57 {dimension_numbers = #tpu.dot_dimension_numbers<[1], [1], [0], [0], [0, 0, 1, 0], [], []>} : vector<8x128xbf16>, vector<32x128xbf16>, vector<8x32xf32> -> vector<8x32xf32>
    "tpu.trace_stop"() : () -> ()
    %91 = vector.extract_strided_slice %12 {offsets = [1, 0], sizes = [1, 32], strides = [1, 1]} : vector<24x32xf32> to vector<1x32xf32>
    %92 = vector.broadcast %91 : vector<1x32xf32> to vector<8x32xf32>
    %93 = arith.addf %90, %92 : vector<8x32xf32>
    "tpu.trace_start"() <{level = 10 : i32, message = "sd,fd->sf"}> : () -> ()
    %cst_58 = arith.constant dense<0.000000e+00> : vector<8x32xf32>
    %94 = tpu.matmul %39, %85, %cst_58 {dimension_numbers = #tpu.dot_dimension_numbers<[1], [1], [0], [0], [0, 0, 1, 0], [], []>} : vector<8x128xbf16>, vector<32x128xbf16>, vector<8x32xf32> -> vector<8x32xf32>
    "tpu.trace_stop"() : () -> ()
    %95 = vector.extract_strided_slice %12 {offsets = [5, 0], sizes = [1, 32], strides = [1, 1]} : vector<24x32xf32> to vector<1x32xf32>
    %96 = vector.broadcast %95 : vector<1x32xf32> to vector<8x32xf32>
    %97 = arith.addf %94, %96 : vector<8x32xf32>
    "tpu.trace_start"() <{level = 10 : i32, message = "sd,fd->sf"}> : () -> ()
    %cst_59 = arith.constant dense<0.000000e+00> : vector<8x32xf32>
    %98 = tpu.matmul %39, %87, %cst_59 {dimension_numbers = #tpu.dot_dimension_numbers<[1], [1], [0], [0], [0, 0, 1, 0], [], []>} : vector<8x128xbf16>, vector<32x128xbf16>, vector<8x32xf32> -> vector<8x32xf32>
    "tpu.trace_stop"() : () -> ()
    %99 = vector.extract_strided_slice %12 {offsets = [9, 0], sizes = [1, 32], strides = [1, 1]} : vector<24x32xf32> to vector<1x32xf32>
    %100 = vector.broadcast %99 : vector<1x32xf32> to vector<8x32xf32>
    %101 = arith.addf %98, %100 : vector<8x32xf32>
    %102 = arith.truncf %93 : vector<8x32xf32> to vector<8x32xbf16>
    %103 = arith.truncf %97 : vector<8x32xf32> to vector<8x32xbf16>
    "tpu.trace_start"() <{level = 10 : i32, message = "sf,tf->st"}> : () -> ()
    %cst_60 = arith.constant dense<0.000000e+00> : vector<8x8xf32>
    %104 = tpu.matmul %102, %103, %cst_60 {dimension_numbers = #tpu.dot_dimension_numbers<[1], [1], [0], [0], [0, 0, 1, 0], [], []>} : vector<8x32xbf16>, vector<8x32xbf16>, vector<8x8xf32> -> vector<8x8xf32>
    "tpu.trace_stop"() : () -> ()
    %cst_61 = arith.constant 0.176776692 : f32
    %105 = vector.broadcast %cst_61 : f32 to vector<8x8xf32>
    %106 = arith.mulf %104, %105 : vector<8x8xf32>
    %cst_62 = arith.constant dense<0xFF800000> : vector<8xf32>
    %107 = vector.multi_reduction <maximumf>, %106, %cst_62 [1] : vector<8x8xf32> to vector<8xf32>
    %108 = vector.shape_cast %107 : vector<8xf32> to vector<8x1xf32>
    %109 = vector.broadcast %108 : vector<8x1xf32> to vector<8x8xf32>
    %110 = arith.subf %106, %109 : vector<8x8xf32>
    %111 = math.exp %110 : vector<8x8xf32>
    %cst_63 = arith.constant dense<0.000000e+00> : vector<8xf32>
    %112 = vector.multi_reduction <add>, %111, %cst_63 [1] : vector<8x8xf32> to vector<8xf32>
    %113 = vector.shape_cast %112 : vector<8xf32> to vector<8x1xf32>
    %114 = tpu.reciprocal %113 {approx = true} : vector<8x1xf32> -> vector<8x1xf32>
    %115 = vector.broadcast %114 : vector<8x1xf32> to vector<8x8xf32>
    %116 = arith.mulf %111, %115 : vector<8x8xf32>
    %117 = arith.truncf %116 : vector<8x8xf32> to vector<8x8xbf16>
    %118 = arith.truncf %101 : vector<8x32xf32> to vector<8x32xbf16>
    "tpu.trace_start"() <{level = 10 : i32, message = "st,tf->sf"}> : () -> ()
    %cst_64 = arith.constant dense<0.000000e+00> : vector<8x32xf32>
    %119 = tpu.matmul %117, %118, %cst_64 {dimension_numbers = #tpu.dot_dimension_numbers<[1], [0], [0], [1], [0, 0, 1, 1], [], []>} : vector<8x8xbf16>, vector<8x32xbf16>, vector<8x32xf32> -> vector<8x32xf32>
    "tpu.trace_stop"() : () -> ()
    %120 = arith.truncf %119 : vector<8x32xf32> to vector<8x32xbf16>
    "tpu.trace_start"() <{level = 10 : i32, message = "sf,fd->sd"}> : () -> ()
    %cst_65 = arith.constant dense<0.000000e+00> : vector<8x128xf32>
    %121 = tpu.matmul %120, %89, %cst_65 {dimension_numbers = #tpu.dot_dimension_numbers<[1], [0], [0], [1], [0, 0, 1, 1], [], []>} : vector<8x32xbf16>, vector<32x128xbf16>, vector<8x128xf32> -> vector<8x128xf32>
    "tpu.trace_stop"() : () -> ()
    %122 = arith.addf %81, %121 : vector<8x128xf32>
    %c0_66 = arith.constant 0 : index
    %c2 = arith.constant 2 : index
    %c0_67 = arith.constant 0 : index
    %c0_68 = arith.constant 0 : index
    %123 = vector.load %arg4[%c0_66, %c2, %c0_67, %c0_68] : memref<1x32x32x128xbf16, #tpu.memory_space<vmem>>, vector<1x1x32x128xbf16>
    %124 = vector.shape_cast %123 : vector<1x1x32x128xbf16> to vector<32x128xbf16>
    %c0_69 = arith.constant 0 : index
    %c6 = arith.constant 6 : index
    %c0_70 = arith.constant 0 : index
    %c0_71 = arith.constant 0 : index
    %125 = vector.load %arg4[%c0_69, %c6, %c0_70, %c0_71] : memref<1x32x32x128xbf16, #tpu.memory_space<vmem>>, vector<1x1x32x128xbf16>
    %126 = vector.shape_cast %125 : vector<1x1x32x128xbf16> to vector<32x128xbf16>
    %c0_72 = arith.constant 0 : index
    %c10 = arith.constant 10 : index
    %c0_73 = arith.constant 0 : index
    %c0_74 = arith.constant 0 : index
    %127 = vector.load %arg4[%c0_72, %c10, %c0_73, %c0_74] : memref<1x32x32x128xbf16, #tpu.memory_space<vmem>>, vector<1x1x32x128xbf16>
    %128 = vector.shape_cast %127 : vector<1x1x32x128xbf16> to vector<32x128xbf16>
    %c0_75 = arith.constant 0 : index
    %c14 = arith.constant 14 : index
    %c0_76 = arith.constant 0 : index
    %c0_77 = arith.constant 0 : index
    %129 = vector.load %arg4[%c0_75, %c14, %c0_76, %c0_77] : memref<1x32x32x128xbf16, #tpu.memory_space<vmem>>, vector<1x1x32x128xbf16>
    %130 = vector.shape_cast %129 : vector<1x1x32x128xbf16> to vector<32x128xbf16>
    "tpu.trace_start"() <{level = 10 : i32, message = "sd,fd->sf"}> : () -> ()
    %cst_78 = arith.constant dense<0.000000e+00> : vector<8x32xf32>
    %131 = tpu.matmul %39, %124, %cst_78 {dimension_numbers = #tpu.dot_dimension_numbers<[1], [1], [0], [0], [0, 0, 1, 0], [], []>} : vector<8x128xbf16>, vector<32x128xbf16>, vector<8x32xf32> -> vector<8x32xf32>
    "tpu.trace_stop"() : () -> ()
    %132 = vector.extract_strided_slice %12 {offsets = [2, 0], sizes = [1, 32], strides = [1, 1]} : vector<24x32xf32> to vector<1x32xf32>
    %133 = vector.broadcast %132 : vector<1x32xf32> to vector<8x32xf32>
    %134 = arith.addf %131, %133 : vector<8x32xf32>
    "tpu.trace_start"() <{level = 10 : i32, message = "sd,fd->sf"}> : () -> ()
    %cst_79 = arith.constant dense<0.000000e+00> : vector<8x32xf32>
    %135 = tpu.matmul %39, %126, %cst_79 {dimension_numbers = #tpu.dot_dimension_numbers<[1], [1], [0], [0], [0, 0, 1, 0], [], []>} : vector<8x128xbf16>, vector<32x128xbf16>, vector<8x32xf32> -> vector<8x32xf32>
    "tpu.trace_stop"() : () -> ()
    %136 = vector.extract_strided_slice %12 {offsets = [6, 0], sizes = [1, 32], strides = [1, 1]} : vector<24x32xf32> to vector<1x32xf32>
    %137 = vector.broadcast %136 : vector<1x32xf32> to vector<8x32xf32>
    %138 = arith.addf %135, %137 : vector<8x32xf32>
    "tpu.trace_start"() <{level = 10 : i32, message = "sd,fd->sf"}> : () -> ()
    %cst_80 = arith.constant dense<0.000000e+00> : vector<8x32xf32>
    %139 = tpu.matmul %39, %128, %cst_80 {dimension_numbers = #tpu.dot_dimension_numbers<[1], [1], [0], [0], [0, 0, 1, 0], [], []>} : vector<8x128xbf16>, vector<32x128xbf16>, vector<8x32xf32> -> vector<8x32xf32>
    "tpu.trace_stop"() : () -> ()
    %140 = vector.extract_strided_slice %12 {offsets = [10, 0], sizes = [1, 32], strides = [1, 1]} : vector<24x32xf32> to vector<1x32xf32>
    %141 = vector.broadcast %140 : vector<1x32xf32> to vector<8x32xf32>
    %142 = arith.addf %139, %141 : vector<8x32xf32>
    %143 = arith.truncf %134 : vector<8x32xf32> to vector<8x32xbf16>
    %144 = arith.truncf %138 : vector<8x32xf32> to vector<8x32xbf16>
    "tpu.trace_start"() <{level = 10 : i32, message = "sf,tf->st"}> : () -> ()
    %cst_81 = arith.constant dense<0.000000e+00> : vector<8x8xf32>
    %145 = tpu.matmul %143, %144, %cst_81 {dimension_numbers = #tpu.dot_dimension_numbers<[1], [1], [0], [0], [0, 0, 1, 0], [], []>} : vector<8x32xbf16>, vector<8x32xbf16>, vector<8x8xf32> -> vector<8x8xf32>
    "tpu.trace_stop"() : () -> ()
    %cst_82 = arith.constant 0.176776692 : f32
    %146 = vector.broadcast %cst_82 : f32 to vector<8x8xf32>
    %147 = arith.mulf %145, %146 : vector<8x8xf32>
    %cst_83 = arith.constant dense<0xFF800000> : vector<8xf32>
    %148 = vector.multi_reduction <maximumf>, %147, %cst_83 [1] : vector<8x8xf32> to vector<8xf32>
    %149 = vector.shape_cast %148 : vector<8xf32> to vector<8x1xf32>
    %150 = vector.broadcast %149 : vector<8x1xf32> to vector<8x8xf32>
    %151 = arith.subf %147, %150 : vector<8x8xf32>
    %152 = math.exp %151 : vector<8x8xf32>
    %cst_84 = arith.constant dense<0.000000e+00> : vector<8xf32>
    %153 = vector.multi_reduction <add>, %152, %cst_84 [1] : vector<8x8xf32> to vector<8xf32>
    %154 = vector.shape_cast %153 : vector<8xf32> to vector<8x1xf32>
    %155 = tpu.reciprocal %154 {approx = true} : vector<8x1xf32> -> vector<8x1xf32>
    %156 = vector.broadcast %155 : vector<8x1xf32> to vector<8x8xf32>
    %157 = arith.mulf %152, %156 : vector<8x8xf32>
    %158 = arith.truncf %157 : vector<8x8xf32> to vector<8x8xbf16>
    %159 = arith.truncf %142 : vector<8x32xf32> to vector<8x32xbf16>
    "tpu.trace_start"() <{level = 10 : i32, message = "st,tf->sf"}> : () -> ()
    %cst_85 = arith.constant dense<0.000000e+00> : vector<8x32xf32>
    %160 = tpu.matmul %158, %159, %cst_85 {dimension_numbers = #tpu.dot_dimension_numbers<[1], [0], [0], [1], [0, 0, 1, 1], [], []>} : vector<8x8xbf16>, vector<8x32xbf16>, vector<8x32xf32> -> vector<8x32xf32>
    "tpu.trace_stop"() : () -> ()
    %161 = arith.truncf %160 : vector<8x32xf32> to vector<8x32xbf16>
    "tpu.trace_start"() <{level = 10 : i32, message = "sf,fd->sd"}> : () -> ()
    %cst_86 = arith.constant dense<0.000000e+00> : vector<8x128xf32>
    %162 = tpu.matmul %161, %130, %cst_86 {dimension_numbers = #tpu.dot_dimension_numbers<[1], [0], [0], [1], [0, 0, 1, 1], [], []>} : vector<8x32xbf16>, vector<32x128xbf16>, vector<8x128xf32> -> vector<8x128xf32>
    "tpu.trace_stop"() : () -> ()
    %163 = arith.addf %122, %162 : vector<8x128xf32>
    %c0_87 = arith.constant 0 : index
    %c3 = arith.constant 3 : index
    %c0_88 = arith.constant 0 : index
    %c0_89 = arith.constant 0 : index
    %164 = vector.load %arg4[%c0_87, %c3, %c0_88, %c0_89] : memref<1x32x32x128xbf16, #tpu.memory_space<vmem>>, vector<1x1x32x128xbf16>
    %165 = vector.shape_cast %164 : vector<1x1x32x128xbf16> to vector<32x128xbf16>
    %c0_90 = arith.constant 0 : index
    %c7 = arith.constant 7 : index
    %c0_91 = arith.constant 0 : index
    %c0_92 = arith.constant 0 : index
    %166 = vector.load %arg4[%c0_90, %c7, %c0_91, %c0_92] : memref<1x32x32x128xbf16, #tpu.memory_space<vmem>>, vector<1x1x32x128xbf16>
    %167 = vector.shape_cast %166 : vector<1x1x32x128xbf16> to vector<32x128xbf16>
    %c0_93 = arith.constant 0 : index
    %c11 = arith.constant 11 : index
    %c0_94 = arith.constant 0 : index
    %c0_95 = arith.constant 0 : index
    %168 = vector.load %arg4[%c0_93, %c11, %c0_94, %c0_95] : memref<1x32x32x128xbf16, #tpu.memory_space<vmem>>, vector<1x1x32x128xbf16>
    %169 = vector.shape_cast %168 : vector<1x1x32x128xbf16> to vector<32x128xbf16>
    %c0_96 = arith.constant 0 : index
    %c15 = arith.constant 15 : index
    %c0_97 = arith.constant 0 : index
    %c0_98 = arith.constant 0 : index
    %170 = vector.load %arg4[%c0_96, %c15, %c0_97, %c0_98] : memref<1x32x32x128xbf16, #tpu.memory_space<vmem>>, vector<1x1x32x128xbf16>
    %171 = vector.shape_cast %170 : vector<1x1x32x128xbf16> to vector<32x128xbf16>
    "tpu.trace_start"() <{level = 10 : i32, message = "sd,fd->sf"}> : () -> ()
    %cst_99 = arith.constant dense<0.000000e+00> : vector<8x32xf32>
    %172 = tpu.matmul %39, %165, %cst_99 {dimension_numbers = #tpu.dot_dimension_numbers<[1], [1], [0], [0], [0, 0, 1, 0], [], []>} : vector<8x128xbf16>, vector<32x128xbf16>, vector<8x32xf32> -> vector<8x32xf32>
    "tpu.trace_stop"() : () -> ()
    %173 = vector.extract_strided_slice %12 {offsets = [3, 0], sizes = [1, 32], strides = [1, 1]} : vector<24x32xf32> to vector<1x32xf32>
    %174 = vector.broadcast %173 : vector<1x32xf32> to vector<8x32xf32>
    %175 = arith.addf %172, %174 : vector<8x32xf32>
    "tpu.trace_start"() <{level = 10 : i32, message = "sd,fd->sf"}> : () -> ()
    %cst_100 = arith.constant dense<0.000000e+00> : vector<8x32xf32>
    %176 = tpu.matmul %39, %167, %cst_100 {dimension_numbers = #tpu.dot_dimension_numbers<[1], [1], [0], [0], [0, 0, 1, 0], [], []>} : vector<8x128xbf16>, vector<32x128xbf16>, vector<8x32xf32> -> vector<8x32xf32>
    "tpu.trace_stop"() : () -> ()
    %177 = vector.extract_strided_slice %12 {offsets = [7, 0], sizes = [1, 32], strides = [1, 1]} : vector<24x32xf32> to vector<1x32xf32>
    %178 = vector.broadcast %177 : vector<1x32xf32> to vector<8x32xf32>
    %179 = arith.addf %176, %178 : vector<8x32xf32>
    "tpu.trace_start"() <{level = 10 : i32, message = "sd,fd->sf"}> : () -> ()
    %cst_101 = arith.constant dense<0.000000e+00> : vector<8x32xf32>
    %180 = tpu.matmul %39, %169, %cst_101 {dimension_numbers = #tpu.dot_dimension_numbers<[1], [1], [0], [0], [0, 0, 1, 0], [], []>} : vector<8x128xbf16>, vector<32x128xbf16>, vector<8x32xf32> -> vector<8x32xf32>
    "tpu.trace_stop"() : () -> ()
    %181 = vector.extract_strided_slice %12 {offsets = [11, 0], sizes = [1, 32], strides = [1, 1]} : vector<24x32xf32> to vector<1x32xf32>
    %182 = vector.broadcast %181 : vector<1x32xf32> to vector<8x32xf32>
    %183 = arith.addf %180, %182 : vector<8x32xf32>
    %184 = arith.truncf %175 : vector<8x32xf32> to vector<8x32xbf16>
    %185 = arith.truncf %179 : vector<8x32xf32> to vector<8x32xbf16>
    "tpu.trace_start"() <{level = 10 : i32, message = "sf,tf->st"}> : () -> ()
    %cst_102 = arith.constant dense<0.000000e+00> : vector<8x8xf32>
    %186 = tpu.matmul %184, %185, %cst_102 {dimension_numbers = #tpu.dot_dimension_numbers<[1], [1], [0], [0], [0, 0, 1, 0], [], []>} : vector<8x32xbf16>, vector<8x32xbf16>, vector<8x8xf32> -> vector<8x8xf32>
    "tpu.trace_stop"() : () -> ()
    %cst_103 = arith.constant 0.176776692 : f32
    %187 = vector.broadcast %cst_103 : f32 to vector<8x8xf32>
    %188 = arith.mulf %186, %187 : vector<8x8xf32>
    %cst_104 = arith.constant dense<0xFF800000> : vector<8xf32>
    %189 = vector.multi_reduction <maximumf>, %188, %cst_104 [1] : vector<8x8xf32> to vector<8xf32>
    %190 = vector.shape_cast %189 : vector<8xf32> to vector<8x1xf32>
    %191 = vector.broadcast %190 : vector<8x1xf32> to vector<8x8xf32>
    %192 = arith.subf %188, %191 : vector<8x8xf32>
    %193 = math.exp %192 : vector<8x8xf32>
    %cst_105 = arith.constant dense<0.000000e+00> : vector<8xf32>
    %194 = vector.multi_reduction <add>, %193, %cst_105 [1] : vector<8x8xf32> to vector<8xf32>
    %195 = vector.shape_cast %194 : vector<8xf32> to vector<8x1xf32>
    %196 = tpu.reciprocal %195 {approx = true} : vector<8x1xf32> -> vector<8x1xf32>
    %197 = vector.broadcast %196 : vector<8x1xf32> to vector<8x8xf32>
    %198 = arith.mulf %193, %197 : vector<8x8xf32>
    %199 = arith.truncf %198 : vector<8x8xf32> to vector<8x8xbf16>
    %200 = arith.truncf %183 : vector<8x32xf32> to vector<8x32xbf16>
    "tpu.trace_start"() <{level = 10 : i32, message = "st,tf->sf"}> : () -> ()
    %cst_106 = arith.constant dense<0.000000e+00> : vector<8x32xf32>
    %201 = tpu.matmul %199, %200, %cst_106 {dimension_numbers = #tpu.dot_dimension_numbers<[1], [0], [0], [1], [0, 0, 1, 1], [], []>} : vector<8x8xbf16>, vector<8x32xbf16>, vector<8x32xf32> -> vector<8x32xf32>
    "tpu.trace_stop"() : () -> ()
    %202 = arith.truncf %201 : vector<8x32xf32> to vector<8x32xbf16>
    "tpu.trace_start"() <{level = 10 : i32, message = "sf,fd->sd"}> : () -> ()
    %cst_107 = arith.constant dense<0.000000e+00> : vector<8x128xf32>
    %203 = tpu.matmul %202, %171, %cst_107 {dimension_numbers = #tpu.dot_dimension_numbers<[1], [0], [0], [1], [0, 0, 1, 1], [], []>} : vector<8x32xbf16>, vector<32x128xbf16>, vector<8x128xf32> -> vector<8x128xf32>
    "tpu.trace_stop"() : () -> ()
    %204 = arith.addf %163, %203 : vector<8x128xf32>
    %205 = vector.extract_strided_slice %14 {offsets = [0, 0], sizes = [1, 128], strides = [1, 1]} : vector<2x128xf32> to vector<1x128xf32>
    %206 = vector.broadcast %205 : vector<1x128xf32> to vector<8x128xf32>
    %207 = arith.addf %204, %206 : vector<8x128xf32>
    %208 = arith.addf %38, %207 : vector<8x128xf32>
    %209 = vector.extract_strided_slice %8 {offsets = [1, 0], sizes = [1, 128], strides = [1, 1]} : vector<3x128xf32> to vector<1x128xf32>
    %210 = vector.extract_strided_slice %10 {offsets = [1, 0], sizes = [1, 128], strides = [1, 1]} : vector<3x128xf32> to vector<1x128xf32>
    %cst_108 = arith.constant dense<0.000000e+00> : vector<8xf32>
    %211 = vector.multi_reduction <add>, %208, %cst_108 [1] : vector<8x128xf32> to vector<8xf32>
    %212 = vector.shape_cast %211 : vector<8xf32> to vector<8x1xf32>
    %cst_109 = arith.constant 1.280000e+02 : f32
    %213 = vector.broadcast %cst_109 : f32 to vector<8x1xf32>
    %214 = arith.divf %212, %213 : vector<8x1xf32>
    %215 = vector.broadcast %214 : vector<8x1xf32> to vector<8x128xf32>
    %216 = arith.subf %208, %215 : vector<8x128xf32>
    %217 = arith.mulf %216, %216 : vector<8x128xf32>
    %cst_110 = arith.constant dense<0.000000e+00> : vector<8xf32>
    %218 = vector.multi_reduction <add>, %217, %cst_110 [1] : vector<8x128xf32> to vector<8xf32>
    %219 = vector.shape_cast %218 : vector<8xf32> to vector<8x1xf32>
    %cst_111 = arith.constant 1.280000e+02 : f32
    %220 = vector.broadcast %cst_111 : f32 to vector<8x1xf32>
    %221 = arith.divf %219, %220 : vector<8x1xf32>
    %222 = vector.broadcast %214 : vector<8x1xf32> to vector<8x128xf32>
    %223 = arith.subf %208, %222 : vector<8x128xf32>
    %cst_112 = arith.constant 9.99999974E-6 : f32
    %224 = vector.broadcast %cst_112 : f32 to vector<8x1xf32>
    %225 = arith.addf %221, %224 : vector<8x1xf32>
    %226 = math.rsqrt %225 : vector<8x1xf32>
    %227 = vector.broadcast %226 : vector<8x1xf32> to vector<8x128xf32>
    %228 = arith.mulf %223, %227 : vector<8x128xf32>
    %229 = vector.broadcast %209 : vector<1x128xf32> to vector<8x128xf32>
    %230 = arith.mulf %228, %229 : vector<8x128xf32>
    %231 = vector.broadcast %210 : vector<1x128xf32> to vector<8x128xf32>
    %232 = arith.addf %230, %231 : vector<8x128xf32>
    %233 = arith.truncf %232 : vector<8x128xf32> to vector<8x128xbf16>
    %cst_113 = arith.constant 0.000000e+00 : f32
    %234 = vector.broadcast %cst_113 : f32 to vector<8x128xf32>
    %c0_114 = arith.constant 0 : index
    %c16 = arith.constant 16 : index
    %c0_115 = arith.constant 0 : index
    %c0_116 = arith.constant 0 : index
    %235 = vector.load %arg4[%c0_114, %c16, %c0_115, %c0_116] : memref<1x32x32x128xbf16, #tpu.memory_space<vmem>>, vector<1x1x32x128xbf16>
    %236 = vector.shape_cast %235 : vector<1x1x32x128xbf16> to vector<32x128xbf16>
    %c0_117 = arith.constant 0 : index
    %c20 = arith.constant 20 : index
    %c0_118 = arith.constant 0 : index
    %c0_119 = arith.constant 0 : index
    %237 = vector.load %arg4[%c0_117, %c20, %c0_118, %c0_119] : memref<1x32x32x128xbf16, #tpu.memory_space<vmem>>, vector<1x1x32x128xbf16>
    %238 = vector.shape_cast %237 : vector<1x1x32x128xbf16> to vector<32x128xbf16>
    %c0_120 = arith.constant 0 : index
    %c24 = arith.constant 24 : index
    %c0_121 = arith.constant 0 : index
    %c0_122 = arith.constant 0 : index
    %239 = vector.load %arg4[%c0_120, %c24, %c0_121, %c0_122] : memref<1x32x32x128xbf16, #tpu.memory_space<vmem>>, vector<1x1x32x128xbf16>
    %240 = vector.shape_cast %239 : vector<1x1x32x128xbf16> to vector<32x128xbf16>
    %c0_123 = arith.constant 0 : index
    %c28 = arith.constant 28 : index
    %c0_124 = arith.constant 0 : index
    %c0_125 = arith.constant 0 : index
    %241 = vector.load %arg4[%c0_123, %c28, %c0_124, %c0_125] : memref<1x32x32x128xbf16, #tpu.memory_space<vmem>>, vector<1x1x32x128xbf16>
    %242 = vector.shape_cast %241 : vector<1x1x32x128xbf16> to vector<32x128xbf16>
    "tpu.trace_start"() <{level = 10 : i32, message = "sd,fd->sf"}> : () -> ()
    %cst_126 = arith.constant dense<0.000000e+00> : vector<8x32xf32>
    %243 = tpu.matmul %233, %236, %cst_126 {dimension_numbers = #tpu.dot_dimension_numbers<[1], [1], [0], [0], [0, 0, 1, 0], [], []>} : vector<8x128xbf16>, vector<32x128xbf16>, vector<8x32xf32> -> vector<8x32xf32>
    "tpu.trace_stop"() : () -> ()
    %244 = vector.extract_strided_slice %12 {offsets = [12, 0], sizes = [1, 32], strides = [1, 1]} : vector<24x32xf32> to vector<1x32xf32>
    %245 = vector.broadcast %244 : vector<1x32xf32> to vector<8x32xf32>
    %246 = arith.addf %243, %245 : vector<8x32xf32>
    "tpu.trace_start"() <{level = 10 : i32, message = "sd,fd->sf"}> : () -> ()
    %cst_127 = arith.constant dense<0.000000e+00> : vector<8x32xf32>
    %247 = tpu.matmul %6, %238, %cst_127 {dimension_numbers = #tpu.dot_dimension_numbers<[1], [1], [0], [0], [0, 0, 1, 0], [], []>} : vector<8x128xbf16>, vector<32x128xbf16>, vector<8x32xf32> -> vector<8x32xf32>
    "tpu.trace_stop"() : () -> ()
    %248 = vector.extract_strided_slice %12 {offsets = [16, 0], sizes = [1, 32], strides = [1, 1]} : vector<24x32xf32> to vector<1x32xf32>
    %249 = vector.broadcast %248 : vector<1x32xf32> to vector<8x32xf32>
    %250 = arith.addf %247, %249 : vector<8x32xf32>
    "tpu.trace_start"() <{level = 10 : i32, message = "sd,fd->sf"}> : () -> ()
    %cst_128 = arith.constant dense<0.000000e+00> : vector<8x32xf32>
    %251 = tpu.matmul %6, %240, %cst_128 {dimension_numbers = #tpu.dot_dimension_numbers<[1], [1], [0], [0], [0, 0, 1, 0], [], []>} : vector<8x128xbf16>, vector<32x128xbf16>, vector<8x32xf32> -> vector<8x32xf32>
    "tpu.trace_stop"() : () -> ()
    %252 = vector.extract_strided_slice %12 {offsets = [20, 0], sizes = [1, 32], strides = [1, 1]} : vector<24x32xf32> to vector<1x32xf32>
    %253 = vector.broadcast %252 : vector<1x32xf32> to vector<8x32xf32>
    %254 = arith.addf %251, %253 : vector<8x32xf32>
    %255 = arith.truncf %246 : vector<8x32xf32> to vector<8x32xbf16>
    %256 = arith.truncf %250 : vector<8x32xf32> to vector<8x32xbf16>
    "tpu.trace_start"() <{level = 10 : i32, message = "sf,tf->st"}> : () -> ()
    %cst_129 = arith.constant dense<0.000000e+00> : vector<8x8xf32>
    %257 = tpu.matmul %255, %256, %cst_129 {dimension_numbers = #tpu.dot_dimension_numbers<[1], [1], [0], [0], [0, 0, 1, 0], [], []>} : vector<8x32xbf16>, vector<8x32xbf16>, vector<8x8xf32> -> vector<8x8xf32>
    "tpu.trace_stop"() : () -> ()
    %cst_130 = arith.constant 0.176776692 : f32
    %258 = vector.broadcast %cst_130 : f32 to vector<8x8xf32>
    %259 = arith.mulf %257, %258 : vector<8x8xf32>
    %cst_131 = arith.constant dense<0xFF800000> : vector<8xf32>
    %260 = vector.multi_reduction <maximumf>, %259, %cst_131 [1] : vector<8x8xf32> to vector<8xf32>
    %261 = vector.shape_cast %260 : vector<8xf32> to vector<8x1xf32>
    %262 = vector.broadcast %261 : vector<8x1xf32> to vector<8x8xf32>
    %263 = arith.subf %259, %262 : vector<8x8xf32>
    %264 = math.exp %263 : vector<8x8xf32>
    %cst_132 = arith.constant dense<0.000000e+00> : vector<8xf32>
    %265 = vector.multi_reduction <add>, %264, %cst_132 [1] : vector<8x8xf32> to vector<8xf32>
    %266 = vector.shape_cast %265 : vector<8xf32> to vector<8x1xf32>
    %267 = tpu.reciprocal %266 {approx = true} : vector<8x1xf32> -> vector<8x1xf32>
    %268 = vector.broadcast %267 : vector<8x1xf32> to vector<8x8xf32>
    %269 = arith.mulf %264, %268 : vector<8x8xf32>
    %270 = arith.truncf %269 : vector<8x8xf32> to vector<8x8xbf16>
    %271 = arith.truncf %254 : vector<8x32xf32> to vector<8x32xbf16>
    "tpu.trace_start"() <{level = 10 : i32, message = "st,tf->sf"}> : () -> ()
    %cst_133 = arith.constant dense<0.000000e+00> : vector<8x32xf32>
    %272 = tpu.matmul %270, %271, %cst_133 {dimension_numbers = #tpu.dot_dimension_numbers<[1], [0], [0], [1], [0, 0, 1, 1], [], []>} : vector<8x8xbf16>, vector<8x32xbf16>, vector<8x32xf32> -> vector<8x32xf32>
    "tpu.trace_stop"() : () -> ()
    %273 = arith.truncf %272 : vector<8x32xf32> to vector<8x32xbf16>
    "tpu.trace_start"() <{level = 10 : i32, message = "sf,fd->sd"}> : () -> ()
    %cst_134 = arith.constant dense<0.000000e+00> : vector<8x128xf32>
    %274 = tpu.matmul %273, %242, %cst_134 {dimension_numbers = #tpu.dot_dimension_numbers<[1], [0], [0], [1], [0, 0, 1, 1], [], []>} : vector<8x32xbf16>, vector<32x128xbf16>, vector<8x128xf32> -> vector<8x128xf32>
    "tpu.trace_stop"() : () -> ()
    %275 = arith.addf %234, %274 : vector<8x128xf32>
    %c0_135 = arith.constant 0 : index
    %c17 = arith.constant 17 : index
    %c0_136 = arith.constant 0 : index
    %c0_137 = arith.constant 0 : index
    %276 = vector.load %arg4[%c0_135, %c17, %c0_136, %c0_137] : memref<1x32x32x128xbf16, #tpu.memory_space<vmem>>, vector<1x1x32x128xbf16>
    %277 = vector.shape_cast %276 : vector<1x1x32x128xbf16> to vector<32x128xbf16>
    %c0_138 = arith.constant 0 : index
    %c21 = arith.constant 21 : index
    %c0_139 = arith.constant 0 : index
    %c0_140 = arith.constant 0 : index
    %278 = vector.load %arg4[%c0_138, %c21, %c0_139, %c0_140] : memref<1x32x32x128xbf16, #tpu.memory_space<vmem>>, vector<1x1x32x128xbf16>
    %279 = vector.shape_cast %278 : vector<1x1x32x128xbf16> to vector<32x128xbf16>
    %c0_141 = arith.constant 0 : index
    %c25 = arith.constant 25 : index
    %c0_142 = arith.constant 0 : index
    %c0_143 = arith.constant 0 : index
    %280 = vector.load %arg4[%c0_141, %c25, %c0_142, %c0_143] : memref<1x32x32x128xbf16, #tpu.memory_space<vmem>>, vector<1x1x32x128xbf16>
    %281 = vector.shape_cast %280 : vector<1x1x32x128xbf16> to vector<32x128xbf16>
    %c0_144 = arith.constant 0 : index
    %c29 = arith.constant 29 : index
    %c0_145 = arith.constant 0 : index
    %c0_146 = arith.constant 0 : index
    %282 = vector.load %arg4[%c0_144, %c29, %c0_145, %c0_146] : memref<1x32x32x128xbf16, #tpu.memory_space<vmem>>, vector<1x1x32x128xbf16>
    %283 = vector.shape_cast %282 : vector<1x1x32x128xbf16> to vector<32x128xbf16>
    "tpu.trace_start"() <{level = 10 : i32, message = "sd,fd->sf"}> : () -> ()
    %cst_147 = arith.constant dense<0.000000e+00> : vector<8x32xf32>
    %284 = tpu.matmul %233, %277, %cst_147 {dimension_numbers = #tpu.dot_dimension_numbers<[1], [1], [0], [0], [0, 0, 1, 0], [], []>} : vector<8x128xbf16>, vector<32x128xbf16>, vector<8x32xf32> -> vector<8x32xf32>
    "tpu.trace_stop"() : () -> ()
    %285 = vector.extract_strided_slice %12 {offsets = [13, 0], sizes = [1, 32], strides = [1, 1]} : vector<24x32xf32> to vector<1x32xf32>
    %286 = vector.broadcast %285 : vector<1x32xf32> to vector<8x32xf32>
    %287 = arith.addf %284, %286 : vector<8x32xf32>
    "tpu.trace_start"() <{level = 10 : i32, message = "sd,fd->sf"}> : () -> ()
    %cst_148 = arith.constant dense<0.000000e+00> : vector<8x32xf32>
    %288 = tpu.matmul %6, %279, %cst_148 {dimension_numbers = #tpu.dot_dimension_numbers<[1], [1], [0], [0], [0, 0, 1, 0], [], []>} : vector<8x128xbf16>, vector<32x128xbf16>, vector<8x32xf32> -> vector<8x32xf32>
    "tpu.trace_stop"() : () -> ()
    %289 = vector.extract_strided_slice %12 {offsets = [17, 0], sizes = [1, 32], strides = [1, 1]} : vector<24x32xf32> to vector<1x32xf32>
    %290 = vector.broadcast %289 : vector<1x32xf32> to vector<8x32xf32>
    %291 = arith.addf %288, %290 : vector<8x32xf32>
    "tpu.trace_start"() <{level = 10 : i32, message = "sd,fd->sf"}> : () -> ()
    %cst_149 = arith.constant dense<0.000000e+00> : vector<8x32xf32>
    %292 = tpu.matmul %6, %281, %cst_149 {dimension_numbers = #tpu.dot_dimension_numbers<[1], [1], [0], [0], [0, 0, 1, 0], [], []>} : vector<8x128xbf16>, vector<32x128xbf16>, vector<8x32xf32> -> vector<8x32xf32>
    "tpu.trace_stop"() : () -> ()
    %293 = vector.extract_strided_slice %12 {offsets = [21, 0], sizes = [1, 32], strides = [1, 1]} : vector<24x32xf32> to vector<1x32xf32>
    %294 = vector.broadcast %293 : vector<1x32xf32> to vector<8x32xf32>
    %295 = arith.addf %292, %294 : vector<8x32xf32>
    %296 = arith.truncf %287 : vector<8x32xf32> to vector<8x32xbf16>
    %297 = arith.truncf %291 : vector<8x32xf32> to vector<8x32xbf16>
    "tpu.trace_start"() <{level = 10 : i32, message = "sf,tf->st"}> : () -> ()
    %cst_150 = arith.constant dense<0.000000e+00> : vector<8x8xf32>
    %298 = tpu.matmul %296, %297, %cst_150 {dimension_numbers = #tpu.dot_dimension_numbers<[1], [1], [0], [0], [0, 0, 1, 0], [], []>} : vector<8x32xbf16>, vector<8x32xbf16>, vector<8x8xf32> -> vector<8x8xf32>
    "tpu.trace_stop"() : () -> ()
    %cst_151 = arith.constant 0.176776692 : f32
    %299 = vector.broadcast %cst_151 : f32 to vector<8x8xf32>
    %300 = arith.mulf %298, %299 : vector<8x8xf32>
    %cst_152 = arith.constant dense<0xFF800000> : vector<8xf32>
    %301 = vector.multi_reduction <maximumf>, %300, %cst_152 [1] : vector<8x8xf32> to vector<8xf32>
    %302 = vector.shape_cast %301 : vector<8xf32> to vector<8x1xf32>
    %303 = vector.broadcast %302 : vector<8x1xf32> to vector<8x8xf32>
    %304 = arith.subf %300, %303 : vector<8x8xf32>
    %305 = math.exp %304 : vector<8x8xf32>
    %cst_153 = arith.constant dense<0.000000e+00> : vector<8xf32>
    %306 = vector.multi_reduction <add>, %305, %cst_153 [1] : vector<8x8xf32> to vector<8xf32>
    %307 = vector.shape_cast %306 : vector<8xf32> to vector<8x1xf32>
    %308 = tpu.reciprocal %307 {approx = true} : vector<8x1xf32> -> vector<8x1xf32>
    %309 = vector.broadcast %308 : vector<8x1xf32> to vector<8x8xf32>
    %310 = arith.mulf %305, %309 : vector<8x8xf32>
    %311 = arith.truncf %310 : vector<8x8xf32> to vector<8x8xbf16>
    %312 = arith.truncf %295 : vector<8x32xf32> to vector<8x32xbf16>
    "tpu.trace_start"() <{level = 10 : i32, message = "st,tf->sf"}> : () -> ()
    %cst_154 = arith.constant dense<0.000000e+00> : vector<8x32xf32>
    %313 = tpu.matmul %311, %312, %cst_154 {dimension_numbers = #tpu.dot_dimension_numbers<[1], [0], [0], [1], [0, 0, 1, 1], [], []>} : vector<8x8xbf16>, vector<8x32xbf16>, vector<8x32xf32> -> vector<8x32xf32>
    "tpu.trace_stop"() : () -> ()
    %314 = arith.truncf %313 : vector<8x32xf32> to vector<8x32xbf16>
    "tpu.trace_start"() <{level = 10 : i32, message = "sf,fd->sd"}> : () -> ()
    %cst_155 = arith.constant dense<0.000000e+00> : vector<8x128xf32>
    %315 = tpu.matmul %314, %283, %cst_155 {dimension_numbers = #tpu.dot_dimension_numbers<[1], [0], [0], [1], [0, 0, 1, 1], [], []>} : vector<8x32xbf16>, vector<32x128xbf16>, vector<8x128xf32> -> vector<8x128xf32>
    "tpu.trace_stop"() : () -> ()
    %316 = arith.addf %275, %315 : vector<8x128xf32>
    %c0_156 = arith.constant 0 : index
    %c18 = arith.constant 18 : index
    %c0_157 = arith.constant 0 : index
    %c0_158 = arith.constant 0 : index
    %317 = vector.load %arg4[%c0_156, %c18, %c0_157, %c0_158] : memref<1x32x32x128xbf16, #tpu.memory_space<vmem>>, vector<1x1x32x128xbf16>
    %318 = vector.shape_cast %317 : vector<1x1x32x128xbf16> to vector<32x128xbf16>
    %c0_159 = arith.constant 0 : index
    %c22 = arith.constant 22 : index
    %c0_160 = arith.constant 0 : index
    %c0_161 = arith.constant 0 : index
    %319 = vector.load %arg4[%c0_159, %c22, %c0_160, %c0_161] : memref<1x32x32x128xbf16, #tpu.memory_space<vmem>>, vector<1x1x32x128xbf16>
    %320 = vector.shape_cast %319 : vector<1x1x32x128xbf16> to vector<32x128xbf16>
    %c0_162 = arith.constant 0 : index
    %c26 = arith.constant 26 : index
    %c0_163 = arith.constant 0 : index
    %c0_164 = arith.constant 0 : index
    %321 = vector.load %arg4[%c0_162, %c26, %c0_163, %c0_164] : memref<1x32x32x128xbf16, #tpu.memory_space<vmem>>, vector<1x1x32x128xbf16>
    %322 = vector.shape_cast %321 : vector<1x1x32x128xbf16> to vector<32x128xbf16>
    %c0_165 = arith.constant 0 : index
    %c30 = arith.constant 30 : index
    %c0_166 = arith.constant 0 : index
    %c0_167 = arith.constant 0 : index
    %323 = vector.load %arg4[%c0_165, %c30, %c0_166, %c0_167] : memref<1x32x32x128xbf16, #tpu.memory_space<vmem>>, vector<1x1x32x128xbf16>
    %324 = vector.shape_cast %323 : vector<1x1x32x128xbf16> to vector<32x128xbf16>
    "tpu.trace_start"() <{level = 10 : i32, message = "sd,fd->sf"}> : () -> ()
    %cst_168 = arith.constant dense<0.000000e+00> : vector<8x32xf32>
    %325 = tpu.matmul %233, %318, %cst_168 {dimension_numbers = #tpu.dot_dimension_numbers<[1], [1], [0], [0], [0, 0, 1, 0], [], []>} : vector<8x128xbf16>, vector<32x128xbf16>, vector<8x32xf32> -> vector<8x32xf32>
    "tpu.trace_stop"() : () -> ()
    %326 = vector.extract_strided_slice %12 {offsets = [14, 0], sizes = [1, 32], strides = [1, 1]} : vector<24x32xf32> to vector<1x32xf32>
    %327 = vector.broadcast %326 : vector<1x32xf32> to vector<8x32xf32>
    %328 = arith.addf %325, %327 : vector<8x32xf32>
    "tpu.trace_start"() <{level = 10 : i32, message = "sd,fd->sf"}> : () -> ()
    %cst_169 = arith.constant dense<0.000000e+00> : vector<8x32xf32>
    %329 = tpu.matmul %6, %320, %cst_169 {dimension_numbers = #tpu.dot_dimension_numbers<[1], [1], [0], [0], [0, 0, 1, 0], [], []>} : vector<8x128xbf16>, vector<32x128xbf16>, vector<8x32xf32> -> vector<8x32xf32>
    "tpu.trace_stop"() : () -> ()
    %330 = vector.extract_strided_slice %12 {offsets = [18, 0], sizes = [1, 32], strides = [1, 1]} : vector<24x32xf32> to vector<1x32xf32>
    %331 = vector.broadcast %330 : vector<1x32xf32> to vector<8x32xf32>
    %332 = arith.addf %329, %331 : vector<8x32xf32>
    "tpu.trace_start"() <{level = 10 : i32, message = "sd,fd->sf"}> : () -> ()
    %cst_170 = arith.constant dense<0.000000e+00> : vector<8x32xf32>
    %333 = tpu.matmul %6, %322, %cst_170 {dimension_numbers = #tpu.dot_dimension_numbers<[1], [1], [0], [0], [0, 0, 1, 0], [], []>} : vector<8x128xbf16>, vector<32x128xbf16>, vector<8x32xf32> -> vector<8x32xf32>
    "tpu.trace_stop"() : () -> ()
    %334 = vector.extract_strided_slice %12 {offsets = [22, 0], sizes = [1, 32], strides = [1, 1]} : vector<24x32xf32> to vector<1x32xf32>
    %335 = vector.broadcast %334 : vector<1x32xf32> to vector<8x32xf32>
    %336 = arith.addf %333, %335 : vector<8x32xf32>
    %337 = arith.truncf %328 : vector<8x32xf32> to vector<8x32xbf16>
    %338 = arith.truncf %332 : vector<8x32xf32> to vector<8x32xbf16>
    "tpu.trace_start"() <{level = 10 : i32, message = "sf,tf->st"}> : () -> ()
    %cst_171 = arith.constant dense<0.000000e+00> : vector<8x8xf32>
    %339 = tpu.matmul %337, %338, %cst_171 {dimension_numbers = #tpu.dot_dimension_numbers<[1], [1], [0], [0], [0, 0, 1, 0], [], []>} : vector<8x32xbf16>, vector<8x32xbf16>, vector<8x8xf32> -> vector<8x8xf32>
    "tpu.trace_stop"() : () -> ()
    %cst_172 = arith.constant 0.176776692 : f32
    %340 = vector.broadcast %cst_172 : f32 to vector<8x8xf32>
    %341 = arith.mulf %339, %340 : vector<8x8xf32>
    %cst_173 = arith.constant dense<0xFF800000> : vector<8xf32>
    %342 = vector.multi_reduction <maximumf>, %341, %cst_173 [1] : vector<8x8xf32> to vector<8xf32>
    %343 = vector.shape_cast %342 : vector<8xf32> to vector<8x1xf32>
    %344 = vector.broadcast %343 : vector<8x1xf32> to vector<8x8xf32>
    %345 = arith.subf %341, %344 : vector<8x8xf32>
    %346 = math.exp %345 : vector<8x8xf32>
    %cst_174 = arith.constant dense<0.000000e+00> : vector<8xf32>
    %347 = vector.multi_reduction <add>, %346, %cst_174 [1] : vector<8x8xf32> to vector<8xf32>
    %348 = vector.shape_cast %347 : vector<8xf32> to vector<8x1xf32>
    %349 = tpu.reciprocal %348 {approx = true} : vector<8x1xf32> -> vector<8x1xf32>
    %350 = vector.broadcast %349 : vector<8x1xf32> to vector<8x8xf32>
    %351 = arith.mulf %346, %350 : vector<8x8xf32>
    %352 = arith.truncf %351 : vector<8x8xf32> to vector<8x8xbf16>
    %353 = arith.truncf %336 : vector<8x32xf32> to vector<8x32xbf16>
    "tpu.trace_start"() <{level = 10 : i32, message = "st,tf->sf"}> : () -> ()
    %cst_175 = arith.constant dense<0.000000e+00> : vector<8x32xf32>
    %354 = tpu.matmul %352, %353, %cst_175 {dimension_numbers = #tpu.dot_dimension_numbers<[1], [0], [0], [1], [0, 0, 1, 1], [], []>} : vector<8x8xbf16>, vector<8x32xbf16>, vector<8x32xf32> -> vector<8x32xf32>
    "tpu.trace_stop"() : () -> ()
    %355 = arith.truncf %354 : vector<8x32xf32> to vector<8x32xbf16>
    "tpu.trace_start"() <{level = 10 : i32, message = "sf,fd->sd"}> : () -> ()
    %cst_176 = arith.constant dense<0.000000e+00> : vector<8x128xf32>
    %356 = tpu.matmul %355, %324, %cst_176 {dimension_numbers = #tpu.dot_dimension_numbers<[1], [0], [0], [1], [0, 0, 1, 1], [], []>} : vector<8x32xbf16>, vector<32x128xbf16>, vector<8x128xf32> -> vector<8x128xf32>
    "tpu.trace_stop"() : () -> ()
    %357 = arith.addf %316, %356 : vector<8x128xf32>
    %c0_177 = arith.constant 0 : index
    %c19 = arith.constant 19 : index
    %c0_178 = arith.constant 0 : index
    %c0_179 = arith.constant 0 : index
    %358 = vector.load %arg4[%c0_177, %c19, %c0_178, %c0_179] : memref<1x32x32x128xbf16, #tpu.memory_space<vmem>>, vector<1x1x32x128xbf16>
    %359 = vector.shape_cast %358 : vector<1x1x32x128xbf16> to vector<32x128xbf16>
    %c0_180 = arith.constant 0 : index
    %c23 = arith.constant 23 : index
    %c0_181 = arith.constant 0 : index
    %c0_182 = arith.constant 0 : index
    %360 = vector.load %arg4[%c0_180, %c23, %c0_181, %c0_182] : memref<1x32x32x128xbf16, #tpu.memory_space<vmem>>, vector<1x1x32x128xbf16>
    %361 = vector.shape_cast %360 : vector<1x1x32x128xbf16> to vector<32x128xbf16>
    %c0_183 = arith.constant 0 : index
    %c27 = arith.constant 27 : index
    %c0_184 = arith.constant 0 : index
    %c0_185 = arith.constant 0 : index
    %362 = vector.load %arg4[%c0_183, %c27, %c0_184, %c0_185] : memref<1x32x32x128xbf16, #tpu.memory_space<vmem>>, vector<1x1x32x128xbf16>
    %363 = vector.shape_cast %362 : vector<1x1x32x128xbf16> to vector<32x128xbf16>
    %c0_186 = arith.constant 0 : index
    %c31 = arith.constant 31 : index
    %c0_187 = arith.constant 0 : index
    %c0_188 = arith.constant 0 : index
    %364 = vector.load %arg4[%c0_186, %c31, %c0_187, %c0_188] : memref<1x32x32x128xbf16, #tpu.memory_space<vmem>>, vector<1x1x32x128xbf16>
    %365 = vector.shape_cast %364 : vector<1x1x32x128xbf16> to vector<32x128xbf16>
    "tpu.trace_start"() <{level = 10 : i32, message = "sd,fd->sf"}> : () -> ()
    %cst_189 = arith.constant dense<0.000000e+00> : vector<8x32xf32>
    %366 = tpu.matmul %233, %359, %cst_189 {dimension_numbers = #tpu.dot_dimension_numbers<[1], [1], [0], [0], [0, 0, 1, 0], [], []>} : vector<8x128xbf16>, vector<32x128xbf16>, vector<8x32xf32> -> vector<8x32xf32>
    "tpu.trace_stop"() : () -> ()
    %367 = vector.extract_strided_slice %12 {offsets = [15, 0], sizes = [1, 32], strides = [1, 1]} : vector<24x32xf32> to vector<1x32xf32>
    %368 = vector.broadcast %367 : vector<1x32xf32> to vector<8x32xf32>
    %369 = arith.addf %366, %368 : vector<8x32xf32>
    "tpu.trace_start"() <{level = 10 : i32, message = "sd,fd->sf"}> : () -> ()
    %cst_190 = arith.constant dense<0.000000e+00> : vector<8x32xf32>
    %370 = tpu.matmul %6, %361, %cst_190 {dimension_numbers = #tpu.dot_dimension_numbers<[1], [1], [0], [0], [0, 0, 1, 0], [], []>} : vector<8x128xbf16>, vector<32x128xbf16>, vector<8x32xf32> -> vector<8x32xf32>
    "tpu.trace_stop"() : () -> ()
    %371 = vector.extract_strided_slice %12 {offsets = [19, 0], sizes = [1, 32], strides = [1, 1]} : vector<24x32xf32> to vector<1x32xf32>
    %372 = vector.broadcast %371 : vector<1x32xf32> to vector<8x32xf32>
    %373 = arith.addf %370, %372 : vector<8x32xf32>
    "tpu.trace_start"() <{level = 10 : i32, message = "sd,fd->sf"}> : () -> ()
    %cst_191 = arith.constant dense<0.000000e+00> : vector<8x32xf32>
    %374 = tpu.matmul %6, %363, %cst_191 {dimension_numbers = #tpu.dot_dimension_numbers<[1], [1], [0], [0], [0, 0, 1, 0], [], []>} : vector<8x128xbf16>, vector<32x128xbf16>, vector<8x32xf32> -> vector<8x32xf32>
    "tpu.trace_stop"() : () -> ()
    %375 = vector.extract_strided_slice %12 {offsets = [23, 0], sizes = [1, 32], strides = [1, 1]} : vector<24x32xf32> to vector<1x32xf32>
    %376 = vector.broadcast %375 : vector<1x32xf32> to vector<8x32xf32>
    %377 = arith.addf %374, %376 : vector<8x32xf32>
    %378 = arith.truncf %369 : vector<8x32xf32> to vector<8x32xbf16>
    %379 = arith.truncf %373 : vector<8x32xf32> to vector<8x32xbf16>
    "tpu.trace_start"() <{level = 10 : i32, message = "sf,tf->st"}> : () -> ()
    %cst_192 = arith.constant dense<0.000000e+00> : vector<8x8xf32>
    %380 = tpu.matmul %378, %379, %cst_192 {dimension_numbers = #tpu.dot_dimension_numbers<[1], [1], [0], [0], [0, 0, 1, 0], [], []>} : vector<8x32xbf16>, vector<8x32xbf16>, vector<8x8xf32> -> vector<8x8xf32>
    "tpu.trace_stop"() : () -> ()
    %cst_193 = arith.constant 0.176776692 : f32
    %381 = vector.broadcast %cst_193 : f32 to vector<8x8xf32>
    %382 = arith.mulf %380, %381 : vector<8x8xf32>
    %cst_194 = arith.constant dense<0xFF800000> : vector<8xf32>
    %383 = vector.multi_reduction <maximumf>, %382, %cst_194 [1] : vector<8x8xf32> to vector<8xf32>
    %384 = vector.shape_cast %383 : vector<8xf32> to vector<8x1xf32>
    %385 = vector.broadcast %384 : vector<8x1xf32> to vector<8x8xf32>
    %386 = arith.subf %382, %385 : vector<8x8xf32>
    %387 = math.exp %386 : vector<8x8xf32>
    %cst_195 = arith.constant dense<0.000000e+00> : vector<8xf32>
    %388 = vector.multi_reduction <add>, %387, %cst_195 [1] : vector<8x8xf32> to vector<8xf32>
    %389 = vector.shape_cast %388 : vector<8xf32> to vector<8x1xf32>
    %390 = tpu.reciprocal %389 {approx = true} : vector<8x1xf32> -> vector<8x1xf32>
    %391 = vector.broadcast %390 : vector<8x1xf32> to vector<8x8xf32>
    %392 = arith.mulf %387, %391 : vector<8x8xf32>
    %393 = arith.truncf %392 : vector<8x8xf32> to vector<8x8xbf16>
    %394 = arith.truncf %377 : vector<8x32xf32> to vector<8x32xbf16>
    "tpu.trace_start"() <{level = 10 : i32, message = "st,tf->sf"}> : () -> ()
    %cst_196 = arith.constant dense<0.000000e+00> : vector<8x32xf32>
    %395 = tpu.matmul %393, %394, %cst_196 {dimension_numbers = #tpu.dot_dimension_numbers<[1], [0], [0], [1], [0, 0, 1, 1], [], []>} : vector<8x8xbf16>, vector<8x32xbf16>, vector<8x32xf32> -> vector<8x32xf32>
    "tpu.trace_stop"() : () -> ()
    %396 = arith.truncf %395 : vector<8x32xf32> to vector<8x32xbf16>
    "tpu.trace_start"() <{level = 10 : i32, message = "sf,fd->sd"}> : () -> ()
    %cst_197 = arith.constant dense<0.000000e+00> : vector<8x128xf32>
    %397 = tpu.matmul %396, %365, %cst_197 {dimension_numbers = #tpu.dot_dimension_numbers<[1], [0], [0], [1], [0, 0, 1, 1], [], []>} : vector<8x32xbf16>, vector<32x128xbf16>, vector<8x128xf32> -> vector<8x128xf32>
    "tpu.trace_stop"() : () -> ()
    %398 = arith.addf %357, %397 : vector<8x128xf32>
    %399 = vector.extract_strided_slice %14 {offsets = [1, 0], sizes = [1, 128], strides = [1, 1]} : vector<2x128xf32> to vector<1x128xf32>
    %400 = vector.broadcast %399 : vector<1x128xf32> to vector<8x128xf32>
    %401 = arith.addf %398, %400 : vector<8x128xf32>
    %402 = arith.addf %232, %401 : vector<8x128xf32>
    %403 = vector.extract_strided_slice %8 {offsets = [2, 0], sizes = [1, 128], strides = [1, 1]} : vector<3x128xf32> to vector<1x128xf32>
    %404 = vector.extract_strided_slice %10 {offsets = [2, 0], sizes = [1, 128], strides = [1, 1]} : vector<3x128xf32> to vector<1x128xf32>
    %cst_198 = arith.constant dense<0.000000e+00> : vector<8xf32>
    %405 = vector.multi_reduction <add>, %402, %cst_198 [1] : vector<8x128xf32> to vector<8xf32>
    %406 = vector.shape_cast %405 : vector<8xf32> to vector<8x1xf32>
    %cst_199 = arith.constant 1.280000e+02 : f32
    %407 = vector.broadcast %cst_199 : f32 to vector<8x1xf32>
    %408 = arith.divf %406, %407 : vector<8x1xf32>
    %409 = vector.broadcast %408 : vector<8x1xf32> to vector<8x128xf32>
    %410 = arith.subf %402, %409 : vector<8x128xf32>
    %411 = arith.mulf %410, %410 : vector<8x128xf32>
    %cst_200 = arith.constant dense<0.000000e+00> : vector<8xf32>
    %412 = vector.multi_reduction <add>, %411, %cst_200 [1] : vector<8x128xf32> to vector<8xf32>
    %413 = vector.shape_cast %412 : vector<8xf32> to vector<8x1xf32>
    %cst_201 = arith.constant 1.280000e+02 : f32
    %414 = vector.broadcast %cst_201 : f32 to vector<8x1xf32>
    %415 = arith.divf %413, %414 : vector<8x1xf32>
    %416 = vector.broadcast %408 : vector<8x1xf32> to vector<8x128xf32>
    %417 = arith.subf %402, %416 : vector<8x128xf32>
    %cst_202 = arith.constant 9.99999974E-6 : f32
    %418 = vector.broadcast %cst_202 : f32 to vector<8x1xf32>
    %419 = arith.addf %415, %418 : vector<8x1xf32>
    %420 = math.rsqrt %419 : vector<8x1xf32>
    %421 = vector.broadcast %420 : vector<8x1xf32> to vector<8x128xf32>
    %422 = arith.mulf %417, %421 : vector<8x128xf32>
    %423 = vector.broadcast %403 : vector<1x128xf32> to vector<8x128xf32>
    %424 = arith.mulf %422, %423 : vector<8x128xf32>
    %425 = vector.broadcast %404 : vector<1x128xf32> to vector<8x128xf32>
    %426 = arith.addf %424, %425 : vector<8x128xf32>
    %427 = arith.truncf %426 : vector<8x128xf32> to vector<8x128xbf16>
    %c0_203 = arith.constant 0 : index
    %c0_204 = arith.constant 0 : index
    %c0_205 = arith.constant 0 : index
    %428 = vector.load %arg9[%c0_203, %c0_204, %c0_205] : memref<1x128x256xbf16, #tpu.memory_space<vmem>>, vector<1x128x256xbf16>
    %429 = vector.shape_cast %428 : vector<1x128x256xbf16> to vector<128x256xbf16>
    %cst_206 = arith.constant dense<0.000000e+00> : vector<8x256xf32>
    %430 = tpu.matmul %427, %429, %cst_206 {dimension_numbers = #tpu.dot_dimension_numbers<[1], [0], [0], [1], [0, 0, 1, 1], [], []>} : vector<8x128xbf16>, vector<128x256xbf16>, vector<8x256xf32> -> vector<8x256xf32>
    %c0_207 = arith.constant 0 : index
    %c0_208 = arith.constant 0 : index
    %c0_209 = arith.constant 0 : index
    %431 = vector.load %arg10[%c0_207, %c0_208, %c0_209] : memref<1x1x256xf32, #tpu.memory_space<vmem>>, vector<1x1x256xf32>
    %432 = vector.shape_cast %431 : vector<1x1x256xf32> to vector<1x256xf32>
    %433 = vector.broadcast %432 : vector<1x256xf32> to vector<8x256xf32>
    %434 = arith.addf %430, %433 : vector<8x256xf32>
    %cst_210 = arith.constant 0.000000e+00 : f32
    %435 = vector.broadcast %cst_210 : f32 to vector<8x256xf32>
    %436 = arith.maximumf %434, %435 : vector<8x256xf32>
    %437 = arith.truncf %436 : vector<8x256xf32> to vector<8x256xbf16>
    %c0_211 = arith.constant 0 : index
    %c0_212 = arith.constant 0 : index
    %c0_213 = arith.constant 0 : index
    %438 = vector.load %arg11[%c0_211, %c0_212, %c0_213] : memref<1x256x128xbf16, #tpu.memory_space<vmem>>, vector<1x256x128xbf16>
    %439 = vector.shape_cast %438 : vector<1x256x128xbf16> to vector<256x128xbf16>
    %cst_214 = arith.constant dense<0.000000e+00> : vector<8x128xf32>
    %440 = tpu.matmul %437, %439, %cst_214 {dimension_numbers = #tpu.dot_dimension_numbers<[1], [0], [0], [1], [0, 0, 1, 1], [], []>} : vector<8x256xbf16>, vector<256x128xbf16>, vector<8x128xf32> -> vector<8x128xf32>
    %c0_215 = arith.constant 0 : index
    %c0_216 = arith.constant 0 : index
    %c0_217 = arith.constant 0 : index
    %441 = vector.load %arg12[%c0_215, %c0_216, %c0_217] : memref<1x1x128xf32, #tpu.memory_space<vmem>>, vector<1x1x128xf32>
    %442 = vector.shape_cast %441 : vector<1x1x128xf32> to vector<1x128xf32>
    %443 = vector.broadcast %442 : vector<1x128xf32> to vector<8x128xf32>
    %444 = arith.addf %440, %443 : vector<8x128xf32>
    %445 = arith.addf %426, %444 : vector<8x128xf32>
    %c0_218 = arith.constant 0 : index
    %c0_219 = arith.constant 0 : index
    %c0_220 = arith.constant 0 : index
    %446 = vector.load %arg13[%c0_218, %c0_219, %c0_220] : memref<1x8x128xf32, #tpu.memory_space<vmem>>, vector<1x8x128xf32>
    %447 = vector.shape_cast %446 : vector<1x8x128xf32> to vector<8x128xf32>
    %448 = vector.shape_cast %445 : vector<8x128xf32> to vector<1x8x128xf32>
    tpu.vector_store %arg13[%c0_218, %c0_219, %c0_220], %448 {strides = array<i32>} : memref<1x8x128xf32, #tpu.memory_space<vmem>>, vector<1x8x128xf32>,
    return
  }
  func.func @transform_0(%arg0: i32, %arg1: i32) -> (i32, i32, i32) {
    %c0_i32 = arith.constant 0 : i32
    %c0_i32_0 = arith.constant 0 : i32
    %c0_i32_1 = arith.constant 0 : i32
    return %arg0, %c0_i32, %c0_i32_0 : i32, i32, i32
  }
  func.func @transform_1(%arg0: i32, %arg1: i32) -> (i32, i32, i32) {
    %c0_i32 = arith.constant 0 : i32
    %c0_i32_0 = arith.constant 0 : i32
    %c0_i32_1 = arith.constant 0 : i32
    return %arg0, %c0_i32, %c0_i32_0 : i32, i32, i32
  }
  func.func @transform_2(%arg0: i32, %arg1: i32) -> (i32, i32, i32, i32) {
    %c0_i32 = arith.constant 0 : i32
    %c0_i32_0 = arith.constant 0 : i32
    %c0_i32_1 = arith.constant 0 : i32
    %c0_i32_2 = arith.constant 0 : i32
    return %arg1, %c0_i32, %c0_i32_0, %c0_i32_1 : i32, i32, i32, i32
  }
  func.func @transform_3(%arg0: i32, %arg1: i32) -> (i32, i32, i32) {
    %c0_i32 = arith.constant 0 : i32
    %c0_i32_0 = arith.constant 0 : i32
    %c0_i32_1 = arith.constant 0 : i32
    return %arg1, %c0_i32, %c0_i32_0 : i32, i32, i32
  }
  func.func @transform_4(%arg0: i32, %arg1: i32) -> (i32, i32, i32) {
    %c0_i32 = arith.constant 0 : i32
    %c0_i32_0 = arith.constant 0 : i32
    %c0_i32_1 = arith.constant 0 : i32
    return %arg1, %c0_i32, %c0_i32_0 : i32, i32, i32
  }
  func.func @transform_5(%arg0: i32, %arg1: i32) -> (i32, i32, i32) {
    %c0_i32 = arith.constant 0 : i32
    %c0_i32_0 = arith.constant 0 : i32
    %c0_i32_1 = arith.constant 0 : i32
    return %arg1, %c0_i32, %c0_i32_0 : i32, i32, i32
  }
  func.func @transform_6(%arg0: i32, %arg1: i32) -> (i32, i32, i32) {
    %c0_i32 = arith.constant 0 : i32
    %c0_i32_0 = arith.constant 0 : i32
    %c0_i32_1 = arith.constant 0 : i32
    return %arg1, %c0_i32, %c0_i32_0 : i32, i32, i32
  }
  func.func @transform_7(%arg0: i32, %arg1: i32) -> (i32, i32, i32) {
    %c0_i32 = arith.constant 0 : i32
    %c0_i32_0 = arith.constant 0 : i32
    %c0_i32_1 = arith.constant 0 : i32
    return %arg1, %c0_i32, %c0_i32_0 : i32, i32, i32
  }
  func.func @transform_8(%arg0: i32, %arg1: i32) -> (i32, i32, i32) {
    %c0_i32 = arith.constant 0 : i32
    %c0_i32_0 = arith.constant 0 : i32
    %c0_i32_1 = arith.constant 0 : i32
    return %arg1, %c0_i32, %c0_i32_0 : i32, i32, i32
  }
  func.func @transform_9(%arg0: i32, %arg1: i32) -> (i32, i32, i32) {
    %c0_i32 = arith.constant 0 : i32
    %c0_i32_0 = arith.constant 0 : i32
    %c0_i32_1 = arith.constant 0 : i32
    return %arg1, %c0_i32, %c0_i32_0 : i32, i32, i32
  }
  func.func @transform_10(%arg0: i32, %arg1: i32) -> (i32, i32, i32) {
    %c0_i32 = arith.constant 0 : i32
    %c0_i32_0 = arith.constant 0 : i32
    %c0_i32_1 = arith.constant 0 : i32
    return %arg1, %c0_i32, %c0_i32_0 : i32, i32, i32
  }
  func.func @transform_11(%arg0: i32, %arg1: i32) -> (i32, i32, i32) {
    %c0_i32 = arith.constant 0 : i32
    %c0_i32_0 = arith.constant 0 : i32
    %c0_i32_1 = arith.constant 0 : i32
    return %arg0, %c0_i32, %c0_i32_0 : i32, i32, i32
  }
}

</mosaic_0001>

<bundles_post_ra>
// kernel: transformer_decoder_forward.1
= control target key start
LH: loop header
LB: loop body
LE: loop exit
PB: predicated region body
PF: predicated region fallthrough
CT: control target
= control target key end

     0   :  { %s6092_s0 = inlined_call_operand.vmem [shape: bf16[2,8,128], index: 0, kind: input, shape index: {}]   ;;  %s6093_s1 = inlined_call_operand.vmem [shape: bf16[2,8,128], index: 1, kind: input, shape index: {}]   ;;  %s6094_s2 = inlined_call_operand.hbm [shape: bf16[2,32,32,128], index: 2, kind: input, shape index: {}]   ;;  %s6095_s3 = inlined_call_operand.vmem [shape: f32[2,24,32], index: 3, kind: input, shape index: {}]   ;;  %s6096_s4 = inlined_call_operand.vmem [shape: f32[2,2,128], index: 4, kind: input, shape index: {}]   ;;  %s6097_s5 = inlined_call_operand.vmem [shape: f32[2,3,128], index: 5, kind: input, shape index: {}]   ;;  %s6098_s6 = inlined_call_operand.vmem [shape: f32[2,3,128], index: 6, kind: input, shape index: {}]   ;;  %s6099_s7 = inlined_call_operand.vmem [shape: bf16[2,128,256], index: 7, kind: input, shape index: {}]   ;;  %s6100_s8 = inlined_call_operand.vmem [shape: f32[2,1,256], index: 8, kind: input, shape index: {}]   ;;  %s6101_s9 = inlined_call_operand.vmem [shape: bf16[2,256,128], index: 9, kind: input, shape index: {}]   ;;  %s6102_s10 = inlined_call_operand.vmem [shape: f32[2,1,128], index: 10, kind: input, shape index: {}]   ;;  %s6103_s11 = inlined_call_operand.hbm [shape: f32[2,8,128], index: 11, kind: output, shape index: {}]  }
   0x1   :  { %6120 = sst [smem:[#allocation21_spill]] %s6092_s0 }
   0x2   :  { %6121 = sst [smem:[#allocation22_spill]] %s6093_s1 }
   0x3   :  { %6122 = sst [smem:[#allocation23_spill]] %s6094_s2 }
   0x4   :  { %6123 = sst [smem:[#allocation24_spill]] %s6095_s3 }
   0x5   :  { %6124 = sst [smem:[#allocation25_spill]] %s6096_s4 }
   0x6   :  { %6125 = sst [smem:[#allocation26_spill]] %s6097_s5 }
   0x7   :  { %6126 = sst [smem:[#allocation27_spill]] %s6098_s6 }
   0x8   :  { %6127 = sst [smem:[#allocation28_spill]] %s6101_s9 }
   0x9   :  { %6128 = sst [smem:[#allocation29_spill]] %s6102_s10 }
   0xa   :  { %6129 = sst [smem:[#allocation30_spill]] %s6103_s11 }
   0xb   :  { %16 = vsyncpa [#allocation3], 0 }
   0xc   :  { %18 = vsyncpa [#allocation3 + $0x1], 0 }
   0xd   :  { %19 = vsyncpa [#allocation4], 0 }
   0xe   :  { %21 = vsyncpa [#allocation4 + $0x1], 0  ;;  %s5302_s17 = smov 0   ;;  %s5304_s18 = smov 0  }
   0xf   :  { %s5306_s19 = smov 0   ;;  %s5308_s20 = smov 0  }
  0x10   :  { %s5310_s21 = smov 0   ;;  %s5312_s22 = smov 0  }
  0x11   :  { %s5314_s23 = smov 0   ;;  %s5316_s24 = smov 0  }
  0x12   :  { %s5318_s25 = smov 0   ;;  %s5320_s26 = smov 0  }
  0x13   :  { %s5322_s27 = smov 0  }
  0x14 LB: > { %6130 = sst [smem:[#allocation8_spill]] %s5193_s17  ;;  %s4052_s28 = sadd.s32 4294967295, %s5233_s27   ;;  %s5233_s27 = sphi %s5322_s27, %s27_s27   ;;  %s5229_s26 = sphi %s5320_s26, %s6175_s26   ;;  %s5225_s25 = sphi %s5318_s25, %s6174_s25   ;;  %s5221_s24 = sphi %s5316_s24, %s6173_s24   ;;  %s5217_s23 = sphi %s5314_s23, %s6172_s23   ;;  %s5213_s22 = sphi %s5312_s22, %s6171_s22   ;;  %s5209_s21 = sphi %s5310_s21, %s6170_s21   ;;  %s5205_s20 = sphi %s5308_s20, %s6169_s20   ;;  %s5201_s19 = sphi %s5306_s19, %s6168_s19   ;;  %s5197_s18 = sphi %s5304_s18, %s6177_s18   ;;  %s5193_s17 = sphi %s5302_s17, %s6176_s17  }
  0x15   : > { %6131 = sst [smem:[#allocation9_spill]] %s5201_s19  ;;  %s4053_s29 = sadd.s32 4294967294, %s5233_s27  }
  0x16   : > { %6132 = sst [smem:[#allocation10_spill]] %s5209_s21  ;;  %s36_s30 = sadd.s32 1, %s5225_s25 }
  0x17   : > { %6133 = sst [smem:[#allocation11_spill]] %s5213_s22  ;;  %s39_s12 = sadd.s32 1, %s5229_s26 }
  0x18   : > { %6134 = sst [smem:[#allocation12_spill]] %s5225_s25  ;;  %p37_p0 = scmp.ge.s32.totalorder %s36_s30, 2 }
  0x19   : > { %6135 = sst [smem:[#allocation13_spill]] %s5229_s26  ;;  %s98_s13 = sadd.s32 1, %s5213_s22 }
  0x1a   : > { %6136 = sst [smem:[#allocation14_spill]] %s5233_s27  ;;  %p105_p1 = scmp.ne.s32.totalorder %s5213_s22, %s5209_s21 }
  0x1b   : > { %p106_p2 = scmp.eq.s32.totalorder %s5233_s27, 0  ;;  %s6179_s30 = smov (%p37_p0, %s36_s30), 0 }
  0x1c   : > { %6137 = sst [smem:[#allocation15_spill]] %s6179_s30  ;;  %s6181_s12 = smov (!%p37_p0, %s39_s12), %s5229_s26 }
  0x1d   : > { %s95_s14 = ssub.s32 %s5225_s25, %s6179_s30  ;;  %p5368_p3 = por %p106_p2, %p105_p1 }
  0x1e   : > { %p41_p4 = scmp.ge.s32.totalorder %s6181_s12, 2  ;;  %p96_p5 = scmp.eq.s32.totalorder %s95_s14, 0 }
  0x1f   : > { %p111_p6 = scmp.ne.s32.totalorder %s5209_s21, %s5205_s20  ;;  %p112_p7 = scmp.eq.s32.totalorder %s4052_s28, 0 }
  0x20   : > { %s6183_s12 = smov (%p41_p4, %s6181_s12), 0  ;;  %s332_s10 = sadd.s32 1, %s5201_s19 }
  0x21   : > { %6139 = sst [smem:[#allocation16_spill]] %s6183_s12  ;;  %p5378_p8 = por %p112_p7, %p111_p6 }
  0x22   : > { %s5376_s16 = scalar_select %p96_p5, %s5213_s22, %s98_s13  }
  0x23   : > { %s329_s11 = ssub.s32 %s5229_s26, %s6183_s12  ;;  %p342_p10 = scmp.ne.s32.totalorder %s5201_s19, %s5197_s18 }
  0x24   : > { %6140 = sst [smem:[#allocation17_spill]] %s5376_s16  ;;  %p330_p9 = scmp.eq.s32.totalorder %s329_s11, 0 }
  0x25   : > { %p343_p11 = scmp.eq.s32.totalorder %s4052_s28, 3  ;;  %p348_p13 = scmp.ne.s32.totalorder %s5197_s18, %s5193_s17 }
  0x26   : > { %s5388_s14 = scalar_select %p330_p9, %s5201_s19, %s332_s10  }
  0x27   : > { %p5390_p12 = por %p343_p11, %p342_p10  ;;  %p349_p0 = scmp.eq.s32.totalorder %s4053_s29, 3 }
  0x28   : > { %6142 = sst [smem:[#allocation18_spill]] %s5388_s14  ;;  %p4841_p1 = scmp.lt.s32.totalorder %s5233_s27, 4 }
  0x29   : > { %s6143_s20 = scalar_select %p5390_p12, 1, 0 }
  0x2a   : > { %s383_s13 = sand.u32 1, %s5213_s22   ;;  %p5398_p2 = por %p349_p0, %p348_p13 }
  0x2b   : > { %6144 = sst [smem:[#allocation19_spill]] %s6143_s20  ;;  %s4056_s12 = sshll.u32 %s383_s13, 9 }
  0x2c   : > { %s6145_s16 = scalar_select %p5398_p2, 1, 0 }
  0x2d   : > { %s4323_s11 = sshll.u32 %s5225_s25, 13  ;;  %s6147_s2 = sld [smem:[#allocation23_spill]] }
  0x2e   : > { %6146 = sst [smem:[#allocation20_spill]] %s6145_s16  ;;  %s387_s10 = scalar_lea.vmem [#allocation2], %s4056_s12 }
  0x2f   : > { %s394_s14 = sshll.u32 %s387_s10, 4  ;;  %p5410_p4 = pnand %p4841_p1, %p5368_p3  ;;  %s5414_s14 = int_to_ptr.vmem [resolvable:$true] %s394_s14 }
  0x30   : > { %s5416_s25 = scalar_lea.sflag [#allocation3], %s383_s13 }
  0x31   : > { %p5083_p6 = pneg %p5410_p4 }
  0x33   : > { %s5406_s28 = scalar_lea.hbm %s6147_s2, %s4323_s11  ;;  %s5086_s15 = scalar_lea.hbm %s6147_s2, 16384 }
  0x34   : > { %s5081_s9 = scalar_lea.hbm %s5406_s28, 8192  ;;  %p5087_p3 = scmp.lt.u32.totalorder %s5406_s28, %s6147_s2 }
  0x35   : > { %p5082_p5 = scmp.ne.s32.totalorder %s5406_s28, %s5081_s9  ;;  %p5088_p10 = scmp.lt.u32.totalorder %s5086_s15, %s5081_s9 }
  0x36   : > { %p5090_p13 = scmp.lt.u32.totalorder %s5081_s9, %s5406_s28 }
  0x37   : > { %p5084_p7 = pnand %p5083_p6, %p5082_p5  ;;  %p5089_p11 = por %p5088_p10, %p5087_p3 }
  0x39   : > { %p5085_p9 = pneg %p5084_p7  ;;  %p5091_p0 = por %p5090_p13, %p5089_p11 }
  0x3b   : > { %p5092_p1 = pnand %p5091_p0, %p5085_p9 }
  0x3d   : > { %5095 = shalt.err (!%p5092_p1)
}
  0x3e   : > { %s5096_s13 = scalar_lea.vmem %s5414_s14, 8192  ;;  %s5235_s26 = smov [#allocation2]  }
  0x3f   : > { %p5097_p5 = scmp.ne.s32.totalorder %s5414_s14, %s5096_s13  ;;  %s5101_s12 = sshll.u32 %s5235_s26, 4  ;;  %s5102_s12 = int_to_ptr.vmem [resolvable:$false] %s5101_s12 }
  0x40   : > { %s5103_s11 = scalar_lea.vmem %s5102_s12, 16384  ;;  %p5104_p12 = scmp.lt.s32.totalorder %s5414_s14, %s5102_s12 }
  0x41   : > { %p5099_p7 = pnand %p5097_p5, %p5083_p6  ;;  %p5105_p3 = scmp.lt.s32.totalorder %s5103_s11, %s5096_s13 }
  0x43   : > { %p5100_p2 = pneg %p5099_p7  ;;  %p5106_p10 = por %p5105_p3, %p5104_p12 }
  0x45   : > { %p5107_p11 = pnand %p5106_p10, %p5100_p2 }
  0x47   : > { %5110 = shalt.err (!%p5107_p11)
}
  0x48   : > { %s5236_s9 = smov 64   ;;  %s5237_s15 = smov 4  }
  0x49   : > { %4836 = dma.hbm_to_vmem [thread:$0]  (!%p5410_p4), %s5406_s28, 8192, %s5414_s14, %s5416_s25, %s5236_s9, %s5236_s9, %s5237_s15  }
  0x4a   : > { %p4059_p6 = scmp.ge.s32.totalorder %s5233_s27, 1  ;;  %p460_p9 = scmp.lt.s32.totalorder %s5233_s27, 5 }
  0x4c   : > { %p461_p13 = pnand %p4059_p6, %p460_p9 }
  0x4d   : > { %s466_s10 = sand.u32 (!%p461_p13), 1, %s5209_s21  }
  0x4e   : > { %464 = sbr.rel (%p461_p13) target bundleno = 9327 (0x246f), region = 64  ;;  %s4060_s13 = sshll.u32 (!%p461_p13), %s466_s10, 9 }
  0x4f   : > { %s467_s26 = scalar_lea.sflag (!%p461_p13), [#allocation3], %s466_s10  ;;  %s5447_s12 = scalar_lea.vmem (!%p461_p13), [#allocation2], %s4060_s13 }
  0x55   : > { %5184 = dma.done.wait (%p5378_p8), %s467_s26, 8192  }
  0x56   : > { %5186 = vsyncadd (%p5378_p8), %s467_s26, 4294959104  ;;  %s6110_s25 = sand.u32 1, %s5197_s18   ;;  %p551_p12 = scmp.lt.s32.totalorder %s5221_s24, 1 }
  0x57   : > { %s4061_s14 = sshll.u32 %s6110_s25, 3  ;;  %p559_p2 = scmp.lt.s32.totalorder %s5217_s23, 1 }
  0x58   : > { %s552_s28 = scalar_select %p551_p12, %s5221_s24, 1 }
  0x59   : > { %s5460_s29 = scalar_select %p559_p2, %s5217_s23, 1 }
  0x5a   : > { %s4062_s30 = sshll.u32 %s552_s28, 2  ;;  %s6149_s0 = sld [smem:[#allocation21_spill]] }
  0x5b   : > { %s6150_s1 = sld [smem:[#allocation22_spill]]  ;;  %s4828_s25 = smul.u32 24, %s5460_s29 }
  0x5c   : > { %s4065_s2 = sshll.u32 %s5460_s29, 1  ;;  %s6151_s4 = sld [smem:[#allocation25_spill]] }
  0x5d   : > { %s4066_s16 = sshll.u32 %s5460_s29, 2  ;;  %s6152_s3 = sld [smem:[#allocation24_spill]] }
  0x5e   : > { %s6153_s5 = sld [smem:[#allocation26_spill]]  ;;  %s6154_s6 = sld [smem:[#allocation27_spill]] }
  0x5f   : > { %s5502_s27 = scalar_lea.vmem %s6100_s8, %s4065_s2  ;;  %s6155_s9 = sld [smem:[#allocation28_spill]] }
  0x60   : > { %s554_s15 = scalar_lea.vmem %s6149_s0, %s4062_s30  ;;  %p4073_p8 = scmp.ne.s32.totalorder %s5217_s23, 0 }
  0x61   : > { %s5468_s26 = scalar_lea.vmem %s6150_s1, %s4062_s30  ;;  %s4324_s1 = sshll.u32 %s5460_s29, 7  ;;  %v598_v0 = vld [vmem:[%s554_s15] sm:$0xf] (!%p4073_p8) }
  0x62   : > { %s5475_s19 = scalar_lea.vmem %s6151_s4, %s4065_s2  ;;  %s5497_s4 = scalar_lea.vmem %s6099_s7, %s4324_s1  ;;  %v599_v1 = vunpack.c.l.bf16 (!%p4073_p8), %v598_v0 }
  0x63   : > { %s5481_s28 = scalar_lea.vmem %s6152_s3, %s4828_s25 }
  0x64   : > { %s5486_s0 = scalar_lea.vmem %s6153_s5, %s4066_s16  ;;  %s5491_s13 = scalar_lea.vmem %s6154_s6, %s4066_s16 }
  0x65   : > { %s5507_s3 = scalar_lea.vmem %s6155_s9, %s4324_s1  ;;  %s6156_s16 = sld [smem:[#allocation29_spill]] }
  0x66   : > { %s5513_s6 = scalar_lea.vmem [#allocation5], %s4061_s14  ;;  %597 = sbr.rel (%p4073_p8) target bundleno = 109 (0x6d), region = 72 }
  0x67   : > { %600 = vst [vmem:[%s5513_s6] sm:$0xff] (!%p4073_p8), %v599_v1 }
  0x6b   : > { %s592_s10 = scalar_lea.vmem %s6156_s16, %s5460_s29 }
  0x6d PF: > { %v4936_v7 = vld [vmem:[%s5447_s12] sm:$0xff]   ;;  %v5238_v8 = vmov 0.0   ;;  %v4938_v10 = vld [vmem:[%s5447_s12 + $0x8] sm:$0xff]   ;;  %vm5239_vm0 = vmmov 0   ;;  %v621_v14 = vlaneseq  ;;  %v4942_v29 = vld [vmem:[%s5447_s12 + $0x10] sm:$0xff]   ;;  %vm821_vm1 = vcmask 261120  }
  0x6e   : > { %v601_v2 = vld [vmem:[%s5513_s6] sm:$0xff]  ;;  %4476 = vmatprep.subr.bf16.mxu0 %v5238_v8  ;;  %4484 = vmatprep.subr.bf16.mxu1 %v5238_v8  ;;  %v4943_v30 = vld [vmem:[%s5447_s12 + $0x18] sm:$0xff]   ;;  %v4944_v31 = vld [vmem:[%s5447_s12 + $0x90] sm:$0xff]   ;;  %vm886_vm2 = vcmask 1043456   ;;  %vm869_vm3 = vcmask 64512   ;;  %s3854_s5 = sshll.u32 %s5513_s6, 4  ;;  %s6029_s5 = int_to_ptr.vmem [resolvable:$true] %s3854_s5 }
  0x6f   : > { %609 = vadd.xlane.f32.xlu0 %v601_v2  ;;  %v4937_v9 = vld [vmem:[%s5447_s12 + $0x40] sm:$0xff]   ;;  %4477 = vmatpush3.bf16.xpose.msra.mxu0 %v4936_v7  ;;  %v4939_v11 = vld [vmem:[%s5447_s12 + $0x48] sm:$0xff]   ;;  %v5532_v16 = vshrl.u32 %v621_v14, 7  ;;  %v4945_v32 = vld [vmem:[%s5447_s12 + $0x98] sm:$0xff]   ;;  %s6159_s20 = sld [smem:[#allocation30_spill]]  ;;  %s6161_s29 = sand.u32 1, %s5197_s18  }
  0x70   : > { %4485 = vmatpush3.bf16.xpose.msra.mxu1 %v4937_v9  ;;  %4478 = vmatprep.subr.bf16.mxu0 %v5238_v8  ;;  %v5538_v18 = vld [vmem:[%s5486_s0] sm:$0x7]  ;;  %v4941_v28 = vld [vmem:[%s5447_s12 + $0x88] sm:$0xff]   ;;  %s3841_s15 = scalar_lea.sflag [#allocation4], %s6161_s29 }
  0x71   : > { %4486 = vmatprep.subr.bf16.mxu1 %v5238_v8  ;;  %4480 = vmatprep.mubr.msk.bf16.mxu0 %vm5239_vm0, %v5238_v8  ;;  %v5535_v17 = vsub.s32 0, %v5532_v16  ;;  %v5541_v19 = vld [vmem:[%s5491_s13] sm:$0x7]  ;;  %v5581_v33 = vsub.s32 4, %v5532_v16  ;;  %v5593_v49 = vld [vmem:[%s5481_s28 + $0x8] sm:$0xff] }
  0x72   : > { %4488 = vmatprep.mubr.msk.bf16.mxu1 %vm5239_vm0, %v5238_v8  ;;  %v4940_v26 = vld [vmem:[%s5447_s12 + $0x80] sm:$0xff]  }
  0x73   : > { %v624_v20 = vrot.slane %v5538_v18, %v5535_v17  ;;  %v629_v22 = vrot.slane %v5541_v19, %v5535_v17  ;;  %v5584_v34 = vld [vmem:[%s5481_s28] sm:$0xff]  ;;  %v766_v51 = vrot.slane %v5593_v49, %v5535_v17 }
  0x74   : > { %v710_v35 = vrot.slane %v5584_v34, %v5581_v33  ;;  %v654_v43 = vrot.slane %v5584_v34, %v5535_v17 }
  0x77   : > { %4479 = vmatpush3.bf16.xpose.msra.mxu0 %v4938_v10 }
  0x78   : > { %4487 = vmatpush3.bf16.xpose.msra.mxu1 %v4939_v11  ;;  %4492 = vmatprep.subr.bf16.mxu0 %v5238_v8 }
  0x79   : > { %4500 = vmatprep.subr.bf16.mxu1 %v5238_v8 }
  0xfc   : > { %v610_v3 = vpop.xlane.xlu0 %609 }
  0xfd   : > { %v612_v4 = vmul.f32 0.0078125, %v610_v3 }
  0xff   : > { %v613_v5 = vsub.f32 %v601_v2, %v612_v4 }
 0x101   : > { %v614_v6 = vmul.f32 %v613_v5, %v613_v5 }
 0x103   : > { %615 = vadd.xlane.f32.xlu0 %v614_v6 }
 0x190   : > { %v616_v12 = vpop.xlane.xlu0 %615 }
 0x191   : > { %v617_v13 = vmul.f32 0.0078125, %v616_v12 }
 0x193   : > { %v618_v15 = vadd.f32 1e-05, %v617_v13 }
 0x195   : > { %5040 = vrsqrt.f32 %v618_v15 }
 0x19f   : > { %v5041_v21 = vpop.eup %5040 }
 0x1a0   : > { %v620_v23 = vmul.f32 %v5041_v21, %v613_v5 }
 0x1a2   : > { %v625_v24 = vmul.f32 %v624_v20, %v620_v23 }
 0x1a4   : > { %v5547_v25 = vadd.f32 %v629_v22, %v625_v24  ;;  %v4946_v22 = vld [vmem:[%s5447_s12 + $0x50] sm:$0xff]   ;;  %v4947_v24 = vld [vmem:[%s5447_s12 + $0x58] sm:$0xff]  }
 0x1a6   : > { %v5552_v27 = vpack.c.bf16 %v5547_v25, %v5547_v25 }
 0x1a8   : > { %4481 = vmatmul.mubr.bf16.vlgmr.msra.gmra.mrb[0].mxu0 %v5552_v27  ;;  %4489 = vmatmul.mubr.bf16.vlgmr.msra.gmra.mrb[0].mxu1 %v5552_v27 }
 0x1a9   : > { %4493 = vmatpush3.bf16.xpose.msra.mxu0 %v4940_v26  ;;  %4496 = vmatprep.mubr.msk.bf16.mxu0 %vm5239_vm0, %v5238_v8 }
 0x1aa   : > { %4494 = vmatprep.subr.bf16.mxu0 %v5238_v8  ;;  %4502 = vmatprep.mubr.msk.bf16.mxu1 %vm5239_vm0, %v5238_v8 }
 0x1b1   : > { %4495 = vmatpush3.bf16.xpose.msra.mxu0 %v4941_v28 }
 0x1b2   : > { %4512 = vmatprep.subr.bf16.mxu0 %v5238_v8 }
 0x1b8   : > { %4497 = vmatmul.mubr.bf16.vlgmr.msra.gmra.mrb[4].mxu0 %v5552_v27 }
 0x1b9   : > { %4513 = vmatpush3.bf16.xpose.msra.mxu0 %v4942_v29  ;;  %4516 = vmatprep.mubr.msk.bf16.mxu0 %vm5239_vm0, %v5238_v8 }
 0x1ba   : > { %4514 = vmatprep.subr.bf16.mxu0 %v5238_v8 }
 0x1c1   : > { %4515 = vmatpush3.bf16.xpose.msra.mxu0 %v4943_v30 }
 0x1c2   : > { %4528 = vmatprep.subr.bf16.mxu0 %v5238_v8 }
 0x1c8   : > { %4517 = vmatmul.mubr.bf16.vlgmr.msra.gmra.mrb[8].mxu0 %v5552_v27 }
 0x1c9   : > { %4529 = vmatpush3.bf16.xpose.msra.mxu0 %v4944_v31  ;;  %4532 = vmatprep.mubr.msk.bf16.mxu0 %vm5239_vm0, %v5238_v8  ;;  %v5615_v31 = vsub.s32 5, %v5532_v16 }
 0x1ca   : > { %4530 = vmatprep.subr.bf16.mxu0 %v5238_v8 }
 0x1d1   : > { %4531 = vmatpush3.bf16.xpose.msra.mxu0 %v4945_v32  ;;  %v1010_v32 = vrot.slane %v5584_v34, %v5615_v31 }
 0x1d2   : > { %4548 = vmatprep.subr.bf16.mxu0 %v5238_v8 }
 0x1d8   : > { %4533 = vmatmul.mubr.bf16.vlgmr.msra.gmra.mrb[12].mxu0 %v5552_v27 }
 0x1d9   : > { %4552 = vmatprep.mubr.msk.bf16.mxu0 %vm5239_vm0, %v5238_v8 }
 0x27b   : > { %v701_v36 = vpop.f32.mrb[0].mxu0  ;;  %v757_v37 = vpop.f32.mrb[0].mxu1 }
 0x27c   : > { %v758_v38 = vadd.f32 %v757_v37, %v710_v35  ;;  %v4482_v39 = vpop.f32.mrb[1].mxu0  ;;  %v4490_v40 = vpop.f32.mrb[1].mxu1  ;;  %v702_v48 = vadd.f32 %v701_v36, %v654_v43  ;;  %v5620_v35 = vsub.s32 1, %v5532_v16 }
 0x27d   : > { %v704_v41 = vpop.f32.mrb[2].mxu0  ;;  %v760_v42 = vpop.f32.mrb[2].mxu1 }
 0x27e   : > { %v820_v44 = vpack.c.bf16 %v758_v38, %v758_v38  ;;  %v4483_v45 = vpop.f32.mrb[3].mxu0  ;;  %v4491_v46 = vpop.f32.mrb[3].mxu1  ;;  %v819_v50 = vpack.c.bf16 %v702_v48, %v702_v48  ;;  %v1066_v37 = vrot.slane %v5593_v49, %v5620_v35  ;;  %v954_v41 = vrot.slane %v5584_v34, %v5620_v35 }
 0x280   : > { %v826_v47 = vsel %vm821_vm1, %v820_v44, 0 }
 0x281   : > { %4501 = vmatpush3.bf16.xpose.msra.mxu1 %v826_v47 }
 0x282   : > { %4506 = vmatprep.subr.bf16.mxu1 %v5238_v8 }
 0x288   : > { %4503 = vmatmul.mubr.msk.bf16.vlgmr.msra.gmra.mrb[4].mxu1 %vm821_vm1, %v819_v50 }
 0x289   : > { %4508 = vmatprep.mubr.msk.bf16.mxu1 %vm5239_vm0, %v5238_v8 }
 0x28b   : > { %v813_v52 = vpop.f32.mrb[4].mxu0 }
 0x28c   : > { %v814_v53 = vadd.f32 %v813_v52, %v766_v51  ;;  %v4498_v54 = vpop.f32.mrb[5].mxu0 }
 0x28d   : > { %v816_v55 = vpop.f32.mrb[6].mxu0 }
 0x28e   : > { %v882_v56 = vpack.c.bf16 %v814_v53, %v814_v53  ;;  %v4499_v57 = vpop.f32.mrb[7].mxu0 }
 0x290   : > { %v888_v58 = vsel %vm886_vm2, %v882_v56, 0 }
 0x291   : > { %4507 = vmatpush3.bf16.msra.mxu1 %v888_v58 }
 0x292   : > { %4520 = vmatprep.subr.bf16.mxu1 %v5238_v8 }
 0x29b   : > { %v1001_v59 = vpop.f32.mrb[8].mxu0 }
 0x29c   : > { %v4518_v60 = vpop.f32.mrb[9].mxu0  ;;  %v1002_v46 = vadd.f32 %v1001_v59, %v954_v41 }
 0x29d   : > { %v1004_v61 = vpop.f32.mrb[10].mxu0 }
 0x29e   : > { %v4519_v62 = vpop.f32.mrb[11].mxu0  ;;  %v1119_v48 = vpack.c.bf16 %v1002_v46, %v1002_v46 }
 0x29f   : > { %v4952_v62 = vld [vmem:[%s5447_s12 + $0xd0] sm:$0xff]  }
 0x2a0   : > { %4549 = vmatpush3.bf16.msra.mxu0 %v4952_v62 }
 0x2a1   : > { %4550 = vmatprep.subr.bf16.mxu0 %v5238_v8 }
 0x2ab   : > { %v1113_v63 = vpop.f32.mrb[12].mxu0 }
 0x2ac   : > { %v4534_v0 = vpop.f32.mrb[13].mxu0  ;;  %v1114_v44 = vadd.f32 %v1113_v63, %v1066_v37  ;;  %v4953_v63 = vld [vmem:[%s5447_s12 + $0xd8] sm:$0xff]  }
 0x2ad   : > { %v1116_v1 = vpop.f32.mrb[14].mxu0  ;;  %4551 = vmatpush3.bf16.msra.mxu0 %v4953_v63 }
 0x2ae   : > { %v4535_v2 = vpop.f32.mrb[15].mxu0  ;;  %v1180_v47 = vpack.c.bf16 %v1114_v44, %v1114_v44  ;;  %4564 = vmatprep.subr.bf16.mxu0 %v5238_v8 }
 0x2b0   : > { %v1185_v50 = vsel %vm886_vm2, %v1180_v47, 0  ;;  %v5683_v47 = vsub.s32 2, %v5532_v16 }
 0x35b   : > { %v862_v3 = vpop.f32.mrb[4].mxu1 }
 0x35c   : > { %v868_v4 = vmul.f32 0.17677669, %v862_v3  ;;  %v4504_v5 = vpop.f32.mrb[5].mxu1  ;;  %v4948_v3 = vld [vmem:[%s5447_s12 + $0xc0] sm:$0xff]  }
 0x35d   : > { %v865_v6 = vpop.f32.mrb[6].mxu1  ;;  %v4949_v5 = vld [vmem:[%s5447_s12 + $0xc8] sm:$0xff]  }
 0x35e   : > { %v4505_v7 = vpop.f32.mrb[7].mxu1  ;;  %v870_v9 = vsel %vm869_vm3, %v868_v4, -inf }
 0x35f   : > { %871 = vmax.xlane.f32.xlu1 %v870_v9  ;;  %v4950_v7 = vld [vmem:[%s5447_s12 + $0x60] sm:$0xff]   ;;  %v4951_v9 = vld [vmem:[%s5447_s12 + $0x68] sm:$0xff]  }
 0x3ec   : > { %v872_v10 = vpop.xlane.xlu1 %871 }
 0x3ed   : > { %v873_v11 = vsub.f32 %v868_v4, %v872_v10 }
 0x3ef   : > { %v874_v12 = vmul.f32 1.442695, %v873_v11  ;;  %v4954_v11 = vld [vmem:[%s5447_s12 + $0x20] sm:$0xff]  }
 0x3f1   : > { %5042 = vpow2.f32 %v874_v12 }
 0x3fb   : > { %v5043_v13 = vpop.eup %5042 }
 0x3fc   : > { %v876_v14 = vsel %vm869_vm3, %v5043_v13, 0.0 }
 0x3fd   : > { %877 = vadd.xlane.f32.xlu1 %v876_v14 }
 0x48a   : > { %v878_v15 = vpop.xlane.xlu1 %877 }
 0x48b   : > { %5044 = vrcp.f32 %v878_v15 }
 0x495   : > { %v5045_v20 = vpop.eup %5044 }
 0x496   : > { %v880_v21 = vmul.f32 %v5045_v20, %v5043_v13 }
 0x498   : > { %v881_v23 = vpack.c.bf16 %v880_v21, %v880_v21  ;;  %v4955_v21 = vld [vmem:[%s5447_s12 + $0x28] sm:$0xff]  }
 0x49a   : > { %4509 = vmatmul.mubr.msk.bf16.vlgmr.msra.gmra.mrb[8].mxu1 %vm869_vm3, %v881_v23 }
 0x49b   : > { %4521 = vmatpush3.bf16.xpose.msra.mxu1 %v4946_v22  ;;  %4524 = vmatprep.mubr.msk.bf16.mxu1 %vm5239_vm0, %v5238_v8 }
 0x49c   : > { %4522 = vmatprep.subr.bf16.mxu1 %v5238_v8 }
 0x4a3   : > { %4523 = vmatpush3.bf16.xpose.msra.mxu1 %v4947_v24 }
 0x4a4   : > { %4536 = vmatprep.subr.bf16.mxu1 %v5238_v8 }
 0x4aa   : > { %4525 = vmatmul.mubr.bf16.vlgmr.msra.gmra.mrb[12].mxu1 %v5552_v27 }
 0x4ab   : > { %4538 = vmatprep.mubr.msk.bf16.mxu1 %vm5239_vm0, %v5238_v8 }
 0x56d   : > { %v924_v26 = vpop.f32.mrb[8].mxu1 }
 0x56e   : > { %v4510_v28 = vpop.f32.mrb[9].mxu1  ;;  %v930_v6 = vpack.c.bf16 %v924_v26, %v924_v26  ;;  %v4956_v26 = vld [vmem:[%s5447_s12 + $0xa0] sm:$0xff]  }
 0x56f   : > { %v927_v29 = vpop.f32.mrb[10].mxu1  ;;  %v5669_v28 = vsub.s32 6, %v5532_v16 }
 0x570   : > { %v4511_v30 = vpop.f32.mrb[11].mxu1  ;;  %v4957_v29 = vld [vmem:[%s5447_s12 + $0xa8] sm:$0xff]  }
 0x571   : > { %v1417_v30 = vrot.slane %v5584_v34, %v5669_v28 }
 0x57d   : > { %v1057_v36 = vpop.f32.mrb[12].mxu1 }
 0x57e   : > { %v1058_v38 = vadd.f32 %v1057_v36, %v1010_v32  ;;  %v4526_v39 = vpop.f32.mrb[13].mxu1 }
 0x57f   : > { %v1060_v40 = vpop.f32.mrb[14].mxu1 }
 0x580   : > { %v1120_v42 = vpack.c.bf16 %v1058_v38, %v1058_v38  ;;  %v4527_v43 = vpop.f32.mrb[15].mxu1 }
 0x582   : > { %v1125_v45 = vsel %vm821_vm1, %v1120_v42, 0 }
 0x583   : > { %4537 = vmatpush3.bf16.xpose.msra.mxu1 %v1125_v45 }
 0x584   : > { %4542 = vmatprep.subr.bf16.mxu1 %v5238_v8 }
 0x58a   : > { %4539 = vmatmul.mubr.msk.bf16.vlgmr.msra.gmra.mrb[16].mxu1 %vm821_vm1, %v1119_v48  ;;  %v1361_v48 = vrot.slane %v5584_v34, %v5683_v47 }
 0x58b   : > { %4543 = vmatpush3.bf16.msra.mxu1 %v1185_v50  ;;  %4544 = vmatprep.mubr.msk.bf16.mxu1 %vm5239_vm0, %v5238_v8 }
 0x58c   : > { %4556 = vmatprep.subr.bf16.mxu1 %v5238_v8 }
 0x65d   : > { %v1161_v51 = vpop.f32.mrb[16].mxu1 }
 0x65e   : > { %v1167_v52 = vmul.f32 0.17677669, %v1161_v51  ;;  %v4540_v53 = vpop.f32.mrb[17].mxu1 }
 0x65f   : > { %v1164_v54 = vpop.f32.mrb[18].mxu1 }
 0x660   : > { %v4541_v55 = vpop.f32.mrb[19].mxu1  ;;  %v1168_v56 = vsel %vm869_vm3, %v1167_v52, -inf }
 0x661   : > { %1169 = vmax.xlane.f32.xlu0 %v1168_v56  ;;  %v1473_v56 = vrot.slane %v5593_v49, %v5683_v47 }
 0x6ee   : > { %v1170_v57 = vpop.xlane.xlu0 %1169 }
 0x6ef   : > { %v1171_v58 = vsub.f32 %v1167_v52, %v1170_v57 }
 0x6f1   : > { %v1172_v59 = vmul.f32 1.442695, %v1171_v58 }
 0x6f3   : > { %5046 = vpow2.f32 %v1172_v59 }
 0x6fd   : > { %v5047_v60 = vpop.eup %5046 }
 0x6fe   : > { %v1174_v61 = vsel %vm869_vm3, %v5047_v60, 0.0 }
 0x6ff   : > { %1175 = vadd.xlane.f32.xlu1 %v1174_v61 }
 0x78c   : > { %v1176_v0 = vpop.xlane.xlu1 %1175 }
 0x78d   : > { %5048 = vrcp.f32 %v1176_v0 }
 0x797   : > { %v5049_v1 = vpop.eup %5048 }
 0x798   : > { %v1178_v2 = vmul.f32 %v5049_v1, %v5047_v60 }
 0x79a   : > { %v1179_v4 = vpack.c.bf16 %v1178_v2, %v1178_v2 }
 0x79c   : > { %4545 = vmatmul.mubr.msk.bf16.vlgmr.msra.gmra.mrb[20].mxu1 %vm869_vm3, %v1179_v4 }
 0x79d   : > { %4557 = vmatpush3.bf16.msra.mxu1 %v4948_v3  ;;  %4560 = vmatprep.mubr.msk.bf16.mxu1 %vm5239_vm0, %v5238_v8 }
 0x79e   : > { %4558 = vmatprep.subr.bf16.mxu1 %v5238_v8 }
 0x7a1   : > { %4559 = vmatpush3.bf16.msra.mxu1 %v4949_v5 }
 0x7a2   : > { %4572 = vmatprep.subr.bf16.mxu1 %v5238_v8 }
 0x7a4   : > { %4561 = vmatmul.mubr.msk.bf16.vlgmr.msra.gmra.mrb[24].mxu1 %vm821_vm1, %v930_v6 }
 0x7a5   : > { %4576 = vmatprep.mubr.msk.bf16.mxu1 %vm5239_vm0, %v5238_v8 }
 0x7aa   : > { %4573 = vmatpush3.bf16.xpose.msra.mxu1 %v4950_v7 }
 0x7ab   : > { %4574 = vmatprep.subr.bf16.mxu1 %v5238_v8 }
 0x7b2   : > { %4575 = vmatpush3.bf16.xpose.msra.mxu1 %v4951_v9 }
 0x7b3   : > { %4588 = vmatprep.subr.bf16.mxu1 %v5238_v8 }
 0x7b9   : > { %4577 = vmatmul.mubr.bf16.vlgmr.msra.gmra.mrb[28].mxu1 %v5552_v27 }
 0x7ba   : > { %4590 = vmatprep.mubr.msk.bf16.mxu1 %vm5239_vm0, %v5238_v8 }
 0x86f   : > { %v1221_v10 = vpop.f32.mrb[20].mxu1 }
 0x870   : > { %v1227_v12 = vpack.c.bf16 %v1221_v10, %v1221_v10  ;;  %v4546_v13 = vpop.f32.mrb[21].mxu1 }
 0x871   : > { %v1224_v14 = vpop.f32.mrb[22].mxu1  ;;  %v4963_v13 = vld [vmem:[%s5447_s12 + $0xe8] sm:$0xff]  }
 0x872   : > { %v4547_v15 = vpop.f32.mrb[23].mxu1  ;;  %4553 = vmatmul.mubr.msk.bf16.vlgmr.msra.gmra.mrb[16].mxu0 %vm821_vm1, %v1227_v12  ;;  %v4962_v12 = vld [vmem:[%s5447_s12 + $0xe0] sm:$0xff]  }
 0x873   : > { %4565 = vmatpush3.bf16.xpose.msra.mxu0 %v4954_v11  ;;  %4568 = vmatprep.mubr.msk.bf16.mxu0 %vm5239_vm0, %v5238_v8 }
 0x874   : > { %4566 = vmatprep.subr.bf16.mxu0 %v5238_v8 }
 0x877   : > { %v1332_v20 = vpop.f32.mrb[24].mxu1 }
 0x878   : > { %v4562_v22 = vpop.f32.mrb[25].mxu1 }
 0x879   : > { %v1335_v23 = vpop.f32.mrb[26].mxu1 }
 0x87a   : > { %v4563_v24 = vpop.f32.mrb[27].mxu1  ;;  %v4959_v23 = vld [vmem:[%s5447_s12 + $0x38] sm:$0xff]  }
 0x87b   : > { %4567 = vmatpush3.bf16.xpose.msra.mxu0 %v4955_v21  ;;  %v4958_v21 = vld [vmem:[%s5447_s12 + $0x30] sm:$0xff]  }
 0x87c   : > { %4580 = vmatprep.subr.bf16.mxu0 %v5238_v8  ;;  %v4960_v24 = vld [vmem:[%s5447_s12 + $0xb0] sm:$0xff]  }
 0x882   : > { %4569 = vmatmul.mubr.bf16.vlgmr.msra.gmra.mrb[20].mxu0 %v5552_v27 }
 0x883   : > { %4581 = vmatpush3.bf16.xpose.msra.mxu0 %v4956_v26  ;;  %4584 = vmatprep.mubr.msk.bf16.mxu0 %vm5239_vm0, %v5238_v8  ;;  %v4961_v26 = vld [vmem:[%s5447_s12 + $0xb8] sm:$0xff]  }
 0x884   : > { %4582 = vmatprep.subr.bf16.mxu0 %v5238_v8 }
 0x88b   : > { %4583 = vmatpush3.bf16.xpose.msra.mxu0 %v4957_v29 }
 0x88c   : > { %v1464_v32 = vpop.f32.mrb[28].mxu1  ;;  %4600 = vmatprep.subr.bf16.mxu0 %v5238_v8 }
 0x88d   : > { %v1465_v36 = vadd.f32 %v1464_v32, %v1417_v30  ;;  %v4578_v37 = vpop.f32.mrb[29].mxu1  ;;  %v4964_v30 = vld [vmem:[%s5447_s12 + $0x70] sm:$0xff]  }
 0x88e   : > { %v1467_v38 = vpop.f32.mrb[30].mxu1 }
 0x88f   : > { %v1527_v39 = vpack.c.bf16 %v1465_v36, %v1465_v36  ;;  %v4579_v40 = vpop.f32.mrb[31].mxu1 }
 0x891   : > { %v1532_v41 = vsel %vm821_vm1, %v1527_v39, 0  ;;  %v4965_v39 = vld [vmem:[%s5447_s12 + $0x78] sm:$0xff]  }
 0x892   : > { %4585 = vmatmul.mubr.bf16.vlgmr.msra.gmra.mrb[24].mxu0 %v5552_v27  ;;  %4589 = vmatpush3.bf16.xpose.msra.mxu1 %v1532_v41 }
 0x893   : > { %4594 = vmatprep.subr.bf16.mxu1 %v5238_v8  ;;  %4604 = vmatprep.mubr.msk.bf16.mxu0 %vm5239_vm0, %v5238_v8 }
 0x894   : > { %4601 = vmatpush3.bf16.msra.mxu0 %v4962_v12 }
 0x895   : > { %4602 = vmatprep.subr.bf16.mxu0 %v5238_v8 }
 0x898   : > { %4603 = vmatpush3.bf16.msra.mxu0 %v4963_v13 }
 0x899   : > { %4616 = vmatprep.subr.bf16.mxu0 %v5238_v8 }
 0x945   : > { %v1277_v42 = vpop.f32.mrb[16].mxu0 }
 0x946   : > { %v5680_v43 = vadd.f32 %v1332_v20, %v1277_v42  ;;  %v4554_v44 = vpop.f32.mrb[17].mxu0 }
 0x947   : > { %v1280_v45 = vpop.f32.mrb[18].mxu0 }
 0x948   : > { %v4555_v46 = vpop.f32.mrb[19].mxu0 }
 0x955   : > { %v1408_v50 = vpop.f32.mrb[20].mxu0 }
 0x956   : > { %v1409_v51 = vadd.f32 %v1408_v50, %v1361_v48  ;;  %v4570_v52 = vpop.f32.mrb[21].mxu0 }
 0x957   : > { %v1411_v53 = vpop.f32.mrb[22].mxu0 }
 0x958   : > { %v1526_v54 = vpack.c.bf16 %v1409_v51, %v1409_v51  ;;  %v4571_v55 = vpop.f32.mrb[23].mxu0 }
 0x95a   : > { %4591 = vmatmul.mubr.msk.bf16.vlgmr.msra.gmra.mrb[32].mxu1 %vm821_vm1, %v1526_v54 }
 0x95b   : > { %4596 = vmatprep.mubr.msk.bf16.mxu1 %vm5239_vm0, %v5238_v8 }
 0x965   : > { %v1520_v57 = vpop.f32.mrb[24].mxu0 }
 0x966   : > { %v1521_v58 = vadd.f32 %v1520_v57, %v1473_v56  ;;  %v4586_v59 = vpop.f32.mrb[25].mxu0  ;;  %v5731_v56 = vsub.s32 7, %v5532_v16  ;;  %v5736_v57 = vsub.s32 3, %v5532_v16 }
 0x967   : > { %v1523_v60 = vpop.f32.mrb[26].mxu0 }
 0x968   : > { %v1587_v61 = vpack.c.bf16 %v1521_v58, %v1521_v58  ;;  %v4587_v62 = vpop.f32.mrb[27].mxu0  ;;  %v1826_v59 = vrot.slane %v5593_v49, %v5736_v57 }
 0x969   : > { %v1714_v62 = vrot.slane %v5584_v34, %v5736_v57 }
 0x96a   : > { %v1592_v63 = vsel %vm886_vm2, %v1587_v61, 0 }
 0x96b   : > { %4595 = vmatpush3.bf16.msra.mxu1 %v1592_v63 }
 0x96c   : > { %4608 = vmatprep.subr.bf16.mxu1 %v5238_v8 }
 0xa2d   : > { %v1568_v0 = vpop.f32.mrb[32].mxu1 }
 0xa2e   : > { %v1574_v1 = vmul.f32 0.17677669, %v1568_v0  ;;  %v4592_v2 = vpop.f32.mrb[33].mxu1 }
 0xa2f   : > { %v1571_v3 = vpop.f32.mrb[34].mxu1 }
 0xa30   : > { %v4593_v4 = vpop.f32.mrb[35].mxu1  ;;  %v1575_v5 = vsel %vm869_vm3, %v1574_v1, -inf }
 0xa31   : > { %1576 = vmax.xlane.f32.xlu0 %v1575_v5 }
 0xabe   : > { %v1577_v6 = vpop.xlane.xlu0 %1576 }
 0xabf   : > { %v1578_v7 = vsub.f32 %v1574_v1, %v1577_v6 }
 0xac1   : > { %v1579_v9 = vmul.f32 1.442695, %v1578_v7 }
 0xac3   : > { %5050 = vpow2.f32 %v1579_v9 }
 0xacd   : > { %v5051_v10 = vpop.eup %5050 }
 0xace   : > { %v1581_v11 = vsel %vm869_vm3, %v5051_v10, 0.0 }
 0xacf   : > { %1582 = vadd.xlane.f32.xlu1 %v1581_v11 }
 0xb5c   : > { %v1583_v14 = vpop.xlane.xlu1 %1582 }
 0xb5d   : > { %5052 = vrcp.f32 %v1583_v14 }
 0xb67   : > { %v5053_v15 = vpop.eup %5052 }
 0xb68   : > { %v1585_v20 = vmul.f32 %v5053_v15, %v5051_v10 }
 0xb6a   : > { %v1586_v22 = vpack.c.bf16 %v1585_v20, %v1585_v20 }
 0xb6c   : > { %4597 = vmatmul.mubr.msk.bf16.vlgmr.msra.gmra.mrb[36].mxu1 %vm869_vm3, %v1586_v22 }
 0xb6d   : > { %4609 = vmatpush3.bf16.xpose.msra.mxu1 %v4958_v21  ;;  %4612 = vmatprep.mubr.msk.bf16.mxu1 %vm5239_vm0, %v5238_v8  ;;  %v4966_v21 = vld [vmem:[%s5447_s12 + $0xf0] sm:$0xff]  }
 0xb6e   : > { %4610 = vmatprep.subr.bf16.mxu1 %v5238_v8 }
 0xb75   : > { %4611 = vmatpush3.bf16.xpose.msra.mxu1 %v4959_v23 }
 0xb76   : > { %4624 = vmatprep.subr.bf16.mxu1 %v5238_v8 }
 0xb7c   : > { %4613 = vmatmul.mubr.bf16.vlgmr.msra.gmra.mrb[40].mxu1 %v5552_v27 }
 0xb7d   : > { %4625 = vmatpush3.bf16.xpose.msra.mxu1 %v4960_v24  ;;  %4628 = vmatprep.mubr.msk.bf16.mxu1 %vm5239_vm0, %v5238_v8 }
 0xb7e   : > { %4626 = vmatprep.subr.bf16.mxu1 %v5238_v8 }
 0xb85   : > { %4627 = vmatpush3.bf16.xpose.msra.mxu1 %v4961_v26 }
 0xb86   : > { %4644 = vmatprep.subr.bf16.mxu1 %v5238_v8 }
 0xb8c   : > { %4629 = vmatmul.mubr.bf16.vlgmr.msra.gmra.mrb[44].mxu1 %v5552_v27 }
 0xb8d   : > { %4648 = vmatprep.mubr.msk.bf16.mxu1 %vm5239_vm0, %v5238_v8  ;;  %4645 = vmatpush3.bf16.msra.mxu1 %v4966_v21 }
 0xb8e   : > { %4646 = vmatprep.subr.bf16.mxu1 %v5238_v8 }
 0xc3f   : > { %v1628_v29 = vpop.f32.mrb[36].mxu1 }
 0xc40   : > { %v1634_v32 = vpack.c.bf16 %v1628_v29, %v1628_v29  ;;  %v4598_v36 = vpop.f32.mrb[37].mxu1  ;;  %v4967_v29 = vld [vmem:[%s5447_s12 + $0xf8] sm:$0xff]  }
 0xc41   : > { %v1631_v37 = vpop.f32.mrb[38].mxu1  ;;  %4647 = vmatpush3.bf16.msra.mxu1 %v4967_v29 }
 0xc42   : > { %v4599_v38 = vpop.f32.mrb[39].mxu1  ;;  %4605 = vmatmul.mubr.msk.bf16.vlgmr.msra.gmra.mrb[28].mxu0 %vm821_vm1, %v1634_v32  ;;  %4660 = vmatprep.subr.bf16.mxu1 %v5238_v8 }
 0xc43   : > { %4617 = vmatpush3.bf16.xpose.msra.mxu0 %v4964_v30  ;;  %4620 = vmatprep.mubr.msk.bf16.mxu0 %vm5239_vm0, %v5238_v8 }
 0xc44   : > { %4618 = vmatprep.subr.bf16.mxu0 %v5238_v8 }
 0xc4b   : > { %4619 = vmatpush3.bf16.xpose.msra.mxu0 %v4965_v39  ;;  %v5762_v39 = vld [vmem:[%s5475_s19] sm:$0x3] }
 0xc4c   : > { %4632 = vmatprep.subr.bf16.mxu0 %v5238_v8 }
 0xc4f   : > { %v1761_v40 = vpop.f32.mrb[40].mxu1 }
 0xc50   : > { %v4614_v41 = vpop.f32.mrb[41].mxu1  ;;  %v1762_v3 = vadd.f32 %v1761_v40, %v1714_v62  ;;  %v2047_v40 = vrot.slane %v5762_v39, %v5535_v17  ;;  %v2064_v62 = vrot.slane %v5538_v18, %v5620_v35  ;;  %v4973_v18 = vld [vmem:[%s5447_s12 + $0x188] sm:$0xff]  }
 0xc51   : > { %v1764_v42 = vpop.f32.mrb[42].mxu1 }
 0xc52   : > { %v4615_v44 = vpop.f32.mrb[43].mxu1  ;;  %4621 = vmatmul.mubr.bf16.vlgmr.msra.gmra.mrb[32].mxu0 %v5552_v27  ;;  %v1770_v27 = vrot.slane %v5584_v34, %v5731_v56  ;;  %v1879_v4 = vpack.c.bf16 %v1762_v3, %v1762_v3 }
 0xc53   : > { %4634 = vmatprep.mubr.msk.bf16.mxu0 %vm5239_vm0, %v5238_v8 }
 0xc5f   : > { %v1873_v45 = vpop.f32.mrb[44].mxu1 }
 0xc60   : > { %v4630_v46 = vpop.f32.mrb[45].mxu1  ;;  %v1874_v1 = vadd.f32 %v1873_v45, %v1826_v59  ;;  %v4971_v59 = vld [vmem:[%s5447_s12 + $0x108] sm:$0xff]  }
 0xc61   : > { %v1876_v48 = vpop.f32.mrb[46].mxu1 }
 0xc62   : > { %v4631_v50 = vpop.f32.mrb[47].mxu1  ;;  %v1940_v16 = vpack.c.bf16 %v1874_v1, %v1874_v1  ;;  %v2069_v1 = vrot.slane %v5541_v19, %v5620_v35  ;;  %v4974_v19 = vld [vmem:[%s5447_s12 + $0x110] sm:$0xff]  }
 0xc64   : > { %v1945_v5 = vsel %vm886_vm2, %v1940_v16, 0  ;;  %v4972_v16 = vld [vmem:[%s5447_s12 + $0x180] sm:$0xff]  }
 0xd15   : > { %v1684_v51 = vpop.f32.mrb[28].mxu0 }
 0xd16   : > { %v5728_v52 = vadd.f32 %v1684_v51, %v5680_v43  ;;  %v4606_v53 = vpop.f32.mrb[29].mxu0  ;;  %v4968_v51 = vld [vmem:[%s5447_s12 + $0x140] sm:$0xff]  }
 0xd17   : > { %v1687_v54 = vpop.f32.mrb[30].mxu0 }
 0xd18   : > { %v4607_v55 = vpop.f32.mrb[31].mxu0 }
 0xd25   : > { %v1817_v58 = vpop.f32.mrb[32].mxu0 }
 0xd26   : > { %v1818_v60 = vadd.f32 %v1817_v58, %v1770_v27  ;;  %v4622_v61 = vpop.f32.mrb[33].mxu0  ;;  %v4970_v58 = vld [vmem:[%s5447_s12 + $0x100] sm:$0xff]  }
 0xd27   : > { %v1820_v43 = vpop.f32.mrb[34].mxu0 }
 0xd28   : > { %v1880_v63 = vpack.c.bf16 %v1818_v60, %v1818_v60  ;;  %v4623_v0 = vpop.f32.mrb[35].mxu0 }
 0xd2a   : > { %v1885_v2 = vsel %vm821_vm1, %v1880_v63, 0 }
 0xd2b   : > { %4633 = vmatpush3.bf16.xpose.msra.mxu0 %v1885_v2 }
 0xd2c   : > { %4638 = vmatprep.subr.bf16.mxu0 %v5238_v8 }
 0xd32   : > { %4635 = vmatmul.mubr.msk.bf16.vlgmr.msra.gmra.mrb[36].mxu0 %vm821_vm1, %v1879_v4 }
 0xd33   : > { %4639 = vmatpush3.bf16.msra.mxu0 %v1945_v5  ;;  %4640 = vmatprep.mubr.msk.bf16.mxu0 %vm5239_vm0, %v5238_v8  ;;  %v4975_v5 = vld [vmem:[%s5447_s12 + $0x118] sm:$0xff]  }
 0xd34   : > { %4652 = vmatprep.subr.bf16.mxu0 %v5238_v8 }
 0xe05   : > { %v1921_v34 = vpop.f32.mrb[36].mxu0 }
 0xe06   : > { %v1927_v6 = vmul.f32 0.17677669, %v1921_v34  ;;  %v4636_v7 = vpop.f32.mrb[37].mxu0  ;;  %v5810_v34 = vld [vmem:[%s5481_s28 + $0x10] sm:$0xff] }
 0xe07   : > { %v1924_v9 = vpop.f32.mrb[38].mxu0  ;;  %v2207_v29 = vrot.slane %v5810_v34, %v5581_v33 }
 0xe08   : > { %v4637_v10 = vpop.f32.mrb[39].mxu0  ;;  %v1928_v11 = vsel %vm869_vm3, %v1927_v6, -inf }
 0xe09   : > { %1929 = vmax.xlane.f32.xlu0 %v1928_v11 }
 0xe96   : > { %v1930_v12 = vpop.xlane.xlu0 %1929 }
 0xe97   : > { %v1931_v13 = vsub.f32 %v1927_v6, %v1930_v12  ;;  %v2151_v6 = vrot.slane %v5810_v34, %v5535_v17 }
 0xe99   : > { %v1932_v14 = vmul.f32 1.442695, %v1931_v13 }
 0xe9b   : > { %5054 = vpow2.f32 %v1932_v14 }
 0xea5   : > { %v5055_v15 = vpop.eup %5054 }
 0xea6   : > { %v1934_v20 = vsel %vm869_vm3, %v5055_v15, 0.0 }
 0xea7   : > { %1935 = vadd.xlane.f32.xlu1 %v1934_v20 }
 0xf34   : > { %v1936_v22 = vpop.xlane.xlu1 %1935 }
 0xf35   : > { %5056 = vrcp.f32 %v1936_v22 }
 0xf3f   : > { %v5057_v23 = vpop.eup %5056 }
 0xf40   : > { %v1938_v24 = vmul.f32 %v5057_v23, %v5055_v15  ;;  %v2095_v15 = vrot.slane %v5593_v49, %v5581_v33 }
 0xf42   : > { %v1939_v26 = vpack.c.bf16 %v1938_v24, %v1938_v24 }
 0xf44   : > { %4641 = vmatmul.mubr.msk.bf16.vlgmr.msra.gmra.mrb[40].mxu0 %vm869_vm3, %v1939_v26 }
 0xf45   : > { %4656 = vmatprep.mubr.msk.bf16.mxu0 %vm5239_vm0, %v5238_v8  ;;  %4653 = vmatpush3.bf16.xpose.msra.mxu0 %v4970_v58 }
 0xf46   : > { %4654 = vmatprep.subr.bf16.mxu0 %v5238_v8 }
 0xf4d   : > { %4655 = vmatpush3.bf16.xpose.msra.mxu0 %v4971_v59 }
 0xf4e   : > { %4668 = vmatprep.subr.bf16.mxu0 %v5238_v8 }
0x1017   : > { %v1981_v30 = vpop.f32.mrb[40].mxu0 }
0x1018   : > { %v1987_v32 = vpack.c.bf16 %v1981_v30, %v1981_v30  ;;  %v4642_v36 = vpop.f32.mrb[41].mxu0 }
0x1019   : > { %v1984_v37 = vpop.f32.mrb[42].mxu0 }
0x101a   : > { %v4643_v38 = vpop.f32.mrb[43].mxu0  ;;  %4649 = vmatmul.mubr.msk.bf16.vlgmr.msra.gmra.mrb[48].mxu1 %vm821_vm1, %v1987_v32 }
0x101b   : > { %4664 = vmatprep.mubr.msk.bf16.mxu1 %vm5239_vm0, %v5238_v8  ;;  %4661 = vmatpush3.bf16.xpose.msra.mxu1 %v4968_v51 }
0x101c   : > { %4662 = vmatprep.subr.bf16.mxu1 %v5238_v8 }
0x10ed   : > { %v2037_v41 = vpop.f32.mrb[48].mxu1 }
0x10ee   : > { %v2043_v42 = vadd.f32 %v2037_v41, %v5728_v52  ;;  %v4650_v44 = vpop.f32.mrb[49].mxu1  ;;  %v4969_v52 = vld [vmem:[%s5447_s12 + $0x148] sm:$0xff]  }
0x10ef   : > { %v2040_v45 = vpop.f32.mrb[50].mxu1  ;;  %4663 = vmatpush3.bf16.xpose.msra.mxu1 %v4969_v52 }
0x10f0   : > { %v2048_v46 = vadd.f32 %v2047_v40, %v2043_v42  ;;  %v4651_v48 = vpop.f32.mrb[51].mxu1  ;;  %4676 = vmatprep.subr.bf16.mxu1 %v5238_v8 }
0x10f2   : > { %v2049_v50 = vadd.f32 %v2048_v46, %v5547_v25  ;;  %v5775_v25 = vld [vmem:[%s5468_s26] sm:$0xf]  ;;  %s5111_s26 = scalar_lea.vmem %s6029_s5, 128 }
0x10f3   : > { %p5112_p4 = scmp.ne.s32.totalorder %s6029_s5, %s5111_s26 }
0x10f4   : > { %2050 = vadd.xlane.f32.xlu0 %v2049_v50 }
0x10f6   : > { %4665 = vmatmul.mubr.bf16.vlgmr.msra.gmra.mrb[52].mxu1 %v5775_v25 }
0x10f7   : > { %4678 = vmatprep.mubr.msk.bf16.mxu1 %vm5239_vm0, %v5238_v8 }
0x1181   : > { %v2051_v53 = vpop.xlane.xlu0 %2050 }
0x1182   : > { %v2052_v54 = vmul.f32 0.0078125, %v2051_v53 }
0x1184   : > { %v2053_v55 = vsub.f32 %v2049_v50, %v2052_v54 }
0x1186   : > { %v2054_v27 = vmul.f32 %v2053_v55, %v2053_v55 }
0x1188   : > { %2055 = vadd.xlane.f32.xlu1 %v2054_v27 }
0x11c9   : > { %v2198_v7 = vpop.f32.mrb[52].mxu1 }
0x11ca   : > { %v2199_v9 = vadd.f32 %v2198_v7, %v2151_v6  ;;  %v4666_v10 = vpop.f32.mrb[53].mxu1 }
0x11cb   : > { %v2201_v11 = vpop.f32.mrb[54].mxu1  ;;  %v2392_v10 = vrot.slane %v5593_v49, %v5615_v31 }
0x11cc   : > { %v2261_v12 = vpack.c.bf16 %v2199_v9, %v2199_v9  ;;  %v4667_v13 = vpop.f32.mrb[55].mxu1 }
0x11ce   : > { %v2266_v14 = vsel %vm821_vm1, %v2261_v12, 0 }
0x11cf   : > { %4677 = vmatpush3.bf16.xpose.msra.mxu1 %v2266_v14 }
0x11d0   : > { %4682 = vmatprep.subr.bf16.mxu1 %v5238_v8 }
0x1215   : > { %v2056_v60 = vpop.xlane.xlu1 %2055 }
0x1216   : > { %v2057_v61 = vmul.f32 0.0078125, %v2056_v60 }
0x1218   : > { %v2058_v43 = vadd.f32 1e-05, %v2057_v61 }
0x121a   : > { %5058 = vrsqrt.f32 %v2058_v43 }
0x1224   : > { %v5059_v63 = vpop.eup %5058 }
0x1225   : > { %v2060_v0 = vmul.f32 %v5059_v63, %v2053_v55 }
0x1227   : > { %v2065_v2 = vmul.f32 %v2064_v62, %v2060_v0  ;;  %v4976_v62 = vld [vmem:[%s5447_s12 + $0x150] sm:$0xff]   ;;  %v4977_v0 = vld [vmem:[%s5447_s12 + $0x158] sm:$0xff]  }
0x1229   : > { %v5786_v3 = vadd.f32 %v2069_v1, %v2065_v2 }
0x122b   : > { %v5791_v4 = vpack.c.bf16 %v5786_v3, %v5786_v3 }
0x122d   : > { %4657 = vmatmul.mubr.bf16.vlgmr.msra.gmra.mrb[44].mxu0 %v5791_v4 }
0x122e   : > { %4669 = vmatpush3.bf16.xpose.msra.mxu0 %v4972_v16  ;;  %4672 = vmatprep.mubr.msk.bf16.mxu0 %vm5239_vm0, %v5238_v8 }
0x122f   : > { %4670 = vmatprep.subr.bf16.mxu0 %v5238_v8 }
0x1236   : > { %4671 = vmatpush3.bf16.xpose.msra.mxu0 %v4973_v18 }
0x1237   : > { %4688 = vmatprep.subr.bf16.mxu0 %v5238_v8 }
0x123d   : > { %4673 = vmatmul.mubr.bf16.vlgmr.msra.gmra.mrb[48].mxu0 %v5775_v25 }
0x123e   : > { %4689 = vmatpush3.bf16.xpose.msra.mxu0 %v4974_v19  ;;  %4692 = vmatprep.mubr.msk.bf16.mxu0 %vm5239_vm0, %v5238_v8  ;;  %v2448_v19 = vrot.slane %v5810_v34, %v5620_v35 }
0x123f   : > { %4690 = vmatprep.subr.bf16.mxu0 %v5238_v8 }
0x1246   : > { %4691 = vmatpush3.bf16.xpose.msra.mxu0 %v4975_v5 }
0x1247   : > { %4704 = vmatprep.subr.bf16.mxu0 %v5238_v8 }
0x124d   : > { %4693 = vmatmul.mubr.bf16.vlgmr.msra.gmra.mrb[52].mxu0 %v5791_v4 }
0x124e   : > { %4708 = vmatprep.mubr.msk.bf16.mxu0 %vm5239_vm0, %v5238_v8 }
0x1300   : > { %v2142_v20 = vpop.f32.mrb[44].mxu0 }
0x1301   : > { %v2143_v21 = vadd.f32 %v2142_v20, %v2095_v15  ;;  %v4658_v22 = vpop.f32.mrb[45].mxu0  ;;  %v4978_v20 = vld [vmem:[%s5447_s12 + $0x190] sm:$0xff]  }
0x1302   : > { %v2145_v23 = vpop.f32.mrb[46].mxu0  ;;  %4705 = vmatpush3.bf16.xpose.msra.mxu0 %v4978_v20 }
0x1303   : > { %v2260_v24 = vpack.c.bf16 %v2143_v21, %v2143_v21  ;;  %v4659_v26 = vpop.f32.mrb[47].mxu0  ;;  %4706 = vmatprep.subr.bf16.mxu0 %v5238_v8  ;;  %v4979_v21 = vld [vmem:[%s5447_s12 + $0x198] sm:$0xff]  }
0x1305   : > { %4679 = vmatmul.mubr.msk.bf16.vlgmr.msra.gmra.mrb[56].mxu1 %vm821_vm1, %v2260_v24 }
0x1306   : > { %4684 = vmatprep.mubr.msk.bf16.mxu1 %vm5239_vm0, %v5238_v8 }
0x130a   : > { %4707 = vmatpush3.bf16.xpose.msra.mxu0 %v4979_v21 }
0x130b   : > { %4724 = vmatprep.subr.bf16.mxu0 %v5238_v8 }
0x1310   : > { %v2254_v30 = vpop.f32.mrb[48].mxu0 }
0x1311   : > { %v2255_v32 = vadd.f32 %v2254_v30, %v2207_v29  ;;  %v4674_v36 = vpop.f32.mrb[49].mxu0  ;;  %4709 = vmatmul.mubr.bf16.vlgmr.msra.gmra.mrb[56].mxu0 %v5775_v25 }
0x1312   : > { %v2257_v37 = vpop.f32.mrb[50].mxu0  ;;  %4728 = vmatprep.mubr.msk.bf16.mxu0 %vm5239_vm0, %v5238_v8 }
0x1313   : > { %v2321_v38 = vpack.c.bf16 %v2255_v32, %v2255_v32  ;;  %v4675_v40 = vpop.f32.mrb[51].mxu0 }
0x1315   : > { %v2326_v41 = vsel %vm886_vm2, %v2321_v38, 0 }
0x1316   : > { %4683 = vmatpush3.bf16.msra.mxu1 %v2326_v41 }
0x1317   : > { %4696 = vmatprep.subr.bf16.mxu1 %v5238_v8 }
0x1320   : > { %v2439_v42 = vpop.f32.mrb[52].mxu0 }
0x1321   : > { %v4694_v44 = vpop.f32.mrb[53].mxu0  ;;  %v2440_v14 = vadd.f32 %v2439_v42, %v2392_v10  ;;  %v2504_v42 = vrot.slane %v5810_v34, %v5615_v31 }
0x1322   : > { %v2442_v45 = vpop.f32.mrb[54].mxu0 }
0x1323   : > { %v4695_v46 = vpop.f32.mrb[55].mxu0  ;;  %v2557_v15 = vpack.c.bf16 %v2440_v14, %v2440_v14 }
0x13d8   : > { %v2302_v48 = vpop.f32.mrb[56].mxu1 }
0x13d9   : > { %v2308_v50 = vmul.f32 0.17677669, %v2302_v48  ;;  %v4680_v51 = vpop.f32.mrb[57].mxu1 }
0x13da   : > { %v2305_v33 = vpop.f32.mrb[58].mxu1  ;;  %v4982_v51 = vld [vmem:[%s5447_s12 + $0x1d0] sm:$0xff]  }
0x13db   : > { %v4681_v53 = vpop.f32.mrb[59].mxu1  ;;  %v2309_v54 = vsel %vm869_vm3, %v2308_v50, -inf  ;;  %4725 = vmatpush3.bf16.msra.mxu0 %v4982_v51  ;;  %v4984_v33 = vld [vmem:[%s5447_s12 + $0x1d8] sm:$0xff]  }
0x13dc   : > { %2310 = vmax.xlane.f32.xlu0 %v2309_v54  ;;  %4726 = vmatprep.subr.bf16.mxu0 %v5238_v8 }
0x13df   : > { %4727 = vmatpush3.bf16.msra.mxu0 %v4984_v33 }
0x13e0   : > { %4740 = vmatprep.subr.bf16.mxu0 %v5238_v8 }
0x13e4   : > { %v2551_v40 = vpop.f32.mrb[56].mxu0 }
0x13e5   : > { %v4710_v41 = vpop.f32.mrb[57].mxu0  ;;  %v2552_v46 = vadd.f32 %v2551_v40, %v2504_v42  ;;  %v4989_v40 = vld [vmem:[%s5447_s12 + $0x1a8] sm:$0xff]  }
0x13e6   : > { %v2554_v44 = vpop.f32.mrb[58].mxu0 }
0x13e7   : > { %v4711_v45 = vpop.f32.mrb[59].mxu0  ;;  %v2618_v48 = vpack.c.bf16 %v2552_v46, %v2552_v46 }
0x1469   : > { %v2311_v55 = vpop.xlane.xlu0 %2310 }
0x146a   : > { %v2312_v27 = vsub.f32 %v2308_v50, %v2311_v55  ;;  %v2623_v50 = vsel %vm886_vm2, %v2618_v48, 0  ;;  %v4980_v55 = vld [vmem:[%s5447_s12 + $0x1c0] sm:$0xff]  }
0x146c   : > { %v2313_v52 = vmul.f32 1.442695, %v2312_v27 }
0x146e   : > { %5060 = vpow2.f32 %v2313_v52  ;;  %v4981_v52 = vld [vmem:[%s5447_s12 + $0x1c8] sm:$0xff]  }
0x1478   : > { %v5061_v58 = vpop.eup %5060 }
0x1479   : > { %v2315_v59 = vsel %vm869_vm3, %v5061_v58, 0.0 }
0x147a   : > { %2316 = vadd.xlane.f32.xlu1 %v2315_v59  ;;  %v4983_v59 = vld [vmem:[%s5447_s12 + $0x160] sm:$0xff]  }
0x1507   : > { %v2317_v60 = vpop.xlane.xlu1 %2316 }
0x1508   : > { %5062 = vrcp.f32 %v2317_v60  ;;  %v4985_v60 = vld [vmem:[%s5447_s12 + $0x168] sm:$0xff]  }
0x1512   : > { %v5063_v61 = vpop.eup %5062 }
0x1513   : > { %v2319_v43 = vmul.f32 %v5063_v61, %v5061_v58 }
0x1515   : > { %v2320_v63 = vpack.c.bf16 %v2319_v43, %v2319_v43  ;;  %v4986_v43 = vld [vmem:[%s5447_s12 + $0x120] sm:$0xff]  }
0x1517   : > { %4685 = vmatmul.mubr.msk.bf16.vlgmr.msra.gmra.mrb[60].mxu1 %vm869_vm3, %v2320_v63 }
0x1518   : > { %4697 = vmatpush3.bf16.xpose.msra.mxu1 %v4976_v62  ;;  %4700 = vmatprep.mubr.msk.bf16.mxu1 %vm5239_vm0, %v5238_v8 }
0x1519   : > { %4698 = vmatprep.subr.bf16.mxu1 %v5238_v8 }
0x1520   : > { %4699 = vmatpush3.bf16.xpose.msra.mxu1 %v4977_v0 }
0x1521   : > { %4712 = vmatprep.subr.bf16.mxu1 %v5238_v8 }
0x1527   : > { %4701 = vmatmul.mubr.bf16.vlgmr.msra.gmra.mrb[64].mxu1 %v5775_v25 }
0x1528   : > { %4714 = vmatprep.mubr.msk.bf16.mxu1 %vm5239_vm0, %v5238_v8 }
0x15ea   : > { %v5837_v1 = vpop.f32.mrb[60].mxu1 }
0x15eb   : > { %v4686_v2 = vpop.f32.mrb[61].mxu1  ;;  %v2368_v58 = vpack.c.bf16 %v5837_v1, %v5837_v1 }
0x15ec   : > { %v2365_v16 = vpop.f32.mrb[62].mxu1 }
0x15ed   : > { %v4687_v18 = vpop.f32.mrb[63].mxu1  ;;  %v4987_v16 = vld [vmem:[%s5447_s12 + $0x128] sm:$0xff]  }
0x15fa   : > { %v2495_v5 = vpop.f32.mrb[64].mxu1 }
0x15fb   : > { %v2496_v6 = vadd.f32 %v2495_v5, %v2448_v19  ;;  %v4702_v7 = vpop.f32.mrb[65].mxu1 }
0x15fc   : > { %v2498_v9 = vpop.f32.mrb[66].mxu1 }
0x15fd   : > { %v2558_v11 = vpack.c.bf16 %v2496_v6, %v2496_v6  ;;  %v4703_v12 = vpop.f32.mrb[67].mxu1  ;;  %v2855_v6 = vrot.slane %v5810_v34, %v5683_v47 }
0x15ff   : > { %v2563_v13 = vsel %vm821_vm1, %v2558_v11, 0 }
0x1600   : > { %4713 = vmatpush3.bf16.xpose.msra.mxu1 %v2563_v13 }
0x1601   : > { %4718 = vmatprep.subr.bf16.mxu1 %v5238_v8 }
0x1607   : > { %4715 = vmatmul.mubr.msk.bf16.vlgmr.msra.gmra.mrb[68].mxu1 %vm821_vm1, %v2557_v15 }
0x1608   : > { %4720 = vmatprep.mubr.msk.bf16.mxu1 %vm5239_vm0, %v5238_v8  ;;  %4719 = vmatpush3.bf16.msra.mxu1 %v2623_v50 }
0x1609   : > { %4732 = vmatprep.subr.bf16.mxu1 %v5238_v8 }
0x16da   : > { %v2599_v49 = vpop.f32.mrb[68].mxu1 }
0x16db   : > { %v2605_v22 = vmul.f32 0.17677669, %v2599_v49  ;;  %v4716_v23 = vpop.f32.mrb[69].mxu1 }
0x16dc   : > { %v2602_v24 = vpop.f32.mrb[70].mxu1  ;;  %v5901_v23 = vld [vmem:[%s5481_s28 + $0x8] sm:$0xff] }
0x16dd   : > { %v4717_v26 = vpop.f32.mrb[71].mxu1  ;;  %v2606_v29 = vsel %vm869_vm3, %v2605_v22, -inf  ;;  %v2799_v24 = vrot.slane %v5901_v23, %v5669_v28 }
0x16de   : > { %2607 = vmax.xlane.f32.xlu0 %v2606_v29 }
0x176b   : > { %v2608_v30 = vpop.xlane.xlu0 %2607 }
0x176c   : > { %v2609_v32 = vsub.f32 %v2605_v22, %v2608_v30 }
0x176e   : > { %v2610_v36 = vmul.f32 1.442695, %v2609_v32 }
0x1770   : > { %5064 = vpow2.f32 %v2610_v36 }
0x177a   : > { %v5065_v37 = vpop.eup %5064 }
0x177b   : > { %v2612_v38 = vsel %vm869_vm3, %v5065_v37, 0.0 }
0x177c   : > { %2613 = vadd.xlane.f32.xlu1 %v2612_v38  ;;  %v4988_v38 = vld [vmem:[%s5447_s12 + $0x1a0] sm:$0xff]  }
0x1809   : > { %v2614_v31 = vpop.xlane.xlu1 %2613 }
0x180a   : > { %5066 = vrcp.f32 %v2614_v31 }
0x1814   : > { %v5067_v53 = vpop.eup %5066 }
0x1815   : > { %v2616_v54 = vmul.f32 %v5067_v53, %v5065_v37 }
0x1817   : > { %v2617_v27 = vpack.c.bf16 %v2616_v54, %v2616_v54  ;;  %v2911_v54 = vrot.slane %v5810_v34, %v5669_v28 }
0x1819   : > { %4721 = vmatmul.mubr.msk.bf16.vlgmr.msra.gmra.mrb[72].mxu1 %vm869_vm3, %v2617_v27 }
0x181a   : > { %4733 = vmatpush3.bf16.msra.mxu1 %v4980_v55  ;;  %4736 = vmatprep.mubr.msk.bf16.mxu1 %vm5239_vm0, %v5238_v8 }
0x181b   : > { %4734 = vmatprep.subr.bf16.mxu1 %v5238_v8 }
0x181e   : > { %4735 = vmatpush3.bf16.msra.mxu1 %v4981_v52 }
0x181f   : > { %4748 = vmatprep.subr.bf16.mxu1 %v5238_v8 }
0x1821   : > { %4737 = vmatmul.mubr.msk.bf16.vlgmr.msra.gmra.mrb[76].mxu1 %vm821_vm1, %v2368_v58 }
0x1822   : > { %4752 = vmatprep.mubr.msk.bf16.mxu1 %vm5239_vm0, %v5238_v8 }
0x1827   : > { %4749 = vmatpush3.bf16.xpose.msra.mxu1 %v4983_v59 }
0x1828   : > { %4750 = vmatprep.subr.bf16.mxu1 %v5238_v8 }
0x182f   : > { %4751 = vmatpush3.bf16.xpose.msra.mxu1 %v4985_v60 }
0x1830   : > { %4764 = vmatprep.subr.bf16.mxu1 %v5238_v8 }
0x1836   : > { %4753 = vmatmul.mubr.bf16.vlgmr.msra.gmra.mrb[80].mxu1 %v5775_v25 }
0x1837   : > { %4766 = vmatprep.mubr.msk.bf16.mxu1 %vm5239_vm0, %v5238_v8 }
0x18ec   : > { %v2659_v61 = vpop.f32.mrb[72].mxu1 }
0x18ed   : > { %v2665_v62 = vpack.c.bf16 %v2659_v61, %v2659_v61  ;;  %v4722_v63 = vpop.f32.mrb[73].mxu1 }
0x18ee   : > { %v2662_v0 = vpop.f32.mrb[74].mxu1 }
0x18ef   : > { %v4723_v1 = vpop.f32.mrb[75].mxu1  ;;  %4729 = vmatmul.mubr.msk.bf16.vlgmr.msra.gmra.mrb[60].mxu0 %vm821_vm1, %v2665_v62  ;;  %v4993_v62 = vld [vmem:[%s5447_s12 + $0x1e8] sm:$0xff]  }
0x18f0   : > { %4741 = vmatpush3.bf16.xpose.msra.mxu0 %v4986_v43  ;;  %4744 = vmatprep.mubr.msk.bf16.mxu0 %vm5239_vm0, %v5238_v8  ;;  %v4992_v43 = vld [vmem:[%s5447_s12 + $0x1e0] sm:$0xff]   ;;  %v4990_v1 = vld [vmem:[%s5447_s12 + $0x130] sm:$0xff]  }
0x18f1   : > { %4742 = vmatprep.subr.bf16.mxu0 %v5238_v8 }
0x18f4   : > { %v2770_v2 = vpop.f32.mrb[76].mxu1 }
0x18f5   : > { %v4738_v18 = vpop.f32.mrb[77].mxu1 }
0x18f6   : > { %v2773_v19 = vpop.f32.mrb[78].mxu1 }
0x18f7   : > { %v4739_v5 = vpop.f32.mrb[79].mxu1  ;;  %v4994_v19 = vld [vmem:[%s5447_s12 + $0x170] sm:$0xff]  }
0x18f8   : > { %4743 = vmatpush3.bf16.xpose.msra.mxu0 %v4987_v16  ;;  %v4991_v16 = vld [vmem:[%s5447_s12 + $0x138] sm:$0xff]  }
0x18f9   : > { %4756 = vmatprep.subr.bf16.mxu0 %v5238_v8 }
0x18ff   : > { %4745 = vmatmul.mubr.bf16.vlgmr.msra.gmra.mrb[64].mxu0 %v5791_v4 }
0x1900   : > { %4760 = vmatprep.mubr.msk.bf16.mxu0 %vm5239_vm0, %v5238_v8  ;;  %4757 = vmatpush3.bf16.xpose.msra.mxu0 %v4988_v38 }
0x1901   : > { %4758 = vmatprep.subr.bf16.mxu0 %v5238_v8 }
0x1908   : > { %4759 = vmatpush3.bf16.xpose.msra.mxu0 %v4989_v40 }
0x1909   : > { %v2902_v7 = vpop.f32.mrb[80].mxu1  ;;  %4776 = vmatprep.subr.bf16.mxu0 %v5238_v8 }
0x190a   : > { %v2903_v9 = vadd.f32 %v2902_v7, %v2855_v6  ;;  %v4754_v10 = vpop.f32.mrb[81].mxu1 }
0x190b   : > { %v2905_v11 = vpop.f32.mrb[82].mxu1  ;;  %v4995_v10 = vld [vmem:[%s5447_s12 + $0x178] sm:$0xff]  }
0x190c   : > { %v2965_v12 = vpack.c.bf16 %v2903_v9, %v2903_v9  ;;  %v4755_v13 = vpop.f32.mrb[83].mxu1 }
0x190e   : > { %v2970_v14 = vsel %vm821_vm1, %v2965_v12, 0 }
0x190f   : > { %4765 = vmatpush3.bf16.xpose.msra.mxu1 %v2970_v14  ;;  %4761 = vmatmul.mubr.bf16.vlgmr.msra.gmra.mrb[68].mxu0 %v5775_v25 }
0x1910   : > { %4770 = vmatprep.subr.bf16.mxu1 %v5238_v8  ;;  %4780 = vmatprep.mubr.msk.bf16.mxu0 %vm5239_vm0, %v5238_v8 }
0x1911   : > { %4777 = vmatpush3.bf16.msra.mxu0 %v4992_v43 }
0x1912   : > { %4778 = vmatprep.subr.bf16.mxu0 %v5238_v8 }
0x1915   : > { %4779 = vmatpush3.bf16.msra.mxu0 %v4993_v62 }
0x1916   : > { %4792 = vmatprep.subr.bf16.mxu0 %v5238_v8 }
0x19c2   : > { %v2715_v15 = vpop.f32.mrb[60].mxu0 }
0x19c3   : > { %v5898_v20 = vadd.f32 %v2770_v2, %v2715_v15  ;;  %v4730_v21 = vpop.f32.mrb[61].mxu0 }
0x19c4   : > { %v2718_v49 = vpop.f32.mrb[62].mxu0 }
0x19c5   : > { %v4731_v22 = vpop.f32.mrb[63].mxu0 }
0x19d2   : > { %v2846_v26 = vpop.f32.mrb[64].mxu0 }
0x19d3   : > { %v2847_v29 = vadd.f32 %v2846_v26, %v2799_v24  ;;  %v4746_v30 = vpop.f32.mrb[65].mxu0  ;;  %v3208_v24 = vrot.slane %v5810_v34, %v5736_v57  ;;  %v4996_v57 = vld [vmem:[%s5447_s12 + $0x1b0] sm:$0xff]  }
0x19d4   : > { %v2849_v32 = vpop.f32.mrb[66].mxu0 }
0x19d5   : > { %v2964_v36 = vpack.c.bf16 %v2847_v29, %v2847_v29  ;;  %v4747_v37 = vpop.f32.mrb[67].mxu0 }
0x19d7   : > { %4767 = vmatmul.mubr.msk.bf16.vlgmr.msra.gmra.mrb[84].mxu1 %vm821_vm1, %v2964_v36  ;;  %v3152_v36 = vrot.slane %v5901_v23, %v5731_v56 }
0x19d8   : > { %4772 = vmatprep.mubr.msk.bf16.mxu1 %vm5239_vm0, %v5238_v8 }
0x19e2   : > { %v2958_v55 = vpop.f32.mrb[68].mxu0 }
0x19e3   : > { %v2959_v27 = vadd.f32 %v2958_v55, %v2911_v54  ;;  %v4762_v52 = vpop.f32.mrb[69].mxu0 }
0x19e4   : > { %v2961_v58 = vpop.f32.mrb[70].mxu0 }
0x19e5   : > { %v3025_v59 = vpack.c.bf16 %v2959_v27, %v2959_v27  ;;  %v4763_v60 = vpop.f32.mrb[71].mxu0 }
0x19e7   : > { %v3030_v61 = vsel %vm886_vm2, %v3025_v59, 0 }
0x19e8   : > { %4771 = vmatpush3.bf16.msra.mxu1 %v3030_v61 }
0x19e9   : > { %4784 = vmatprep.subr.bf16.mxu1 %v5238_v8 }
0x1aaa   : > { %v3006_v41 = vpop.f32.mrb[84].mxu1 }
0x1aab   : > { %v3012_v42 = vmul.f32 0.17677669, %v3006_v41  ;;  %v4768_v44 = vpop.f32.mrb[85].mxu1 }
0x1aac   : > { %v3009_v45 = vpop.f32.mrb[86].mxu1 }
0x1aad   : > { %v4769_v46 = vpop.f32.mrb[87].mxu1  ;;  %v3013_v48 = vsel %vm869_vm3, %v3012_v42, -inf }
0x1aae   : > { %3014 = vmax.xlane.f32.xlu0 %v3013_v48 }
0x1b3b   : > { %v3015_v50 = vpop.xlane.xlu0 %3014 }
0x1b3c   : > { %v3016_v51 = vsub.f32 %v3012_v42, %v3015_v50  ;;  %v4997_v42 = vld [vmem:[%s5447_s12 + $0x1b8] sm:$0xff]  }
0x1b3e   : > { %v3017_v33 = vmul.f32 1.442695, %v3016_v51  ;;  %v3264_v51 = vrot.slane %v5810_v34, %v5731_v56  ;;  %v4998_v56 = vld [vmem:[%s5447_s12 + $0x1f0] sm:$0xff]  }
0x1b40   : > { %5068 = vpow2.f32 %v3017_v33 }
0x1b4a   : > { %v5069_v31 = vpop.eup %5068 }
0x1b4b   : > { %v3019_v53 = vsel %vm869_vm3, %v5069_v31, 0.0 }
0x1b4c   : > { %3020 = vadd.xlane.f32.xlu1 %v3019_v53 }
0x1bd9   : > { %v3021_v28 = vpop.xlane.xlu1 %3020 }
0x1bda   : > { %5070 = vrcp.f32 %v3021_v28 }
0x1be4   : > { %v5071_v63 = vpop.eup %5070 }
0x1be5   : > { %v3023_v0 = vmul.f32 %v5071_v63, %v5069_v31  ;;  %v4999_v63 = vld [vmem:[%s5447_s12 + $0x1f8] sm:$0xff]   ;;  %s6160_s12 = smov %s6159_s20 }
0x1be7   : > { %v3024_v2 = vpack.c.bf16 %v3023_v0, %v3023_v0 }
0x1be9   : > { %4773 = vmatmul.mubr.msk.bf16.vlgmr.msra.gmra.mrb[88].mxu1 %vm869_vm3, %v3024_v2 }
0x1bea   : > { %4785 = vmatpush3.bf16.xpose.msra.mxu1 %v4990_v1  ;;  %4788 = vmatprep.mubr.msk.bf16.mxu1 %vm5239_vm0, %v5238_v8 }
0x1beb   : > { %4786 = vmatprep.subr.bf16.mxu1 %v5238_v8 }
0x1bf2   : > { %4787 = vmatpush3.bf16.xpose.msra.mxu1 %v4991_v16 }
0x1bf3   : > { %4800 = vmatprep.subr.bf16.mxu1 %v5238_v8 }
0x1bf9   : > { %4789 = vmatmul.mubr.bf16.vlgmr.msra.gmra.mrb[92].mxu1 %v5791_v4 }
0x1bfa   : > { %4804 = vmatprep.mubr.msk.bf16.mxu1 %vm5239_vm0, %v5238_v8  ;;  %4801 = vmatpush3.bf16.xpose.msra.mxu1 %v4996_v57  ;;  %v5024_v57 = vld [vmem:[%s5507_s3 + $0x40] sm:$0xff]  }
0x1bfb   : > { %4802 = vmatprep.subr.bf16.mxu1 %v5238_v8 }
0x1c02   : > { %4803 = vmatpush3.bf16.xpose.msra.mxu1 %v4997_v42  ;;  %v5025_v42 = vld [vmem:[%s5507_s3] sm:$0xff]  }
0x1c03   : > { %4820 = vmatprep.subr.bf16.mxu1 %v5238_v8 }
0x1c09   : > { %4805 = vmatmul.mubr.bf16.vlgmr.msra.gmra.mrb[96].mxu1 %v5775_v25 }
0x1c0a   : > { %4824 = vmatprep.mubr.msk.bf16.mxu1 %vm5239_vm0, %v5238_v8  ;;  %4821 = vmatpush3.bf16.msra.mxu1 %v4998_v56 }
0x1c0b   : > { %4822 = vmatprep.subr.bf16.mxu1 %v5238_v8 }
0x1c0e   : > { %4823 = vmatpush3.bf16.msra.mxu1 %v4999_v63  ;;  %v5038_v63 = vld [vmem:[%s5507_s3 + $0x78] sm:$0xff]  }
0x1c0f   : > { %4454 = vmatprep.subr.bf16.mxu1 %v5024_v57 }
0x1cbc   : > { %v3066_v18 = vpop.f32.mrb[88].mxu1 }
0x1cbd   : > { %v3072_v5 = vpack.c.bf16 %v3066_v18, %v3066_v18  ;;  %v4774_v6 = vpop.f32.mrb[89].mxu1 }
0x1cbe   : > { %v3069_v7 = vpop.f32.mrb[90].mxu1 }
0x1cbf   : > { %v4775_v9 = vpop.f32.mrb[91].mxu1  ;;  %4781 = vmatmul.mubr.msk.bf16.vlgmr.msra.gmra.mrb[72].mxu0 %vm821_vm1, %v3072_v5 }
0x1cc0   : > { %4793 = vmatpush3.bf16.xpose.msra.mxu0 %v4994_v19  ;;  %4796 = vmatprep.mubr.msk.bf16.mxu0 %vm5239_vm0, %v5238_v8 }
0x1cc1   : > { %4794 = vmatprep.subr.bf16.mxu0 %v5238_v8 }
0x1cc8   : > { %4795 = vmatpush3.bf16.xpose.msra.mxu0 %v4995_v10 }
0x1cc9   : > { %4808 = vmatprep.subr.bf16.mxu0 %v5238_v8 }
0x1ccc   : > { %v3199_v4 = vpop.f32.mrb[92].mxu1 }
0x1ccd   : > { %v4790_v11 = vpop.f32.mrb[93].mxu1  ;;  %v3200_v40 = vadd.f32 %v3199_v4, %v3152_v36  ;;  %v5015_v36 = vld [vmem:[%s5497_s4 + $0x50] ss:$8 sps:$4 sm:$0xff]  }
0x1cce   : > { %v3202_v12 = vpop.f32.mrb[94].mxu1  ;;  %v5000_v11 = vld [vmem:[%s5497_s4] ss:$8 sps:$4 sm:$0xff]  }
0x1ccf   : > { %v4791_v13 = vpop.f32.mrb[95].mxu1  ;;  %4797 = vmatmul.mubr.bf16.vlgmr.msra.gmra.mrb[76].mxu0 %v5775_v25  ;;  %v3317_v41 = vpack.c.bf16 %v3200_v40, %v3200_v40  ;;  %v5002_v12 = vld [vmem:[%s5497_s4 + $0x4] ss:$8 sps:$4 sm:$0xff]   ;;  %v5021_v40 = vld [vmem:[%s5497_s4 + $0x70] ss:$8 sps:$4 sm:$0xff]  }
0x1cd0   : > { %4810 = vmatprep.mubr.msk.bf16.mxu0 %vm5239_vm0, %v5238_v8  ;;  %v5005_v13 = vld [vmem:[%s5497_s4 + $0x14] ss:$8 sps:$4 sm:$0xff]  }
0x1cdc   : > { %v3311_v33 = vpop.f32.mrb[96].mxu1 }
0x1cdd   : > { %v3312_v31 = vadd.f32 %v3311_v33, %v3264_v51  ;;  %v4806_v53 = vpop.f32.mrb[97].mxu1  ;;  %v5032_v51 = vld [vmem:[%s5507_s3 + $0x60] sm:$0xff]  }
0x1cde   : > { %v3314_v54 = vpop.f32.mrb[98].mxu1  ;;  %v5033_v33 = vld [vmem:[%s5507_s3 + $0x20] sm:$0xff]   ;;  %v5035_v53 = vld [vmem:[%s5507_s3 + $0x28] sm:$0xff]  }
0x1cdf   : > { %v3378_v25 = vpack.c.bf16 %v3312_v31, %v3312_v31  ;;  %v4807_v55 = vpop.f32.mrb[99].mxu1  ;;  %v5034_v31 = vld [vmem:[%s5507_s3 + $0x68] sm:$0xff]  }
0x1ce1   : > { %v3383_v27 = vsel %vm886_vm2, %v3378_v25, 0 }
0x1d92   : > { %v3122_v14 = vpop.f32.mrb[72].mxu0 }
0x1d93   : > { %v5946_v15 = vadd.f32 %v3122_v14, %v5898_v20  ;;  %v4782_v21 = vpop.f32.mrb[73].mxu0  ;;  %v5008_v14 = vld [vmem:[%s5497_s4 + $0x24] ss:$8 sps:$4 sm:$0xff]  }
0x1d94   : > { %v3125_v49 = vpop.f32.mrb[74].mxu0 }
0x1d95   : > { %v4783_v22 = vpop.f32.mrb[75].mxu0 }
0x1da2   : > { %v3255_v26 = vpop.f32.mrb[76].mxu0 }
0x1da3   : > { %v3256_v29 = vadd.f32 %v3255_v26, %v3208_v24  ;;  %v4798_v30 = vpop.f32.mrb[77].mxu0  ;;  %v5011_v24 = vld [vmem:[%s5497_s4 + $0x34] ss:$8 sps:$4 sm:$0xff]   ;;  %v5009_v26 = vld [vmem:[%s5497_s4 + $0x30] ss:$8 sps:$4 sm:$0xff]  }
0x1da4   : > { %v3258_v32 = vpop.f32.mrb[78].mxu0  ;;  %v5012_v30 = vld [vmem:[%s5497_s4 + $0x40] ss:$8 sps:$4 sm:$0xff]  }
0x1da5   : > { %v3318_v37 = vpack.c.bf16 %v3256_v29, %v3256_v29  ;;  %v4799_v38 = vpop.f32.mrb[79].mxu0  ;;  %v5014_v29 = vld [vmem:[%s5497_s4 + $0x44] ss:$8 sps:$4 sm:$0xff]   ;;  %v5017_v32 = vld [vmem:[%s5497_s4 + $0x54] ss:$8 sps:$4 sm:$0xff]  }
0x1da6   : > { %v5018_v38 = vld [vmem:[%s5497_s4 + $0x60] ss:$8 sps:$4 sm:$0xff]  }
0x1da7   : > { %v3323_v20 = vsel %vm821_vm1, %v3318_v37, 0  ;;  %v5020_v37 = vld [vmem:[%s5497_s4 + $0x64] ss:$8 sps:$4 sm:$0xff]  }
0x1da8   : > { %4809 = vmatpush3.bf16.xpose.msra.mxu0 %v3323_v20  ;;  %v5023_v20 = vld [vmem:[%s5497_s4 + $0x74] ss:$8 sps:$4 sm:$0xff]  }
0x1da9   : > { %4814 = vmatprep.subr.bf16.mxu0 %v5238_v8 }
0x1daf   : > { %4811 = vmatmul.mubr.msk.bf16.vlgmr.msra.gmra.mrb[80].mxu0 %vm821_vm1, %v3317_v41  ;;  %v5240_v41 = vmov 0  }
0x1db0   : > { %4816 = vmatprep.mubr.msk.bf16.mxu0 %vm5239_vm0, %v5238_v8  ;;  %4815 = vmatpush3.bf16.msra.mxu0 %v3383_v27  ;;  %v3485_v8 = vrot.slane %v5762_v39, %v5620_v35  ;;  %v5003_v39 = vld [vmem:[%s5497_s4 + $0x10] ss:$8 sps:$4 sm:$0xff]   ;;  %v5079_v27 = vld [vmem:[%s5486_s0] sm:$0x7] }
0x1db1   : > { %3618 = vmatprep.subr.bf16.mxu0 %v5002_v12 }
0x1e82   : > { %v3359_v23 = vpop.f32.mrb[80].mxu0 }
0x1e83   : > { %v3365_v44 = vmul.f32 0.17677669, %v3359_v23  ;;  %v4812_v45 = vpop.f32.mrb[81].mxu0  ;;  %v5026_v23 = vld [vmem:[%s5507_s3 + $0x48] sm:$0xff]  }
0x1e84   : > { %v3362_v46 = vpop.f32.mrb[82].mxu0  ;;  %v5028_v45 = vld [vmem:[%s5507_s3 + $0x50] sm:$0xff]  }
0x1e85   : > { %v4813_v48 = vpop.f32.mrb[83].mxu0  ;;  %v3366_v50 = vsel %vm869_vm3, %v3365_v44, -inf  ;;  %v5029_v46 = vld [vmem:[%s5507_s3 + $0x10] sm:$0xff]  }
0x1e86   : > { %3367 = vmax.xlane.f32.xlu0 %v3366_v50  ;;  %v5030_v48 = vld [vmem:[%s5507_s3 + $0x58] sm:$0xff]  }
0x1e87   : > { %v5031_v50 = vld [vmem:[%s5507_s3 + $0x18] sm:$0xff]  }
0x1f13   : > { %v3368_v52 = vpop.xlane.xlu0 %3367 }
0x1f14   : > { %v3369_v58 = vsub.f32 %v3365_v44, %v3368_v52  ;;  %v5027_v44 = vld [vmem:[%s5507_s3 + $0x8] sm:$0xff]   ;;  %v3502_v52 = vrot.slane %v5079_v27, %v5683_v47 }
0x1f16   : > { %v3370_v59 = vmul.f32 1.442695, %v3369_v58 }
0x1f18   : > { %5072 = vpow2.f32 %v3370_v59 }
0x1f22   : > { %v5073_v60 = vpop.eup %5072 }
0x1f23   : > { %v3372_v61 = vsel %vm869_vm3, %v5073_v60, 0.0 }
0x1f24   : > { %3373 = vadd.xlane.f32.xlu1 %v3372_v61 }
0x1fb1   : > { %v3374_v34 = vpop.xlane.xlu1 %3373 }
0x1fb2   : > { %5074 = vrcp.f32 %v3374_v34 }
0x1fbc   : > { %v5075_v43 = vpop.eup %5074 }
0x1fbd   : > { %v3376_v62 = vmul.f32 %v5075_v43, %v5073_v60  ;;  %v5080_v60 = vld [vmem:[%s5491_s13] sm:$0x7] }
0x1fbe   : > { %v3507_v61 = vrot.slane %v5080_v60, %v5683_v47 }
0x1fbf   : > { %v3377_v28 = vpack.c.bf16 %v3376_v62, %v3376_v62  ;;  %v5036_v62 = vld [vmem:[%s5507_s3 + $0x70] sm:$0xff]  }
0x1fc1   : > { %4817 = vmatmul.mubr.msk.bf16.vlgmr.msra.gmra.mrb[84].mxu0 %vm869_vm3, %v3377_v28  ;;  %v5037_v28 = vld [vmem:[%s5507_s3 + $0x30] sm:$0xff]  }
0x1fc2   : > { %3619 = vmatpush1.bf16.msra.mxu0 %v5000_v11  ;;  %3650 = vmatprep.mubr.bf16.mxu0 %v5240_v41 }
0x1fc3   : > { %3620 = vmatprep.subr.bf16.mxu0 %v5005_v13 }
0x1fc6   : > { %3621 = vmatpush1.bf16.msra.mxu0 %v5003_v39 }
0x1fc7   : > { %3622 = vmatprep.subr.bf16.mxu0 %v5008_v14 }
0x2094   : > { %v3419_v0 = vpop.f32.mrb[84].mxu0 }
0x2095   : > { %v3425_v1 = vpack.c.bf16 %v3419_v0, %v3419_v0  ;;  %v4818_v2 = vpop.f32.mrb[85].mxu0  ;;  %v5039_v0 = vld [vmem:[%s5507_s3 + $0x38] sm:$0xff]   ;;  %s6158_s3 = sld [smem:[#allocation19_spill]] }
0x2096   : > { %v3422_v16 = vpop.f32.mrb[86].mxu0 }
0x2097   : > { %v4819_v18 = vpop.f32.mrb[87].mxu0  ;;  %4825 = vmatmul.mubr.msk.bf16.vlgmr.msra.gmra.mrb[100].mxu1 %vm821_vm1, %v3425_v1  ;;  %v3526_v1 = vld [vmem:[%s5502_s27] sm:$0x3] }
0x2098   : > { %4455 = vmatpush3.bf16.msra.mxu1 %v5025_v42  ;;  %v3531_v2 = vrot.slane %v3526_v1, %v5535_v17  ;;  %v3535_v16 = vrot.slane %v3526_v1, %v5620_v35  ;;  %v4302_v17 = vld [vmem:[%s592_s10] ss:$0 sm:$0xff] }
0x2099   : > { %4456 = vmatprep.subr.bf16.mxu1 %v5026_v23 }
0x209b   : > { %p6162_p0 = scmp.ne.s32.totalorder %s6158_s3, 0 }
0x209c   : > { %4457 = vmatpush3.bf16.msra.mxu1 %v5027_v44 }
0x209d   : > { %4458 = vmatprep.subr.bf16.mxu1 %v5028_v45  ;;  %p5113_p1 = pnand %p5112_p4, %p6162_p0 }
0x209f   : > { %p5114_p5 = pneg %p5113_p1 }
0x20a0   : > { %4459 = vmatpush3.bf16.msra.mxu1 %v5029_v46 }
0x20a1   : > { %4460 = vmatprep.subr.bf16.mxu1 %v5030_v48 }
0x20a4   : > { %4461 = vmatpush3.bf16.msra.mxu1 %v5031_v50 }
0x20a5   : > { %4462 = vmatprep.subr.bf16.mxu1 %v5032_v51 }
0x20a8   : > { %4463 = vmatpush3.bf16.msra.mxu1 %v5033_v33 }
0x20a9   : > { %4464 = vmatprep.subr.bf16.mxu1 %v5034_v31 }
0x20ac   : > { %4465 = vmatpush3.bf16.msra.mxu1 %v5035_v53 }
0x20ad   : > { %4466 = vmatprep.subr.bf16.mxu1 %v5036_v62 }
0x20b0   : > { %4467 = vmatpush3.bf16.msra.mxu1 %v5037_v28 }
0x20b1   : > { %4468 = vmatprep.subr.bf16.mxu1 %v5038_v63 }
0x20b4   : > { %4469 = vmatpush3.bf16.msra.mxu1 %v5039_v0 }
0x216a   : > { %v3475_v19 = vpop.f32.mrb[100].mxu1 }
0x216b   : > { %v3481_v5 = vadd.f32 %v3475_v19, %v5946_v15  ;;  %v4826_v6 = vpop.f32.mrb[101].mxu1  ;;  %v5006_v15 = vld [vmem:[%s5497_s4 + $0x20] ss:$8 sps:$4 sm:$0xff]   ;;  %s4320_s4 = sshll.u32 %s5221_s24, 7  ;;  %s5241_s24 = smov [#allocation5]  }
0x216c   : > { %v3478_v7 = vpop.f32.mrb[102].mxu1  ;;  %3623 = vmatpush1.bf16.msra.mxu0 %v5006_v15  ;;  %s6027_s14 = scalar_lea.hbm %s6159_s20, %s4320_s4  ;;  %s5115_s28 = sshll.u32 %s5241_s24, 4  ;;  %s5116_s28 = int_to_ptr.vmem [resolvable:$false] %s5115_s28 }
0x216d   : > { %v3486_v9 = vadd.f32 %v3485_v8, %v3481_v5  ;;  %v4827_v10 = vpop.f32.mrb[103].mxu1  ;;  %3624 = vmatprep.subr.bf16.mxu0 %v5011_v24  ;;  %s5117_s13 = scalar_lea.vmem %s5116_s28, 256  ;;  %p5118_p7 = scmp.lt.s32.totalorder %s6029_s5, %s5116_s28 }
0x216e   : > { %p5119_p3 = scmp.lt.s32.totalorder %s5117_s13, %s5111_s26 }
0x216f   : > { %v3487_v4 = vadd.f32 %v3486_v9, %v5786_v3 }
0x2170   : > { %3625 = vmatpush1.bf16.msra.mxu0 %v5009_v26  ;;  %p5120_p10 = por %p5119_p3, %p5118_p7 }
0x2171   : > { %3488 = vadd.xlane.f32.xlu0 %v3487_v4  ;;  %3626 = vmatprep.subr.bf16.mxu0 %v5014_v29 }
0x2172   : > { %p5121_p11 = pnand %p5120_p10, %p5114_p5 }
0x2174   : > { %3627 = vmatpush1.bf16.msra.mxu0 %v5012_v30 }
0x2175   : > { %3628 = vmatprep.subr.bf16.mxu0 %v5017_v32 }
0x2178   : > { %3629 = vmatpush1.bf16.msra.mxu0 %v5015_v36 }
0x2179   : > { %3630 = vmatprep.subr.bf16.mxu0 %v5020_v37 }
0x217c   : > { %3631 = vmatpush1.bf16.msra.mxu0 %v5018_v38 }
0x217d   : > { %3632 = vmatprep.subr.bf16.mxu0 %v5023_v20 }
0x2180   : > { %3633 = vmatpush1.bf16.msra.mxu0 %v5021_v40 }
0x21fe   : > { %v3489_v3 = vpop.xlane.xlu0 %3488 }
0x21ff   : > { %v3490_v21 = vmul.f32 0.0078125, %v3489_v3 }
0x2201   : > { %v3491_v49 = vsub.f32 %v3487_v4, %v3490_v21 }
0x2203   : > { %v3492_v22 = vmul.f32 %v3491_v49, %v3491_v49 }
0x2205   : > { %3493 = vadd.xlane.f32.xlu1 %v3492_v22 }
0x2292   : > { %v3494_v54 = vpop.xlane.xlu1 %3493 }
0x2293   : > { %v3495_v25 = vmul.f32 0.0078125, %v3494_v54 }
0x2295   : > { %v3496_v55 = vadd.f32 1e-05, %v3495_v25 }
0x2297   : > { %5076 = vrsqrt.f32 %v3496_v55 }
0x22a1   : > { %v5077_v58 = vpop.eup %5076 }
0x22a2   : > { %v3498_v59 = vmul.f32 %v5077_v58, %v3491_v49 }
0x22a4   : > { %v3503_v56 = vmul.f32 %v3502_v52, %v3498_v59 }
0x22a6   : > { %v3508_v34 = vadd.f32 %v3507_v61, %v3503_v56 }
0x22a8   : > { %v3509_v43 = vpack.c.bf16 %v3508_v34, %v3508_v34 }
0x22aa   : > { %3651 = vmatmul.mubr.bf16.vlgmr.msra.gmra.mrb[88].mxu0 %v3509_v43 }
0x237d   : > { %v3652_v18 = vpop.f32.mrb[88].mxu0 }
0x237e   : > { %v3653_v47 = vadd.f32 %v3652_v18, %v3531_v2  ;;  %v3654_v8 = vpop.f32.mrb[89].mxu0 }
0x237f   : > { %v3655_v19 = vadd.f32 %v3654_v8, %v3535_v16  ;;  %v3656_v5 = vpop.f32.mrb[90].mxu0 }
0x2380   : > { %v3659_v6 = vmax.f32 %v3653_v47, 0.0  ;;  %v3657_v7 = vpop.f32.mrb[91].mxu0 }
0x2381   : > { %v3660_v9 = vmax.f32 %v3655_v19, 0.0 }
0x2382   : > { %v3661_v4 = vpack.c.bf16 %v3659_v6, %v3659_v6 }
0x2383   : > { %v3662_v10 = vpack.c.bf16 %v3660_v9, %v3660_v9 }
0x2385   : > { %3830 = vmatprep.mubr.bf16.mxu1 %v3662_v10 }
0x2386   : > { %3831 = vmatmul.mubr.bf16.vlgmr.msra.gmra.mrb[104].mxu1 %v3661_v4 }
0x2459   : > { %v4470_v11 = vpop.f32.mrb[104].mxu1 }
0x245a   : > { %v4471_v35 = vpop.f32.mrb[105].mxu1 }
0x245b   : > { %v4472_v12 = vadd.f32 %v4471_v35, %v4470_v11  ;;  %v4473_v13 = vpop.f32.mrb[106].mxu1 }
0x245c   : > { %v4474_v39 = vpop.f32.mrb[107].mxu1 }
0x245d   : > { %v3833_v14 = vadd.f32 %v4472_v12, %v4302_v17 }
0x245f   : > { %v3838_v15 = vadd.f32 %v3833_v14, %v3508_v34 }
0x2461   : > { %3839 = vst [vmem:[%s5513_s6] sm:$0xff] %v3838_v15 }
0x2462   : > { %5124 = shalt.err (!%p5121_p11)
}
0x2463   : > { %s5125_s6 = scalar_lea.hbm %s6027_s14, 128  ;;  %s5129_s17 = scalar_lea.hbm %s6160_s12, 256 }
0x2464   : > { %p5126_p6 = scmp.ne.s32.totalorder %s6027_s14, %s5125_s6  ;;  %p5130_p12 = scmp.lt.u32.totalorder %s6027_s14, %s6160_s12 }
0x2465   : > { %p5131_p2 = scmp.lt.u32.totalorder %s5129_s17, %s5125_s6  ;;  %p5133_p4 = scmp.lt.u32.totalorder %s5125_s6, %s6027_s14 }
0x2466   : > { %p5127_p9 = pnand %p5126_p6, %p6162_p0 }
0x2467   : > { %p5132_p8 = por %p5131_p2, %p5130_p12 }
0x2468   : > { %p5128_p13 = pneg %p5127_p9 }
0x2469   : > { %p5134_p1 = por %p5133_p4, %p5132_p8 }
0x246b   : > { %p5135_p5 = pnand %p5134_p1, %p5128_p13 }
0x246d   : > { %5138 = shalt.err (!%p5135_p5)
}
0x246e   : > { %4831 = dma.vmem_to_hbm [thread:$0]  (%p6162_p0), %s6029_s5, 128, %s6027_s14, %s3841_s15  }
0x246f PF: > { %s6163_s11 = sld [smem:[#allocation14_spill]]  ;;  %s6164_s9 = sld [smem:[#allocation8_spill]] }
0x2470   : > { %s6165_s30 = sld [smem:[#allocation20_spill]] }
0x2475   : > { %p4842_p7 = scmp.ge.s32.totalorder %s6163_s11, 2  ;;  %s3866_s16 = sand.u32 1, %s6164_s9  }
0x2476   : > { %p6166_p3 = scmp.ne.s32.totalorder %s6165_s30, 0  ;;  %s3867_s10 = scalar_lea.sflag [#allocation4], %s3866_s16 }
0x2478   : > { %p4838_p10 = pnand %p4842_p7, %p6166_p3 }
0x247a   : > { %5188 = dma.done.wait (!%p4838_p10), %s3867_s10, 128  }
0x247b   : > { %5190 = vsyncadd (!%p4838_p10), %s3867_s10, 4294967168  ;;  %s27_s27 = sadd.s32 1, %s6163_s11   ;;  %s6167_s0 = sld [smem:[#allocation9_spill]] }
0x247c   : > { %p24_p11 = scmp.ge.s32.totalorder %s27_s27, 6   ;;  %s6168_s19 = sld [smem:[#allocation18_spill]] }
0x247d   : > { %s6169_s20 = sld [smem:[#allocation10_spill]]  ;;  %s6170_s21 = sld [smem:[#allocation11_spill]] }
0x247e   : > { %s6171_s22 = sld [smem:[#allocation17_spill]]  ;;  %s6172_s23 = sld [smem:[#allocation12_spill]] }
0x247f   : > { %s6173_s24 = sld [smem:[#allocation13_spill]]  ;;  %s6174_s25 = sld [smem:[#allocation15_spill]] }
0x2480   : > { %s6175_s26 = sld [smem:[#allocation16_spill]]  ;;  %s6176_s17 = smov %s5197_s18 }
0x2481   : > { %s6177_s18 = smov %s6167_s0  ;;  %26 = sbr.rel (!%p24_p11) target bundleno = 20 (0x14), region = 174 }
0x2488   :  { %3872 = vsyncpa [#allocation3], 1 }
0x2489   :  { %3874 = vsyncpa [#allocation3 + $0x1], 1 }
0x248a   :  { %3875 = vsyncpa [#allocation4], 1 }
0x248b   :  { %3877 = vsyncpa [#allocation4 + $0x1], 1 }

</bundles_post_ra>
